<compile_context>
chip_gen: v7x
topology: tpu7x:2x2x1
jax: 0.10.0
libtpu: 0.0.40
codegen_flags: <defaults>
</compile_context>

<pallas_src>
import math

import jax
import jax.numpy as jnp
from jax.experimental import pallas as pl
from jax.experimental.pallas import tpu as pltpu

# ----------------------------------------------------------------------------
# Config (small, structure-preserving stand-ins for the PyTorch defaults)
# ----------------------------------------------------------------------------
B = 2               # batch
N_PATCHES = 8       # histology patches per sample
HIST_DIM = 130      # hist_dim      (PyTorch default 1026)
RNA_DIM = 256       # rna_dim       (PyTorch default 19359)
CLIN_DIM = 13       # clinical_dim  (PyTorch default 13)

PROJ_DIM = 128      # hist_proj_dim (1024)
ENC_HIDDEN = 128    # encoder hidden / ResidualBlock width (1024)
HIST_FEAT = 64      # hist_feat_dim (512)
RNA_FEAT = 128      # rna_feat_dim  (1024)
CLIN_FEAT = 32      # clinical_feat_dim (128)
RNA_BNECK1 = 256    # (4096)
RNA_BNECK2 = 128    # (2048)
CLIN_HIDDEN = 64    # (256)
CLS_H1 = 128        # classifier hidden (256)
CLS_H2 = 64         # classifier hidden (64)
EMBED_DIM = 32      # progression embedding dim
SURV_HIDDEN = 128   # survival hidden / ResidualBlock width (256)
SURV_H2 = 64        # survival hidden (64)

OUT_DIM = HIST_FEAT + RNA_FEAT + CLIN_FEAT          # encoder.out_dim (224)
SURV_IN = OUT_DIM + EMBED_DIM                       # survival regressor input (256)

# Padded / fused-kernel layout constants
MB = 8                          # padded batch (one sublane tile)
BN = B * N_PATCHES              # total patch rows (16)
HIST_PAD = 256                  # 130 -> 256 (lane-aligned K)
CLIN_PAD = 128                  # 13  -> 128 (lane-aligned K)
OUT_LANES = 128                 # lane-dense combined output slab width

LN_EPS = 1e-5
BN_EPS = 1e-5

# TODO(synk): scaling to the real PyTorch dims (RNA_DIM=19359, 4096-wide
# bottleneck) requires K-tiling rb1/rb2 on a grid reduction axis ("arbitrary")
# with an f32 VMEM accumulator and a "parallel" grid axis so both v7x
# TensorCores are used; re-derive weight-tile sizes for v7x's 64 MiB VMEM
# (~8-12 MB/buffer) vs v6e/v5e.  At these stand-in sizes everything fits.

PARAM_ORDER = (
    # attention pooling (ap_wa is a (1, PROJ) row vector -> VPU lane-reduce head)
    "ap_wp", "ap_bp", "ap_g", "ap_beta", "ap_wa", "ap_ba",
    # hist encoder
    "h1_w", "h1_b", "hres_w1", "hres_b1", "hres_w2", "hres_b2", "h2_w", "h2_b",
    # rna bottleneck + encoder
    "rb1_w", "rb1_b", "rb2_w", "rb2_b", "r1_w", "r1_b",
    "rres_w1", "rres_b1", "rres_w2", "rres_b2", "r2_w", "r2_b",
    # clinical encoder
    "c1_w", "c1_b", "c2_w", "c2_b",
    # classifier (first layer split by input block instead of concat;
    #             cl3 split into two (1, CLS_H2) row vectors -> VPU head)
    "cl1_wh", "cl1_wr", "cl1_wc", "cl1_b", "cl2_w", "cl2_b",
    "cl3_w0", "cl3_w1", "cl3_b",
    # progression embedding
    "emb",
    # survival regressor (first layer split by input block; s3 as a row vector)
    "s1_wh", "s1_wr", "s1_wc", "s1_we", "s1_b",
    "sres_w1", "sres_b1", "sres_w2", "sres_b2", "s2_w", "s2_b", "s3_w", "s3_b",
)

# Weight matrices cast to bf16 (biases / LN params / embedding / head row
# vectors stay f32 — they are tiny and used on the VPU).
BF16_WEIGHTS = frozenset({
    "ap_wp", "h1_w", "hres_w1", "hres_w2", "h2_w",
    "rb1_w", "rb2_w", "r1_w", "rres_w1", "rres_w2", "r2_w",
    "c1_w", "c2_w", "cl1_wh", "cl1_wr", "cl1_wc", "cl2_w",
    "s1_wh", "s1_wr", "s1_wc", "s1_we", "sres_w1", "sres_w2", "s2_w",
})

# Weight matrices streamed HBM->VMEM with manual async DMA (overlapped with the
# attention-pool / hist / clinical compute).  Everything else is VMEM-resident
# via its BlockSpec.
RNA_STREAM = ("rb1_w", "rb2_w", "r1_w", "rres_w1", "rres_w2", "r2_w")
RNA_STREAM_SHAPES = (
    (RNA_DIM, RNA_BNECK1), (RNA_BNECK1, RNA_BNECK2), (RNA_BNECK2, ENC_HIDDEN),
    (ENC_HIDDEN, ENC_HIDDEN), (ENC_HIDDEN, ENC_HIDDEN), (ENC_HIDDEN, RNA_FEAT),
)


# ----------------------------------------------------------------------------
# Fused forward kernel: whole network in one grid-less pallas_call
# ----------------------------------------------------------------------------
def _fused_kernel(hist_ref, rna_ref, clin_ref, sel_ref, *rest):
    n_p = len(PARAM_ORDER)
    p = dict(zip(PARAM_ORDER, rest[:n_p]))
    out_ref = rest[n_p]
    bufs = rest[n_p + 1: n_p + 1 + len(RNA_STREAM)]
    sem = rest[n_p + 1 + len(RNA_STREAM)]

    f32 = jnp.float32
    bf16 = jnp.bfloat16

    # Kick off the HBM->VMEM DMAs for the rna-path weight matrices; they
    # complete behind the attention-pool / hist / clinical compute below.
    copies = [pltpu.make_async_copy(p[name], buf, sem.at[i])
              for i, (name, buf) in enumerate(zip(RNA_STREAM, bufs))]
    for cp in copies:
        cp.start()
    rna_w = dict(zip(RNA_STREAM, bufs))

    def mm(x, w_ref):
        # bf16 x bf16 MXU matmul with f32 accumulation.
        return jnp.dot(x.astype(bf16), w_ref[...], preferred_element_type=f32)

    def linear(x, w_ref, b_ref, relu=False):
        y = mm(x, w_ref) + b_ref[...]
        return jnp.maximum(y, 0.0) if relu else y

    def resblock(x, w1, b1, w2, b2):
        h = jnp.maximum(mm(x, w1) + b1[...], 0.0)
        h = mm(h, w2) + b2[...]
        return jnp.maximum(x + h, 0.0)

    # ---- AttentionPooling (all B*N patch rows at once) ----
    xh = hist_ref[...]                                              # (BN, HIST_PAD)
    xp = mm(xh, p["ap_wp"]) + p["ap_bp"][...]                       # (BN, PROJ)

    mu = jnp.mean(xp, axis=-1, keepdims=True)
    var = jnp.mean(jnp.square(xp - mu), axis=-1, keepdims=True)
    ln = (xp - mu) * jax.lax.rsqrt(var + LN_EPS)
    ln = ln * p["ap_g"][...] + p["ap_beta"][...]
    # attention score head on the VPU (broadcast-mul + lane reduce), no N=1 MXU op
    scores = (jnp.sum(jnp.maximum(ln, 0.0) * p["ap_wa"][...],
                      axis=-1, keepdims=True) + p["ap_ba"][...])    # (BN, 1)

    # Segment softmax folded into the pooling matmul (constant cost, no B loop):
    #   pooled_b = (sum_i e_i * xp_i) / (sum_i e_i)   over patches i of sample b
    m = jnp.max(scores, axis=0, keepdims=True)                      # shared shift
    e = jnp.exp(scores - m)                                         # (BN, 1)
    sel = sel_ref[...]                                              # (MB, BN)
    num = jnp.dot(sel, e * xp, preferred_element_type=f32)          # (MB, PROJ)
    den = jnp.dot(sel, e, preferred_element_type=f32)               # (MB, 1)
    pooled = num / jnp.maximum(den, 1e-30)                          # padded rows -> 0

    # ---- hist_encoder: Linear+BN+ReLU (Dropout=id), ResBlock, Linear+ReLU ----
    h = linear(pooled, p["h1_w"], p["h1_b"], relu=True)
    h = resblock(h, p["hres_w1"], p["hres_b1"], p["hres_w2"], p["hres_b2"])
    hist_repr = linear(h, p["h2_w"], p["h2_b"], relu=True)          # (MB, HIST_FEAT)

    # ---- clinical_encoder (independent of rna: runs ahead of the DMA wait) ----
    c = linear(clin_ref[...], p["c1_w"], p["c1_b"], relu=True)
    clin_repr = linear(c, p["c2_w"], p["c2_b"], relu=False)         # (MB, CLIN_FEAT)

    # ---- wait for the streamed rna weights, then rna_bottleneck + rna_encoder ----
    for cp in copies:
        cp.wait()
    r = linear(rna_ref[...], rna_w["rb1_w"], p["rb1_b"], relu=True)
    r = linear(r, rna_w["rb2_w"], p["rb2_b"], relu=True)
    r = linear(r, rna_w["r1_w"], p["r1_b"], relu=True)
    r = resblock(r, rna_w["rres_w1"], p["rres_b1"], rna_w["rres_w2"], p["rres_b2"])
    rna_repr = linear(r, rna_w["r2_w"], p["r2_b"], relu=True)       # (MB, RNA_FEAT)

    # ---- ProgressionClassifier (split-weight first layer == concat + matmul) ----
    z = (mm(hist_repr, p["cl1_wh"]) + mm(rna_repr, p["cl1_wr"])
         + mm(clin_repr, p["cl1_wc"]) + p["cl1_b"][...])
    z = jnp.maximum(z, 0.0)
    z = linear(z, p["cl2_w"], p["cl2_b"], relu=True)
    # 2-lane head on the VPU (two lane reductions instead of an N=2 MXU matmul)
    cl3_b = p["cl3_b"][...]
    l0 = jnp.sum(z * p["cl3_w0"][...], axis=-1, keepdims=True) + cl3_b[:, 0:1]
    l1 = jnp.sum(z * p["cl3_w1"][...], axis=-1, keepdims=True) + cl3_b[:, 1:2]

    # ---- ProgressionEmbedding: softmax->argmax == argmax of logits ----
    emb = p["emb"][...]                                             # (2, EMBED_DIM)
    take1 = jnp.broadcast_to(l1 > l0, (MB, EMBED_DIM))
    prog_emb = jnp.where(take1,
                         jnp.broadcast_to(emb[1:2, :], (MB, EMBED_DIM)),
                         jnp.broadcast_to(emb[0:1, :], (MB, EMBED_DIM)))

    # ---- SurvivalRegressor (split-weight first layer == concat + matmul) ----
    s = (mm(hist_repr, p["s1_wh"]) + mm(rna_repr, p["s1_wr"])
         + mm(clin_repr, p["s1_wc"]) + mm(prog_emb, p["s1_we"]) + p["s1_b"][...])
    s = jnp.maximum(s, 0.0)
    s = resblock(s, p["sres_w1"], p["sres_b1"], p["sres_w2"], p["sres_b2"])
    s = linear(s, p["s2_w"], p["s2_b"], relu=True)
    # 1-lane head on the VPU
    risk = jnp.sum(s * p["s3_w"][...], axis=-1, keepdims=True) + p["s3_b"][...]

    # Single lane-dense store: lanes 0-1 = class logits, lane 2 = risk score.
    out_ref[...] = jnp.concatenate(
        [l0, l1, risk, jnp.zeros((MB, OUT_LANES - 3), f32)], axis=-1)


# ----------------------------------------------------------------------------
# Parameter construction (deterministic, PyTorch-style uniform(-1/sqrt(k)) init)
# ----------------------------------------------------------------------------
def _linear_init(key, fan_in, fan_out):
    k1, k2 = jax.random.split(key)
    bound = 1.0 / math.sqrt(fan_in)
    w = jax.random.uniform(k1, (fan_in, fan_out), jnp.float32, -bound, bound)
    b = jax.random.uniform(k2, (1, fan_out), jnp.float32, -bound, bound)
    return w, b


def _fold_bn(w, b):
    # Eval-mode BatchNorm1d with fresh running stats (mean=0, var=1, gamma=1,
    # beta=0) -> y *= 1/sqrt(1+eps); fold the scale into (w, b).
    s = 1.0 / math.sqrt(1.0 + BN_EPS)
    return w * s, b * s


def make_params(key):
    keys = iter(jax.random.split(key, 64))

    def lin(fan_in, fan_out, bn=False, pad_in=None):
        w, b = _linear_init(next(keys), fan_in, fan_out)
        if bn:
            w, b = _fold_bn(w, b)
        if pad_in is not None and pad_in > fan_in:
            w = jnp.pad(w, ((0, pad_in - fan_in), (0, 0)))   # zero rows: no-op math
        return w, b

    p = {}

    # AttentionPooling (HIST_DIM pre-padded to a 128-multiple K)
    p["ap_wp"], p["ap_bp"] = lin(HIST_DIM, PROJ_DIM, pad_in=HIST_PAD)
    p["ap_g"] = jnp.ones((1, PROJ_DIM), jnp.float32)
    p["ap_beta"] = jnp.zeros((1, PROJ_DIM), jnp.float32)
    wa, ba = _linear_init(next(keys), PROJ_DIM, 1)
    p["ap_wa"] = wa.T                      # (1, PROJ) row vector (VPU head)
    p["ap_ba"] = ba                        # (1, 1)

    def resblock(prefix, dim):
        p[prefix + "_w1"], p[prefix + "_b1"] = lin(dim, dim, bn=True)
        p[prefix + "_w2"], p[prefix + "_b2"] = lin(dim, dim, bn=True)

    # hist_encoder
    p["h1_w"], p["h1_b"] = lin(PROJ_DIM, ENC_HIDDEN, bn=True)
    resblock("hres", ENC_HIDDEN)
    p["h2_w"], p["h2_b"] = lin(ENC_HIDDEN, HIST_FEAT)

    # rna_bottleneck + rna_encoder
    p["rb1_w"], p["rb1_b"] = lin(RNA_DIM, RNA_BNECK1)
    p["rb2_w"], p["rb2_b"] = lin(RNA_BNECK1, RNA_BNECK2)
    p["r1_w"], p["r1_b"] = lin(RNA_BNECK2, ENC_HIDDEN, bn=True)
    resblock("rres", ENC_HIDDEN)
    p["r2_w"], p["r2_b"] = lin(ENC_HIDDEN, RNA_FEAT)

    # clinical_encoder (CLIN_DIM pre-padded to a 128-multiple K)
    p["c1_w"], p["c1_b"] = lin(CLIN_DIM, CLIN_HIDDEN, bn=True, pad_in=CLIN_PAD)
    p["c2_w"], p["c2_b"] = lin(CLIN_HIDDEN, CLIN_FEAT)

    # classifier — split the first layer's weight by input block (== concat)
    w, b = lin(OUT_DIM, CLS_H1)
    p["cl1_wh"] = w[:HIST_FEAT]
    p["cl1_wr"] = w[HIST_FEAT:HIST_FEAT + RNA_FEAT]
    p["cl1_wc"] = w[HIST_FEAT + RNA_FEAT:]
    p["cl1_b"] = b
    p["cl2_w"], p["cl2_b"] = lin(CLS_H1, CLS_H2)
    w, b = _linear_init(next(keys), CLS_H2, 2)
    p["cl3_w0"] = w[:, 0:1].T              # (1, CLS_H2) row vectors (VPU head)
    p["cl3_w1"] = w[:, 1:2].T
    p["cl3_b"] = b                         # (1, 2)

    # progression embedding (nn.Embedding default: N(0, 1))
    p["emb"] = jax.random.normal(next(keys), (2, EMBED_DIM), jnp.float32)

    # survival regressor — split the first layer's weight by input block
    w, b = lin(SURV_IN, SURV_HIDDEN, bn=True)
    p["s1_wh"] = w[:HIST_FEAT]
    p["s1_wr"] = w[HIST_FEAT:HIST_FEAT + RNA_FEAT]
    p["s1_wc"] = w[HIST_FEAT + RNA_FEAT:OUT_DIM]
    p["s1_we"] = w[OUT_DIM:]
    p["s1_b"] = b
    resblock("sres", SURV_HIDDEN)
    p["s2_w"], p["s2_b"] = lin(SURV_HIDDEN, SURV_H2)
    w, b = _linear_init(next(keys), SURV_H2, 1)
    p["s3_w"] = w.T                        # (1, SURV_H2) row vector (VPU head)
    p["s3_b"] = b                          # (1, 1)

    # bf16 weight matrices: halves HBM->VMEM weight traffic; MXU is natively
    # bf16 on v5e/v6e/v7x (accumulation kept f32 via preferred_element_type).
    for name in BF16_WEIGHTS:
        p[name] = p[name].astype(jnp.bfloat16)
    return p


# ----------------------------------------------------------------------------
# Forward pass: one fused pallas_call, weights VMEM-resident or DMA-streamed
# ----------------------------------------------------------------------------
def two_stage_forward(params, hist_patches, rna_vec, clinical_vec):
    assert hist_patches.shape == (B, N_PATCHES, HIST_DIM)
    assert rna_vec.shape == (B, RNA_DIM)
    assert clinical_vec.shape == (B, CLIN_DIM)

    # One-time wrapper-level padding: flatten patches, lane-align K dims,
    # pad the batch (M) to a full sublane tile of 8.
    hist_flat = hist_patches.reshape(BN, HIST_DIM)
    hist_flat = jnp.pad(hist_flat, ((0, 0), (0, HIST_PAD - HIST_DIM)))
    rna_pad = jnp.pad(rna_vec, ((0, MB - B), (0, 0)))
    clin_pad = jnp.pad(clinical_vec, ((0, MB - B), (0, CLIN_PAD - CLIN_DIM)))

    # Precomputed block-diagonal patch->sample selector (hoisted out of the kernel).
    sel = (jnp.arange(MB, dtype=jnp.int32)[:, None]
           == (jnp.arange(BN, dtype=jnp.int32)[None, :] // N_PATCHES)
           ).astype(jnp.float32)                                    # (MB, BN)

    flat_params = [params[name] for name in PARAM_ORDER]
    inputs = [hist_flat, rna_pad, clin_pad, sel, *flat_params]

    vmem = pl.BlockSpec(memory_space=pltpu.MemorySpace.VMEM)
    anyspec = pl.BlockSpec(memory_space=pl.ANY)   # streamed weights stay in HBM
    in_specs = ([vmem] * 4
                + [anyspec if n in RNA_STREAM else vmem for n in PARAM_ORDER])

    # Advisory cost estimate for XLA scheduling around the fused call.
    bytes_accessed = int(sum(v.size * v.dtype.itemsize for v in inputs)
                         + MB * OUT_LANES * 4)
    mat_flops = 0
    for name in PARAM_ORDER:
        v = params[name]
        if v.ndim == 2 and v.shape[0] > 2:        # weight matrices only
            rows = BN if name == "ap_wp" else MB
            mat_flops += 2 * rows * v.size
    cost = pl.CostEstimate(flops=int(mat_flops), transcendentals=2 * BN,
                           bytes_accessed=bytes_accessed)

    out = pl.pallas_call(
        _fused_kernel,
        out_shape=jax.ShapeDtypeStruct((MB, OUT_LANES), jnp.float32),
        in_specs=in_specs,
        out_specs=vmem,
        scratch_shapes=(
            [pltpu.VMEM(s, jnp.bfloat16) for s in RNA_STREAM_SHAPES]
            + [pltpu.SemaphoreType.DMA((len(RNA_STREAM),))]),
        compiler_params=pltpu.CompilerParams(vmem_limit_bytes=32 * 1024 * 1024),
        cost_estimate=cost,
    )(*inputs)

    class_logits = out[:B, 0:2]          # (B, 2)
    risk_score = out[:B, 2]              # (B,)  == squeeze(-1)
    return class_logits, risk_score


# ----------------------------------------------------------------------------
if __name__ == "__main__":
    root = jax.random.PRNGKey(0)
    k_param, k_hist, k_rna, k_clin = jax.random.split(root, 4)

    params = make_params(k_param)
    hist_patches = jax.random.normal(k_hist, (B, N_PATCHES, HIST_DIM), jnp.float32)
    rna_vec = jax.random.normal(k_rna, (B, RNA_DIM), jnp.float32)
    clinical_vec = jax.random.normal(k_clin, (B, CLIN_DIM), jnp.float32)

    fwd = jax.jit(lambda h, r, c: two_stage_forward(params, h, r, c))
    class_logits, risk_score = fwd(hist_patches, rna_vec, clinical_vec)
    jax.block_until_ready((class_logits, risk_score))

    assert class_logits.shape == (B, 2), class_logits.shape
    assert risk_score.shape == (B,), risk_score.shape
    assert class_logits.dtype == jnp.float32 and risk_score.dtype == jnp.float32
    assert bool(jnp.all(jnp.isfinite(class_logits))) and bool(jnp.all(jnp.isfinite(risk_score)))

    print("KERNEL_OK")
</pallas_src>

<mosaic_0001>
module attributes {stable_mosaic.version = 11 : i64} {
  func.func @_fused_kernel(%arg0: memref<16x256xf32, #tpu.memory_space<vmem>>, %arg1: memref<8x256xf32, #tpu.memory_space<vmem>>, %arg2: memref<8x128xf32, #tpu.memory_space<vmem>>, %arg3: memref<8x16xf32, #tpu.memory_space<vmem>>, %arg4: memref<256x128xbf16, #tpu.memory_space<vmem>>, %arg5: memref<1x128xf32, #tpu.memory_space<vmem>>, %arg6: memref<1x128xf32, #tpu.memory_space<vmem>>, %arg7: memref<1x128xf32, #tpu.memory_space<vmem>>, %arg8: memref<1x128xf32, #tpu.memory_space<vmem>>, %arg9: memref<1x1xf32, #tpu.memory_space<vmem>>, %arg10: memref<128x128xbf16, #tpu.memory_space<vmem>>, %arg11: memref<1x128xf32, #tpu.memory_space<vmem>>, %arg12: memref<128x128xbf16, #tpu.memory_space<vmem>>, %arg13: memref<1x128xf32, #tpu.memory_space<vmem>>, %arg14: memref<128x128xbf16, #tpu.memory_space<vmem>>, %arg15: memref<1x128xf32, #tpu.memory_space<vmem>>, %arg16: memref<128x64xbf16, #tpu.memory_space<vmem>>, %arg17: memref<1x64xf32, #tpu.memory_space<vmem>>, %arg18: memref<256x256xbf16, #tpu.memory_space<any>>, %arg19: memref<1x256xf32, #tpu.memory_space<vmem>>, %arg20: memref<256x128xbf16, #tpu.memory_space<any>>, %arg21: memref<1x128xf32, #tpu.memory_space<vmem>>, %arg22: memref<128x128xbf16, #tpu.memory_space<any>>, %arg23: memref<1x128xf32, #tpu.memory_space<vmem>>, %arg24: memref<128x128xbf16, #tpu.memory_space<any>>, %arg25: memref<1x128xf32, #tpu.memory_space<vmem>>, %arg26: memref<128x128xbf16, #tpu.memory_space<any>>, %arg27: memref<1x128xf32, #tpu.memory_space<vmem>>, %arg28: memref<128x128xbf16, #tpu.memory_space<any>>, %arg29: memref<1x128xf32, #tpu.memory_space<vmem>>, %arg30: memref<128x64xbf16, #tpu.memory_space<vmem>>, %arg31: memref<1x64xf32, #tpu.memory_space<vmem>>, %arg32: memref<64x32xbf16, #tpu.memory_space<vmem>>, %arg33: memref<1x32xf32, #tpu.memory_space<vmem>>, %arg34: memref<64x128xbf16, #tpu.memory_space<vmem>>, %arg35: memref<128x128xbf16, #tpu.memory_space<vmem>>, %arg36: memref<32x128xbf16, #tpu.memory_space<vmem>>, %arg37: memref<1x128xf32, #tpu.memory_space<vmem>>, %arg38: memref<128x64xbf16, #tpu.memory_space<vmem>>, %arg39: memref<1x64xf32, #tpu.memory_space<vmem>>, %arg40: memref<1x64xf32, #tpu.memory_space<vmem>>, %arg41: memref<1x64xf32, #tpu.memory_space<vmem>>, %arg42: memref<1x2xf32, #tpu.memory_space<vmem>>, %arg43: memref<2x32xf32, #tpu.memory_space<vmem>>, %arg44: memref<64x128xbf16, #tpu.memory_space<vmem>>, %arg45: memref<128x128xbf16, #tpu.memory_space<vmem>>, %arg46: memref<32x128xbf16, #tpu.memory_space<vmem>>, %arg47: memref<32x128xbf16, #tpu.memory_space<vmem>>, %arg48: memref<1x128xf32, #tpu.memory_space<vmem>>, %arg49: memref<128x128xbf16, #tpu.memory_space<vmem>>, %arg50: memref<1x128xf32, #tpu.memory_space<vmem>>, %arg51: memref<128x128xbf16, #tpu.memory_space<vmem>>, %arg52: memref<1x128xf32, #tpu.memory_space<vmem>>, %arg53: memref<128x64xbf16, #tpu.memory_space<vmem>>, %arg54: memref<1x64xf32, #tpu.memory_space<vmem>>, %arg55: memref<1x64xf32, #tpu.memory_space<vmem>>, %arg56: memref<1x1xf32, #tpu.memory_space<vmem>>, %arg57: memref<8x128xf32, #tpu.memory_space<vmem>>, %arg58: memref<256x256xbf16, #tpu.memory_space<vmem>>, %arg59: memref<256x128xbf16, #tpu.memory_space<vmem>>, %arg60: memref<128x128xbf16, #tpu.memory_space<vmem>>, %arg61: memref<128x128xbf16, #tpu.memory_space<vmem>>, %arg62: memref<128x128xbf16, #tpu.memory_space<vmem>>, %arg63: memref<128x128xbf16, #tpu.memory_space<vmem>>, %arg64: memref<6x!tpu.dma_semaphore, #tpu.memory_space<semaphore_mem>>) attributes {dimension_semantics = [], scalar_prefetch = 0 : i64, scratch_operands = 7 : i64, tpu.core_type = #tpu.core_type<tc>} {
    %c0_i32 = arith.constant 0 : i32
    %0 = tpu.memref_slice %arg64[%c0_i32] : memref<6x!tpu.dma_semaphore, #tpu.memory_space<semaphore_mem>> -> memref<1x!tpu.dma_semaphore, #tpu.memory_space<semaphore_mem>>
    %1 = tpu.memref_squeeze %0 : memref<1x!tpu.dma_semaphore, #tpu.memory_space<semaphore_mem>> -> memref<!tpu.dma_semaphore, #tpu.memory_space<semaphore_mem>>
    tpu.enqueue_dma source(%arg18 : memref<256x256xbf16, #tpu.memory_space<any>>) target(%arg58 : memref<256x256xbf16, #tpu.memory_space<vmem>>) target_semaphore(%1 : memref<!tpu.dma_semaphore, #tpu.memory_space<semaphore_mem>>)
    %c1_i32 = arith.constant 1 : i32
    %2 = tpu.memref_slice %arg64[%c1_i32] : memref<6x!tpu.dma_semaphore, #tpu.memory_space<semaphore_mem>> -> memref<1x!tpu.dma_semaphore, #tpu.memory_space<semaphore_mem>>
    %3 = tpu.memref_squeeze %2 : memref<1x!tpu.dma_semaphore, #tpu.memory_space<semaphore_mem>> -> memref<!tpu.dma_semaphore, #tpu.memory_space<semaphore_mem>>
    tpu.enqueue_dma source(%arg20 : memref<256x128xbf16, #tpu.memory_space<any>>) target(%arg59 : memref<256x128xbf16, #tpu.memory_space<vmem>>) target_semaphore(%3 : memref<!tpu.dma_semaphore, #tpu.memory_space<semaphore_mem>>)
    %c2_i32 = arith.constant 2 : i32
    %4 = tpu.memref_slice %arg64[%c2_i32] : memref<6x!tpu.dma_semaphore, #tpu.memory_space<semaphore_mem>> -> memref<1x!tpu.dma_semaphore, #tpu.memory_space<semaphore_mem>>
    %5 = tpu.memref_squeeze %4 : memref<1x!tpu.dma_semaphore, #tpu.memory_space<semaphore_mem>> -> memref<!tpu.dma_semaphore, #tpu.memory_space<semaphore_mem>>
    tpu.enqueue_dma source(%arg22 : memref<128x128xbf16, #tpu.memory_space<any>>) target(%arg60 : memref<128x128xbf16, #tpu.memory_space<vmem>>) target_semaphore(%5 : memref<!tpu.dma_semaphore, #tpu.memory_space<semaphore_mem>>)
    %c3_i32 = arith.constant 3 : i32
    %6 = tpu.memref_slice %arg64[%c3_i32] : memref<6x!tpu.dma_semaphore, #tpu.memory_space<semaphore_mem>> -> memref<1x!tpu.dma_semaphore, #tpu.memory_space<semaphore_mem>>
    %7 = tpu.memref_squeeze %6 : memref<1x!tpu.dma_semaphore, #tpu.memory_space<semaphore_mem>> -> memref<!tpu.dma_semaphore, #tpu.memory_space<semaphore_mem>>
    tpu.enqueue_dma source(%arg24 : memref<128x128xbf16, #tpu.memory_space<any>>) target(%arg61 : memref<128x128xbf16, #tpu.memory_space<vmem>>) target_semaphore(%7 : memref<!tpu.dma_semaphore, #tpu.memory_space<semaphore_mem>>)
    %c4_i32 = arith.constant 4 : i32
    %8 = tpu.memref_slice %arg64[%c4_i32] : memref<6x!tpu.dma_semaphore, #tpu.memory_space<semaphore_mem>> -> memref<1x!tpu.dma_semaphore, #tpu.memory_space<semaphore_mem>>
    %9 = tpu.memref_squeeze %8 : memref<1x!tpu.dma_semaphore, #tpu.memory_space<semaphore_mem>> -> memref<!tpu.dma_semaphore, #tpu.memory_space<semaphore_mem>>
    tpu.enqueue_dma source(%arg26 : memref<128x128xbf16, #tpu.memory_space<any>>) target(%arg62 : memref<128x128xbf16, #tpu.memory_space<vmem>>) target_semaphore(%9 : memref<!tpu.dma_semaphore, #tpu.memory_space<semaphore_mem>>)
    %c5_i32 = arith.constant 5 : i32
    %10 = tpu.memref_slice %arg64[%c5_i32] : memref<6x!tpu.dma_semaphore, #tpu.memory_space<semaphore_mem>> -> memref<1x!tpu.dma_semaphore, #tpu.memory_space<semaphore_mem>>
    %11 = tpu.memref_squeeze %10 : memref<1x!tpu.dma_semaphore, #tpu.memory_space<semaphore_mem>> -> memref<!tpu.dma_semaphore, #tpu.memory_space<semaphore_mem>>
    tpu.enqueue_dma source(%arg28 : memref<128x128xbf16, #tpu.memory_space<any>>) target(%arg63 : memref<128x128xbf16, #tpu.memory_space<vmem>>) target_semaphore(%11 : memref<!tpu.dma_semaphore, #tpu.memory_space<semaphore_mem>>)
    %c0 = arith.constant 0 : index
    %c0_0 = arith.constant 0 : index
    %12 = vector.load %arg0[%c0, %c0_0] : memref<16x256xf32, #tpu.memory_space<vmem>>, vector<16x256xf32>
    %13 = arith.truncf %12 : vector<16x256xf32> to vector<16x256xbf16>
    %c0_1 = arith.constant 0 : index
    %c0_2 = arith.constant 0 : index
    %14 = vector.load %arg4[%c0_1, %c0_2] : memref<256x128xbf16, #tpu.memory_space<vmem>>, vector<256x128xbf16>
    %cst = arith.constant dense<0.000000e+00> : vector<16x128xf32>
    %15 = tpu.matmul %13, %14, %cst {dimension_numbers = #tpu.dot_dimension_numbers<[1], [0], [0], [1], [0, 0, 1, 1], [], []>} : vector<16x256xbf16>, vector<256x128xbf16>, vector<16x128xf32> -> vector<16x128xf32>
    %c0_3 = arith.constant 0 : index
    %c0_4 = arith.constant 0 : index
    %16 = vector.load %arg5[%c0_3, %c0_4] : memref<1x128xf32, #tpu.memory_space<vmem>>, vector<1x128xf32>
    %17 = vector.broadcast %16 : vector<1x128xf32> to vector<16x128xf32>
    %18 = arith.addf %15, %17 : vector<16x128xf32>
    %cst_5 = arith.constant dense<0.000000e+00> : vector<16xf32>
    %19 = vector.multi_reduction <add>, %18, %cst_5 [1] : vector<16x128xf32> to vector<16xf32>
    %20 = vector.shape_cast %19 : vector<16xf32> to vector<16x1xf32>
    %cst_6 = arith.constant 1.280000e+02 : f32
    %21 = vector.broadcast %cst_6 : f32 to vector<16x1xf32>
    %22 = arith.divf %20, %21 : vector<16x1xf32>
    %23 = vector.broadcast %22 : vector<16x1xf32> to vector<16x128xf32>
    %24 = arith.subf %18, %23 : vector<16x128xf32>
    %25 = arith.mulf %24, %24 : vector<16x128xf32>
    %cst_7 = arith.constant dense<0.000000e+00> : vector<16xf32>
    %26 = vector.multi_reduction <add>, %25, %cst_7 [1] : vector<16x128xf32> to vector<16xf32>
    %27 = vector.shape_cast %26 : vector<16xf32> to vector<16x1xf32>
    %cst_8 = arith.constant 1.280000e+02 : f32
    %28 = vector.broadcast %cst_8 : f32 to vector<16x1xf32>
    %29 = arith.divf %27, %28 : vector<16x1xf32>
    %30 = vector.broadcast %22 : vector<16x1xf32> to vector<16x128xf32>
    %31 = arith.subf %18, %30 : vector<16x128xf32>
    %cst_9 = arith.constant 9.99999974E-6 : f32
    %32 = vector.broadcast %cst_9 : f32 to vector<16x1xf32>
    %33 = arith.addf %29, %32 : vector<16x1xf32>
    %34 = math.rsqrt %33 : vector<16x1xf32>
    %35 = vector.broadcast %34 : vector<16x1xf32> to vector<16x128xf32>
    %36 = arith.mulf %31, %35 : vector<16x128xf32>
    %c0_10 = arith.constant 0 : index
    %c0_11 = arith.constant 0 : index
    %37 = vector.load %arg6[%c0_10, %c0_11] : memref<1x128xf32, #tpu.memory_space<vmem>>, vector<1x128xf32>
    %38 = vector.broadcast %37 : vector<1x128xf32> to vector<16x128xf32>
    %39 = arith.mulf %36, %38 : vector<16x128xf32>
    %c0_12 = arith.constant 0 : index
    %c0_13 = arith.constant 0 : index
    %40 = vector.load %arg7[%c0_12, %c0_13] : memref<1x128xf32, #tpu.memory_space<vmem>>, vector<1x128xf32>
    %41 = vector.broadcast %40 : vector<1x128xf32> to vector<16x128xf32>
    %42 = arith.addf %39, %41 : vector<16x128xf32>
    %cst_14 = arith.constant 0.000000e+00 : f32
    %43 = vector.broadcast %cst_14 : f32 to vector<16x128xf32>
    %44 = arith.maximumf %42, %43 : vector<16x128xf32>
    %c0_15 = arith.constant 0 : index
    %c0_16 = arith.constant 0 : index
    %45 = vector.load %arg8[%c0_15, %c0_16] : memref<1x128xf32, #tpu.memory_space<vmem>>, vector<1x128xf32>
    %46 = vector.broadcast %45 : vector<1x128xf32> to vector<16x128xf32>
    %47 = arith.mulf %44, %46 : vector<16x128xf32>
    %cst_17 = arith.constant dense<0.000000e+00> : vector<16xf32>
    %48 = vector.multi_reduction <add>, %47, %cst_17 [1] : vector<16x128xf32> to vector<16xf32>
    %49 = vector.shape_cast %48 : vector<16xf32> to vector<16x1xf32>
    %c0_18 = arith.constant 0 : index
    %c0_19 = arith.constant 0 : index
    %50 = vector.load %arg9[%c0_18, %c0_19] : memref<1x1xf32, #tpu.memory_space<vmem>>, vector<1x1xf32>
    %51 = vector.broadcast %50 : vector<1x1xf32> to vector<16x1xf32>
    %52 = arith.addf %49, %51 : vector<16x1xf32>
    %cst_20 = arith.constant dense<0xFF800000> : vector<1xf32>
    %53 = vector.multi_reduction <maximumf>, %52, %cst_20 [0] : vector<16x1xf32> to vector<1xf32>
    %54 = vector.shape_cast %53 : vector<1xf32> to vector<1x1xf32>
    %55 = vector.broadcast %54 : vector<1x1xf32> to vector<16x1xf32>
    %56 = arith.subf %52, %55 : vector<16x1xf32>
    %57 = math.exp %56 : vector<16x1xf32>
    %c0_21 = arith.constant 0 : index
    %c0_22 = arith.constant 0 : index
    %58 = vector.load %arg3[%c0_21, %c0_22] : memref<8x16xf32, #tpu.memory_space<vmem>>, vector<8x16xf32>
    %59 = vector.broadcast %57 : vector<16x1xf32> to vector<16x128xf32>
    %60 = arith.mulf %59, %18 : vector<16x128xf32>
    %cst_23 = arith.constant dense<0.000000e+00> : vector<8x128xf32>
    %61 = tpu.matmul %58, %60, %cst_23 {dimension_numbers = #tpu.dot_dimension_numbers<[1], [0], [0], [1], [0, 0, 1, 1], [], []>} : vector<8x16xf32>, vector<16x128xf32>, vector<8x128xf32> -> vector<8x128xf32>
    %cst_24 = arith.constant dense<0.000000e+00> : vector<8x1xf32>
    %62 = tpu.matmul %58, %57, %cst_24 {dimension_numbers = #tpu.dot_dimension_numbers<[1], [0], [0], [1], [0, 0, 1, 1], [], []>} : vector<8x16xf32>, vector<16x1xf32>, vector<8x1xf32> -> vector<8x1xf32>
    %cst_25 = arith.constant 1.000000e-30 : f32
    %63 = vector.broadcast %cst_25 : f32 to vector<8x1xf32>
    %64 = arith.maximumf %62, %63 : vector<8x1xf32>
    %65 = vector.broadcast %64 : vector<8x1xf32> to vector<8x128xf32>
    %66 = arith.divf %61, %65 : vector<8x128xf32>
    %67 = arith.truncf %66 : vector<8x128xf32> to vector<8x128xbf16>
    %c0_26 = arith.constant 0 : index
    %c0_27 = arith.constant 0 : index
    %68 = vector.load %arg10[%c0_26, %c0_27] : memref<128x128xbf16, #tpu.memory_space<vmem>>, vector<128x128xbf16>
    %cst_28 = arith.constant dense<0.000000e+00> : vector<8x128xf32>
    %69 = tpu.matmul %67, %68, %cst_28 {dimension_numbers = #tpu.dot_dimension_numbers<[1], [0], [0], [1], [0, 0, 1, 1], [], []>} : vector<8x128xbf16>, vector<128x128xbf16>, vector<8x128xf32> -> vector<8x128xf32>
    %c0_29 = arith.constant 0 : index
    %c0_30 = arith.constant 0 : index
    %70 = vector.load %arg11[%c0_29, %c0_30] : memref<1x128xf32, #tpu.memory_space<vmem>>, vector<1x128xf32>
    %71 = vector.broadcast %70 : vector<1x128xf32> to vector<8x128xf32>
    %72 = arith.addf %69, %71 : vector<8x128xf32>
    %cst_31 = arith.constant 0.000000e+00 : f32
    %73 = vector.broadcast %cst_31 : f32 to vector<8x128xf32>
    %74 = arith.maximumf %72, %73 : vector<8x128xf32>
    %75 = arith.truncf %74 : vector<8x128xf32> to vector<8x128xbf16>
    %c0_32 = arith.constant 0 : index
    %c0_33 = arith.constant 0 : index
    %76 = vector.load %arg12[%c0_32, %c0_33] : memref<128x128xbf16, #tpu.memory_space<vmem>>, vector<128x128xbf16>
    %cst_34 = arith.constant dense<0.000000e+00> : vector<8x128xf32>
    %77 = tpu.matmul %75, %76, %cst_34 {dimension_numbers = #tpu.dot_dimension_numbers<[1], [0], [0], [1], [0, 0, 1, 1], [], []>} : vector<8x128xbf16>, vector<128x128xbf16>, vector<8x128xf32> -> vector<8x128xf32>
    %c0_35 = arith.constant 0 : index
    %c0_36 = arith.constant 0 : index
    %78 = vector.load %arg13[%c0_35, %c0_36] : memref<1x128xf32, #tpu.memory_space<vmem>>, vector<1x128xf32>
    %79 = vector.broadcast %78 : vector<1x128xf32> to vector<8x128xf32>
    %80 = arith.addf %77, %79 : vector<8x128xf32>
    %cst_37 = arith.constant 0.000000e+00 : f32
    %81 = vector.broadcast %cst_37 : f32 to vector<8x128xf32>
    %82 = arith.maximumf %80, %81 : vector<8x128xf32>
    %83 = arith.truncf %82 : vector<8x128xf32> to vector<8x128xbf16>
    %c0_38 = arith.constant 0 : index
    %c0_39 = arith.constant 0 : index
    %84 = vector.load %arg14[%c0_38, %c0_39] : memref<128x128xbf16, #tpu.memory_space<vmem>>, vector<128x128xbf16>
    %cst_40 = arith.constant dense<0.000000e+00> : vector<8x128xf32>
    %85 = tpu.matmul %83, %84, %cst_40 {dimension_numbers = #tpu.dot_dimension_numbers<[1], [0], [0], [1], [0, 0, 1, 1], [], []>} : vector<8x128xbf16>, vector<128x128xbf16>, vector<8x128xf32> -> vector<8x128xf32>
    %c0_41 = arith.constant 0 : index
    %c0_42 = arith.constant 0 : index
    %86 = vector.load %arg15[%c0_41, %c0_42] : memref<1x128xf32, #tpu.memory_space<vmem>>, vector<1x128xf32>
    %87 = vector.broadcast %86 : vector<1x128xf32> to vector<8x128xf32>
    %88 = arith.addf %85, %87 : vector<8x128xf32>
    %89 = arith.addf %74, %88 : vector<8x128xf32>
    %cst_43 = arith.constant 0.000000e+00 : f32
    %90 = vector.broadcast %cst_43 : f32 to vector<8x128xf32>
    %91 = arith.maximumf %89, %90 : vector<8x128xf32>
    %92 = arith.truncf %91 : vector<8x128xf32> to vector<8x128xbf16>
    %c0_44 = arith.constant 0 : index
    %c0_45 = arith.constant 0 : index
    %93 = vector.load %arg16[%c0_44, %c0_45] : memref<128x64xbf16, #tpu.memory_space<vmem>>, vector<128x64xbf16>
    %cst_46 = arith.constant dense<0.000000e+00> : vector<8x64xf32>
    %94 = tpu.matmul %92, %93, %cst_46 {dimension_numbers = #tpu.dot_dimension_numbers<[1], [0], [0], [1], [0, 0, 1, 1], [], []>} : vector<8x128xbf16>, vector<128x64xbf16>, vector<8x64xf32> -> vector<8x64xf32>
    %c0_47 = arith.constant 0 : index
    %c0_48 = arith.constant 0 : index
    %95 = vector.load %arg17[%c0_47, %c0_48] : memref<1x64xf32, #tpu.memory_space<vmem>>, vector<1x64xf32>
    %96 = vector.broadcast %95 : vector<1x64xf32> to vector<8x64xf32>
    %97 = arith.addf %94, %96 : vector<8x64xf32>
    %cst_49 = arith.constant 0.000000e+00 : f32
    %98 = vector.broadcast %cst_49 : f32 to vector<8x64xf32>
    %99 = arith.maximumf %97, %98 : vector<8x64xf32>
    %c0_50 = arith.constant 0 : index
    %c0_51 = arith.constant 0 : index
    %100 = vector.load %arg2[%c0_50, %c0_51] : memref<8x128xf32, #tpu.memory_space<vmem>>, vector<8x128xf32>
    %101 = arith.truncf %100 : vector<8x128xf32> to vector<8x128xbf16>
    %c0_52 = arith.constant 0 : index
    %c0_53 = arith.constant 0 : index
    %102 = vector.load %arg30[%c0_52, %c0_53] : memref<128x64xbf16, #tpu.memory_space<vmem>>, vector<128x64xbf16>
    %cst_54 = arith.constant dense<0.000000e+00> : vector<8x64xf32>
    %103 = tpu.matmul %101, %102, %cst_54 {dimension_numbers = #tpu.dot_dimension_numbers<[1], [0], [0], [1], [0, 0, 1, 1], [], []>} : vector<8x128xbf16>, vector<128x64xbf16>, vector<8x64xf32> -> vector<8x64xf32>
    %c0_55 = arith.constant 0 : index
    %c0_56 = arith.constant 0 : index
    %104 = vector.load %arg31[%c0_55, %c0_56] : memref<1x64xf32, #tpu.memory_space<vmem>>, vector<1x64xf32>
    %105 = vector.broadcast %104 : vector<1x64xf32> to vector<8x64xf32>
    %106 = arith.addf %103, %105 : vector<8x64xf32>
    %cst_57 = arith.constant 0.000000e+00 : f32
    %107 = vector.broadcast %cst_57 : f32 to vector<8x64xf32>
    %108 = arith.maximumf %106, %107 : vector<8x64xf32>
    %109 = arith.truncf %108 : vector<8x64xf32> to vector<8x64xbf16>
    %c0_58 = arith.constant 0 : index
    %c0_59 = arith.constant 0 : index
    %110 = vector.load %arg32[%c0_58, %c0_59] : memref<64x32xbf16, #tpu.memory_space<vmem>>, vector<64x32xbf16>
    %cst_60 = arith.constant dense<0.000000e+00> : vector<8x32xf32>
    %111 = tpu.matmul %109, %110, %cst_60 {dimension_numbers = #tpu.dot_dimension_numbers<[1], [0], [0], [1], [0, 0, 1, 1], [], []>} : vector<8x64xbf16>, vector<64x32xbf16>, vector<8x32xf32> -> vector<8x32xf32>
    %c0_61 = arith.constant 0 : index
    %c0_62 = arith.constant 0 : index
    %112 = vector.load %arg33[%c0_61, %c0_62] : memref<1x32xf32, #tpu.memory_space<vmem>>, vector<1x32xf32>
    %113 = vector.broadcast %112 : vector<1x32xf32> to vector<8x32xf32>
    %114 = arith.addf %111, %113 : vector<8x32xf32>
    %c0_i32_63 = arith.constant 0 : i32
    %115 = tpu.memref_slice %arg64[%c0_i32_63] : memref<6x!tpu.dma_semaphore, #tpu.memory_space<semaphore_mem>> -> memref<1x!tpu.dma_semaphore, #tpu.memory_space<semaphore_mem>>
    %116 = tpu.memref_squeeze %115 : memref<1x!tpu.dma_semaphore, #tpu.memory_space<semaphore_mem>> -> memref<!tpu.dma_semaphore, #tpu.memory_space<semaphore_mem>>
    tpu.wait_dma2 semaphore(%116 : memref<!tpu.dma_semaphore, #tpu.memory_space<semaphore_mem>>) src(%arg18 : memref<256x256xbf16, #tpu.memory_space<any>>) dst(%arg58 : memref<256x256xbf16, #tpu.memory_space<vmem>>)
    %c1_i32_64 = arith.constant 1 : i32
    %117 = tpu.memref_slice %arg64[%c1_i32_64] : memref<6x!tpu.dma_semaphore, #tpu.memory_space<semaphore_mem>> -> memref<1x!tpu.dma_semaphore, #tpu.memory_space<semaphore_mem>>
    %118 = tpu.memref_squeeze %117 : memref<1x!tpu.dma_semaphore, #tpu.memory_space<semaphore_mem>> -> memref<!tpu.dma_semaphore, #tpu.memory_space<semaphore_mem>>
    tpu.wait_dma2 semaphore(%118 : memref<!tpu.dma_semaphore, #tpu.memory_space<semaphore_mem>>) src(%arg20 : memref<256x128xbf16, #tpu.memory_space<any>>) dst(%arg59 : memref<256x128xbf16, #tpu.memory_space<vmem>>)
    %c2_i32_65 = arith.constant 2 : i32
    %119 = tpu.memref_slice %arg64[%c2_i32_65] : memref<6x!tpu.dma_semaphore, #tpu.memory_space<semaphore_mem>> -> memref<1x!tpu.dma_semaphore, #tpu.memory_space<semaphore_mem>>
    %120 = tpu.memref_squeeze %119 : memref<1x!tpu.dma_semaphore, #tpu.memory_space<semaphore_mem>> -> memref<!tpu.dma_semaphore, #tpu.memory_space<semaphore_mem>>
    tpu.wait_dma2 semaphore(%120 : memref<!tpu.dma_semaphore, #tpu.memory_space<semaphore_mem>>) src(%arg22 : memref<128x128xbf16, #tpu.memory_space<any>>) dst(%arg60 : memref<128x128xbf16, #tpu.memory_space<vmem>>)
    %c3_i32_66 = arith.constant 3 : i32
    %121 = tpu.memref_slice %arg64[%c3_i32_66] : memref<6x!tpu.dma_semaphore, #tpu.memory_space<semaphore_mem>> -> memref<1x!tpu.dma_semaphore, #tpu.memory_space<semaphore_mem>>
    %122 = tpu.memref_squeeze %121 : memref<1x!tpu.dma_semaphore, #tpu.memory_space<semaphore_mem>> -> memref<!tpu.dma_semaphore, #tpu.memory_space<semaphore_mem>>
    tpu.wait_dma2 semaphore(%122 : memref<!tpu.dma_semaphore, #tpu.memory_space<semaphore_mem>>) src(%arg24 : memref<128x128xbf16, #tpu.memory_space<any>>) dst(%arg61 : memref<128x128xbf16, #tpu.memory_space<vmem>>)
    %c4_i32_67 = arith.constant 4 : i32
    %123 = tpu.memref_slice %arg64[%c4_i32_67] : memref<6x!tpu.dma_semaphore, #tpu.memory_space<semaphore_mem>> -> memref<1x!tpu.dma_semaphore, #tpu.memory_space<semaphore_mem>>
    %124 = tpu.memref_squeeze %123 : memref<1x!tpu.dma_semaphore, #tpu.memory_space<semaphore_mem>> -> memref<!tpu.dma_semaphore, #tpu.memory_space<semaphore_mem>>
    tpu.wait_dma2 semaphore(%124 : memref<!tpu.dma_semaphore, #tpu.memory_space<semaphore_mem>>) src(%arg26 : memref<128x128xbf16, #tpu.memory_space<any>>) dst(%arg62 : memref<128x128xbf16, #tpu.memory_space<vmem>>)
    %c5_i32_68 = arith.constant 5 : i32
    %125 = tpu.memref_slice %arg64[%c5_i32_68] : memref<6x!tpu.dma_semaphore, #tpu.memory_space<semaphore_mem>> -> memref<1x!tpu.dma_semaphore, #tpu.memory_space<semaphore_mem>>
    %126 = tpu.memref_squeeze %125 : memref<1x!tpu.dma_semaphore, #tpu.memory_space<semaphore_mem>> -> memref<!tpu.dma_semaphore, #tpu.memory_space<semaphore_mem>>
    tpu.wait_dma2 semaphore(%126 : memref<!tpu.dma_semaphore, #tpu.memory_space<semaphore_mem>>) src(%arg28 : memref<128x128xbf16, #tpu.memory_space<any>>) dst(%arg63 : memref<128x128xbf16, #tpu.memory_space<vmem>>)
    %c0_69 = arith.constant 0 : index
    %c0_70 = arith.constant 0 : index
    %127 = vector.load %arg1[%c0_69, %c0_70] : memref<8x256xf32, #tpu.memory_space<vmem>>, vector<8x256xf32>
    %128 = arith.truncf %127 : vector<8x256xf32> to vector<8x256xbf16>
    %c0_71 = arith.constant 0 : index
    %c0_72 = arith.constant 0 : index
    %129 = vector.load %arg58[%c0_71, %c0_72] : memref<256x256xbf16, #tpu.memory_space<vmem>>, vector<256x256xbf16>
    %cst_73 = arith.constant dense<0.000000e+00> : vector<8x256xf32>
    %130 = tpu.matmul %128, %129, %cst_73 {dimension_numbers = #tpu.dot_dimension_numbers<[1], [0], [0], [1], [0, 0, 1, 1], [], []>} : vector<8x256xbf16>, vector<256x256xbf16>, vector<8x256xf32> -> vector<8x256xf32>
    %c0_74 = arith.constant 0 : index
    %c0_75 = arith.constant 0 : index
    %131 = vector.load %arg19[%c0_74, %c0_75] : memref<1x256xf32, #tpu.memory_space<vmem>>, vector<1x256xf32>
    %132 = vector.broadcast %131 : vector<1x256xf32> to vector<8x256xf32>
    %133 = arith.addf %130, %132 : vector<8x256xf32>
    %cst_76 = arith.constant 0.000000e+00 : f32
    %134 = vector.broadcast %cst_76 : f32 to vector<8x256xf32>
    %135 = arith.maximumf %133, %134 : vector<8x256xf32>
    %136 = arith.truncf %135 : vector<8x256xf32> to vector<8x256xbf16>
    %c0_77 = arith.constant 0 : index
    %c0_78 = arith.constant 0 : index
    %137 = vector.load %arg59[%c0_77, %c0_78] : memref<256x128xbf16, #tpu.memory_space<vmem>>, vector<256x128xbf16>
    %cst_79 = arith.constant dense<0.000000e+00> : vector<8x128xf32>
    %138 = tpu.matmul %136, %137, %cst_79 {dimension_numbers = #tpu.dot_dimension_numbers<[1], [0], [0], [1], [0, 0, 1, 1], [], []>} : vector<8x256xbf16>, vector<256x128xbf16>, vector<8x128xf32> -> vector<8x128xf32>
    %c0_80 = arith.constant 0 : index
    %c0_81 = arith.constant 0 : index
    %139 = vector.load %arg21[%c0_80, %c0_81] : memref<1x128xf32, #tpu.memory_space<vmem>>, vector<1x128xf32>
    %140 = vector.broadcast %139 : vector<1x128xf32> to vector<8x128xf32>
    %141 = arith.addf %138, %140 : vector<8x128xf32>
    %cst_82 = arith.constant 0.000000e+00 : f32
    %142 = vector.broadcast %cst_82 : f32 to vector<8x128xf32>
    %143 = arith.maximumf %141, %142 : vector<8x128xf32>
    %144 = arith.truncf %143 : vector<8x128xf32> to vector<8x128xbf16>
    %c0_83 = arith.constant 0 : index
    %c0_84 = arith.constant 0 : index
    %145 = vector.load %arg60[%c0_83, %c0_84] : memref<128x128xbf16, #tpu.memory_space<vmem>>, vector<128x128xbf16>
    %cst_85 = arith.constant dense<0.000000e+00> : vector<8x128xf32>
    %146 = tpu.matmul %144, %145, %cst_85 {dimension_numbers = #tpu.dot_dimension_numbers<[1], [0], [0], [1], [0, 0, 1, 1], [], []>} : vector<8x128xbf16>, vector<128x128xbf16>, vector<8x128xf32> -> vector<8x128xf32>
    %c0_86 = arith.constant 0 : index
    %c0_87 = arith.constant 0 : index
    %147 = vector.load %arg23[%c0_86, %c0_87] : memref<1x128xf32, #tpu.memory_space<vmem>>, vector<1x128xf32>
    %148 = vector.broadcast %147 : vector<1x128xf32> to vector<8x128xf32>
    %149 = arith.addf %146, %148 : vector<8x128xf32>
    %cst_88 = arith.constant 0.000000e+00 : f32
    %150 = vector.broadcast %cst_88 : f32 to vector<8x128xf32>
    %151 = arith.maximumf %149, %150 : vector<8x128xf32>
    %152 = arith.truncf %151 : vector<8x128xf32> to vector<8x128xbf16>
    %c0_89 = arith.constant 0 : index
    %c0_90 = arith.constant 0 : index
    %153 = vector.load %arg61[%c0_89, %c0_90] : memref<128x128xbf16, #tpu.memory_space<vmem>>, vector<128x128xbf16>
    %cst_91 = arith.constant dense<0.000000e+00> : vector<8x128xf32>
    %154 = tpu.matmul %152, %153, %cst_91 {dimension_numbers = #tpu.dot_dimension_numbers<[1], [0], [0], [1], [0, 0, 1, 1], [], []>} : vector<8x128xbf16>, vector<128x128xbf16>, vector<8x128xf32> -> vector<8x128xf32>
    %c0_92 = arith.constant 0 : index
    %c0_93 = arith.constant 0 : index
    %155 = vector.load %arg25[%c0_92, %c0_93] : memref<1x128xf32, #tpu.memory_space<vmem>>, vector<1x128xf32>
    %156 = vector.broadcast %155 : vector<1x128xf32> to vector<8x128xf32>
    %157 = arith.addf %154, %156 : vector<8x128xf32>
    %cst_94 = arith.constant 0.000000e+00 : f32
    %158 = vector.broadcast %cst_94 : f32 to vector<8x128xf32>
    %159 = arith.maximumf %157, %158 : vector<8x128xf32>
    %160 = arith.truncf %159 : vector<8x128xf32> to vector<8x128xbf16>
    %c0_95 = arith.constant 0 : index
    %c0_96 = arith.constant 0 : index
    %161 = vector.load %arg62[%c0_95, %c0_96] : memref<128x128xbf16, #tpu.memory_space<vmem>>, vector<128x128xbf16>
    %cst_97 = arith.constant dense<0.000000e+00> : vector<8x128xf32>
    %162 = tpu.matmul %160, %161, %cst_97 {dimension_numbers = #tpu.dot_dimension_numbers<[1], [0], [0], [1], [0, 0, 1, 1], [], []>} : vector<8x128xbf16>, vector<128x128xbf16>, vector<8x128xf32> -> vector<8x128xf32>
    %c0_98 = arith.constant 0 : index
    %c0_99 = arith.constant 0 : index
    %163 = vector.load %arg27[%c0_98, %c0_99] : memref<1x128xf32, #tpu.memory_space<vmem>>, vector<1x128xf32>
    %164 = vector.broadcast %163 : vector<1x128xf32> to vector<8x128xf32>
    %165 = arith.addf %162, %164 : vector<8x128xf32>
    %166 = arith.addf %151, %165 : vector<8x128xf32>
    %cst_100 = arith.constant 0.000000e+00 : f32
    %167 = vector.broadcast %cst_100 : f32 to vector<8x128xf32>
    %168 = arith.maximumf %166, %167 : vector<8x128xf32>
    %169 = arith.truncf %168 : vector<8x128xf32> to vector<8x128xbf16>
    %c0_101 = arith.constant 0 : index
    %c0_102 = arith.constant 0 : index
    %170 = vector.load %arg63[%c0_101, %c0_102] : memref<128x128xbf16, #tpu.memory_space<vmem>>, vector<128x128xbf16>
    %cst_103 = arith.constant dense<0.000000e+00> : vector<8x128xf32>
    %171 = tpu.matmul %169, %170, %cst_103 {dimension_numbers = #tpu.dot_dimension_numbers<[1], [0], [0], [1], [0, 0, 1, 1], [], []>} : vector<8x128xbf16>, vector<128x128xbf16>, vector<8x128xf32> -> vector<8x128xf32>
    %c0_104 = arith.constant 0 : index
    %c0_105 = arith.constant 0 : index
    %172 = vector.load %arg29[%c0_104, %c0_105] : memref<1x128xf32, #tpu.memory_space<vmem>>, vector<1x128xf32>
    %173 = vector.broadcast %172 : vector<1x128xf32> to vector<8x128xf32>
    %174 = arith.addf %171, %173 : vector<8x128xf32>
    %cst_106 = arith.constant 0.000000e+00 : f32
    %175 = vector.broadcast %cst_106 : f32 to vector<8x128xf32>
    %176 = arith.maximumf %174, %175 : vector<8x128xf32>
    %177 = arith.truncf %99 : vector<8x64xf32> to vector<8x64xbf16>
    %c0_107 = arith.constant 0 : index
    %c0_108 = arith.constant 0 : index
    %178 = vector.load %arg34[%c0_107, %c0_108] : memref<64x128xbf16, #tpu.memory_space<vmem>>, vector<64x128xbf16>
    %cst_109 = arith.constant dense<0.000000e+00> : vector<8x128xf32>
    %179 = tpu.matmul %177, %178, %cst_109 {dimension_numbers = #tpu.dot_dimension_numbers<[1], [0], [0], [1], [0, 0, 1, 1], [], []>} : vector<8x64xbf16>, vector<64x128xbf16>, vector<8x128xf32> -> vector<8x128xf32>
    %180 = arith.truncf %176 : vector<8x128xf32> to vector<8x128xbf16>
    %c0_110 = arith.constant 0 : index
    %c0_111 = arith.constant 0 : index
    %181 = vector.load %arg35[%c0_110, %c0_111] : memref<128x128xbf16, #tpu.memory_space<vmem>>, vector<128x128xbf16>
    %cst_112 = arith.constant dense<0.000000e+00> : vector<8x128xf32>
    %182 = tpu.matmul %180, %181, %cst_112 {dimension_numbers = #tpu.dot_dimension_numbers<[1], [0], [0], [1], [0, 0, 1, 1], [], []>} : vector<8x128xbf16>, vector<128x128xbf16>, vector<8x128xf32> -> vector<8x128xf32>
    %183 = arith.addf %179, %182 : vector<8x128xf32>
    %184 = arith.truncf %114 : vector<8x32xf32> to vector<8x32xbf16>
    %c0_113 = arith.constant 0 : index
    %c0_114 = arith.constant 0 : index
    %185 = vector.load %arg36[%c0_113, %c0_114] : memref<32x128xbf16, #tpu.memory_space<vmem>>, vector<32x128xbf16>
    %cst_115 = arith.constant dense<0.000000e+00> : vector<8x128xf32>
    %186 = tpu.matmul %184, %185, %cst_115 {dimension_numbers = #tpu.dot_dimension_numbers<[1], [0], [0], [1], [0, 0, 1, 1], [], []>} : vector<8x32xbf16>, vector<32x128xbf16>, vector<8x128xf32> -> vector<8x128xf32>
    %187 = arith.addf %183, %186 : vector<8x128xf32>
    %c0_116 = arith.constant 0 : index
    %c0_117 = arith.constant 0 : index
    %188 = vector.load %arg37[%c0_116, %c0_117] : memref<1x128xf32, #tpu.memory_space<vmem>>, vector<1x128xf32>
    %189 = vector.broadcast %188 : vector<1x128xf32> to vector<8x128xf32>
    %190 = arith.addf %187, %189 : vector<8x128xf32>
    %cst_118 = arith.constant 0.000000e+00 : f32
    %191 = vector.broadcast %cst_118 : f32 to vector<8x128xf32>
    %192 = arith.maximumf %190, %191 : vector<8x128xf32>
    %193 = arith.truncf %192 : vector<8x128xf32> to vector<8x128xbf16>
    %c0_119 = arith.constant 0 : index
    %c0_120 = arith.constant 0 : index
    %194 = vector.load %arg38[%c0_119, %c0_120] : memref<128x64xbf16, #tpu.memory_space<vmem>>, vector<128x64xbf16>
    %cst_121 = arith.constant dense<0.000000e+00> : vector<8x64xf32>
    %195 = tpu.matmul %193, %194, %cst_121 {dimension_numbers = #tpu.dot_dimension_numbers<[1], [0], [0], [1], [0, 0, 1, 1], [], []>} : vector<8x128xbf16>, vector<128x64xbf16>, vector<8x64xf32> -> vector<8x64xf32>
    %c0_122 = arith.constant 0 : index
    %c0_123 = arith.constant 0 : index
    %196 = vector.load %arg39[%c0_122, %c0_123] : memref<1x64xf32, #tpu.memory_space<vmem>>, vector<1x64xf32>
    %197 = vector.broadcast %196 : vector<1x64xf32> to vector<8x64xf32>
    %198 = arith.addf %195, %197 : vector<8x64xf32>
    %cst_124 = arith.constant 0.000000e+00 : f32
    %199 = vector.broadcast %cst_124 : f32 to vector<8x64xf32>
    %200 = arith.maximumf %198, %199 : vector<8x64xf32>
    %c0_125 = arith.constant 0 : index
    %c0_126 = arith.constant 0 : index
    %201 = vector.load %arg42[%c0_125, %c0_126] : memref<1x2xf32, #tpu.memory_space<vmem>>, vector<1x2xf32>
    %c0_127 = arith.constant 0 : index
    %c0_128 = arith.constant 0 : index
    %202 = vector.load %arg40[%c0_127, %c0_128] : memref<1x64xf32, #tpu.memory_space<vmem>>, vector<1x64xf32>
    %203 = vector.broadcast %202 : vector<1x64xf32> to vector<8x64xf32>
    %204 = arith.mulf %200, %203 : vector<8x64xf32>
    %cst_129 = arith.constant dense<0.000000e+00> : vector<8xf32>
    %205 = vector.multi_reduction <add>, %204, %cst_129 [1] : vector<8x64xf32> to vector<8xf32>
    %206 = vector.shape_cast %205 : vector<8xf32> to vector<8x1xf32>
    %207 = vector.extract_strided_slice %201 {offsets = [0, 0], sizes = [1, 1], strides = [1, 1]} : vector<1x2xf32> to vector<1x1xf32>
    %208 = vector.broadcast %207 : vector<1x1xf32> to vector<8x1xf32>
    %209 = arith.addf %206, %208 : vector<8x1xf32>
    %c0_130 = arith.constant 0 : index
    %c0_131 = arith.constant 0 : index
    %210 = vector.load %arg41[%c0_130, %c0_131] : memref<1x64xf32, #tpu.memory_space<vmem>>, vector<1x64xf32>
    %211 = vector.broadcast %210 : vector<1x64xf32> to vector<8x64xf32>
    %212 = arith.mulf %200, %211 : vector<8x64xf32>
    %cst_132 = arith.constant dense<0.000000e+00> : vector<8xf32>
    %213 = vector.multi_reduction <add>, %212, %cst_132 [1] : vector<8x64xf32> to vector<8xf32>
    %214 = vector.shape_cast %213 : vector<8xf32> to vector<8x1xf32>
    %215 = vector.extract_strided_slice %201 {offsets = [0, 1], sizes = [1, 1], strides = [1, 1]} : vector<1x2xf32> to vector<1x1xf32>
    %216 = vector.broadcast %215 : vector<1x1xf32> to vector<8x1xf32>
    %217 = arith.addf %214, %216 : vector<8x1xf32>
    %c0_133 = arith.constant 0 : index
    %c0_134 = arith.constant 0 : index
    %218 = vector.load %arg43[%c0_133, %c0_134] : memref<2x32xf32, #tpu.memory_space<vmem>>, vector<2x32xf32>
    %219 = arith.cmpf ogt, %217, %209 : vector<8x1xf32>
    %220 = vector.shape_cast %219 : vector<8x1xi1> to vector<8x1xi1>
    %221 = vector.broadcast %220 : vector<8x1xi1> to vector<8x32xi1>
    %222 = vector.extract_strided_slice %218 {offsets = [1, 0], sizes = [1, 32], strides = [1, 1]} : vector<2x32xf32> to vector<1x32xf32>
    %223 = vector.shape_cast %222 : vector<1x32xf32> to vector<1x32xf32>
    %224 = vector.broadcast %223 : vector<1x32xf32> to vector<8x32xf32>
    %225 = vector.extract_strided_slice %218 {offsets = [0, 0], sizes = [1, 32], strides = [1, 1]} : vector<2x32xf32> to vector<1x32xf32>
    %226 = vector.shape_cast %225 : vector<1x32xf32> to vector<1x32xf32>
    %227 = vector.broadcast %226 : vector<1x32xf32> to vector<8x32xf32>
    %228 = arith.select %221, %224, %227 : vector<8x32xi1>, vector<8x32xf32>
    %229 = arith.truncf %99 : vector<8x64xf32> to vector<8x64xbf16>
    %c0_135 = arith.constant 0 : index
    %c0_136 = arith.constant 0 : index
    %230 = vector.load %arg44[%c0_135, %c0_136] : memref<64x128xbf16, #tpu.memory_space<vmem>>, vector<64x128xbf16>
    %cst_137 = arith.constant dense<0.000000e+00> : vector<8x128xf32>
    %231 = tpu.matmul %229, %230, %cst_137 {dimension_numbers = #tpu.dot_dimension_numbers<[1], [0], [0], [1], [0, 0, 1, 1], [], []>} : vector<8x64xbf16>, vector<64x128xbf16>, vector<8x128xf32> -> vector<8x128xf32>
    %232 = arith.truncf %176 : vector<8x128xf32> to vector<8x128xbf16>
    %c0_138 = arith.constant 0 : index
    %c0_139 = arith.constant 0 : index
    %233 = vector.load %arg45[%c0_138, %c0_139] : memref<128x128xbf16, #tpu.memory_space<vmem>>, vector<128x128xbf16>
    %cst_140 = arith.constant dense<0.000000e+00> : vector<8x128xf32>
    %234 = tpu.matmul %232, %233, %cst_140 {dimension_numbers = #tpu.dot_dimension_numbers<[1], [0], [0], [1], [0, 0, 1, 1], [], []>} : vector<8x128xbf16>, vector<128x128xbf16>, vector<8x128xf32> -> vector<8x128xf32>
    %235 = arith.addf %231, %234 : vector<8x128xf32>
    %236 = arith.truncf %114 : vector<8x32xf32> to vector<8x32xbf16>
    %c0_141 = arith.constant 0 : index
    %c0_142 = arith.constant 0 : index
    %237 = vector.load %arg46[%c0_141, %c0_142] : memref<32x128xbf16, #tpu.memory_space<vmem>>, vector<32x128xbf16>
    %cst_143 = arith.constant dense<0.000000e+00> : vector<8x128xf32>
    %238 = tpu.matmul %236, %237, %cst_143 {dimension_numbers = #tpu.dot_dimension_numbers<[1], [0], [0], [1], [0, 0, 1, 1], [], []>} : vector<8x32xbf16>, vector<32x128xbf16>, vector<8x128xf32> -> vector<8x128xf32>
    %239 = arith.addf %235, %238 : vector<8x128xf32>
    %240 = arith.truncf %228 : vector<8x32xf32> to vector<8x32xbf16>
    %c0_144 = arith.constant 0 : index
    %c0_145 = arith.constant 0 : index
    %241 = vector.load %arg47[%c0_144, %c0_145] : memref<32x128xbf16, #tpu.memory_space<vmem>>, vector<32x128xbf16>
    %cst_146 = arith.constant dense<0.000000e+00> : vector<8x128xf32>
    %242 = tpu.matmul %240, %241, %cst_146 {dimension_numbers = #tpu.dot_dimension_numbers<[1], [0], [0], [1], [0, 0, 1, 1], [], []>} : vector<8x32xbf16>, vector<32x128xbf16>, vector<8x128xf32> -> vector<8x128xf32>
    %243 = arith.addf %239, %242 : vector<8x128xf32>
    %c0_147 = arith.constant 0 : index
    %c0_148 = arith.constant 0 : index
    %244 = vector.load %arg48[%c0_147, %c0_148] : memref<1x128xf32, #tpu.memory_space<vmem>>, vector<1x128xf32>
    %245 = vector.broadcast %244 : vector<1x128xf32> to vector<8x128xf32>
    %246 = arith.addf %243, %245 : vector<8x128xf32>
    %cst_149 = arith.constant 0.000000e+00 : f32
    %247 = vector.broadcast %cst_149 : f32 to vector<8x128xf32>
    %248 = arith.maximumf %246, %247 : vector<8x128xf32>
    %249 = arith.truncf %248 : vector<8x128xf32> to vector<8x128xbf16>
    %c0_150 = arith.constant 0 : index
    %c0_151 = arith.constant 0 : index
    %250 = vector.load %arg49[%c0_150, %c0_151] : memref<128x128xbf16, #tpu.memory_space<vmem>>, vector<128x128xbf16>
    %cst_152 = arith.constant dense<0.000000e+00> : vector<8x128xf32>
    %251 = tpu.matmul %249, %250, %cst_152 {dimension_numbers = #tpu.dot_dimension_numbers<[1], [0], [0], [1], [0, 0, 1, 1], [], []>} : vector<8x128xbf16>, vector<128x128xbf16>, vector<8x128xf32> -> vector<8x128xf32>
    %c0_153 = arith.constant 0 : index
    %c0_154 = arith.constant 0 : index
    %252 = vector.load %arg50[%c0_153, %c0_154] : memref<1x128xf32, #tpu.memory_space<vmem>>, vector<1x128xf32>
    %253 = vector.broadcast %252 : vector<1x128xf32> to vector<8x128xf32>
    %254 = arith.addf %251, %253 : vector<8x128xf32>
    %cst_155 = arith.constant 0.000000e+00 : f32
    %255 = vector.broadcast %cst_155 : f32 to vector<8x128xf32>
    %256 = arith.maximumf %254, %255 : vector<8x128xf32>
    %257 = arith.truncf %256 : vector<8x128xf32> to vector<8x128xbf16>
    %c0_156 = arith.constant 0 : index
    %c0_157 = arith.constant 0 : index
    %258 = vector.load %arg51[%c0_156, %c0_157] : memref<128x128xbf16, #tpu.memory_space<vmem>>, vector<128x128xbf16>
    %cst_158 = arith.constant dense<0.000000e+00> : vector<8x128xf32>
    %259 = tpu.matmul %257, %258, %cst_158 {dimension_numbers = #tpu.dot_dimension_numbers<[1], [0], [0], [1], [0, 0, 1, 1], [], []>} : vector<8x128xbf16>, vector<128x128xbf16>, vector<8x128xf32> -> vector<8x128xf32>
    %c0_159 = arith.constant 0 : index
    %c0_160 = arith.constant 0 : index
    %260 = vector.load %arg52[%c0_159, %c0_160] : memref<1x128xf32, #tpu.memory_space<vmem>>, vector<1x128xf32>
    %261 = vector.broadcast %260 : vector<1x128xf32> to vector<8x128xf32>
    %262 = arith.addf %259, %261 : vector<8x128xf32>
    %263 = arith.addf %248, %262 : vector<8x128xf32>
    %cst_161 = arith.constant 0.000000e+00 : f32
    %264 = vector.broadcast %cst_161 : f32 to vector<8x128xf32>
    %265 = arith.maximumf %263, %264 : vector<8x128xf32>
    %266 = arith.truncf %265 : vector<8x128xf32> to vector<8x128xbf16>
    %c0_162 = arith.constant 0 : index
    %c0_163 = arith.constant 0 : index
    %267 = vector.load %arg53[%c0_162, %c0_163] : memref<128x64xbf16, #tpu.memory_space<vmem>>, vector<128x64xbf16>
    %cst_164 = arith.constant dense<0.000000e+00> : vector<8x64xf32>
    %268 = tpu.matmul %266, %267, %cst_164 {dimension_numbers = #tpu.dot_dimension_numbers<[1], [0], [0], [1], [0, 0, 1, 1], [], []>} : vector<8x128xbf16>, vector<128x64xbf16>, vector<8x64xf32> -> vector<8x64xf32>
    %c0_165 = arith.constant 0 : index
    %c0_166 = arith.constant 0 : index
    %269 = vector.load %arg54[%c0_165, %c0_166] : memref<1x64xf32, #tpu.memory_space<vmem>>, vector<1x64xf32>
    %270 = vector.broadcast %269 : vector<1x64xf32> to vector<8x64xf32>
    %271 = arith.addf %268, %270 : vector<8x64xf32>
    %cst_167 = arith.constant 0.000000e+00 : f32
    %272 = vector.broadcast %cst_167 : f32 to vector<8x64xf32>
    %273 = arith.maximumf %271, %272 : vector<8x64xf32>
    %c0_168 = arith.constant 0 : index
    %c0_169 = arith.constant 0 : index
    %274 = vector.load %arg55[%c0_168, %c0_169] : memref<1x64xf32, #tpu.memory_space<vmem>>, vector<1x64xf32>
    %275 = vector.broadcast %274 : vector<1x64xf32> to vector<8x64xf32>
    %276 = arith.mulf %273, %275 : vector<8x64xf32>
    %cst_170 = arith.constant dense<0.000000e+00> : vector<8xf32>
    %277 = vector.multi_reduction <add>, %276, %cst_170 [1] : vector<8x64xf32> to vector<8xf32>
    %278 = vector.shape_cast %277 : vector<8xf32> to vector<8x1xf32>
    %c0_171 = arith.constant 0 : index
    %c0_172 = arith.constant 0 : index
    %279 = vector.load %arg56[%c0_171, %c0_172] : memref<1x1xf32, #tpu.memory_space<vmem>>, vector<1x1xf32>
    %280 = vector.broadcast %279 : vector<1x1xf32> to vector<8x1xf32>
    %281 = arith.addf %278, %280 : vector<8x1xf32>
    %cst_173 = arith.constant 0.000000e+00 : f32
    %282 = vector.broadcast %cst_173 : f32 to vector<8x125xf32>
    %283 = tpu.concatenate %209, %217, %281, %282 in 1 : vector<8x1xf32>, vector<8x1xf32>, vector<8x1xf32>, vector<8x125xf32> -> vector<8x128xf32>
    %c0_174 = arith.constant 0 : index
    %c0_175 = arith.constant 0 : index
    %284 = vector.load %arg57[%c0_174, %c0_175] : memref<8x128xf32, #tpu.memory_space<vmem>>, vector<8x128xf32>
    tpu.vector_store %arg57[%c0_174, %c0_175], %283 {strides = array<i32>} : memref<8x128xf32, #tpu.memory_space<vmem>>, vector<8x128xf32>,
    return
  }
}

</mosaic_0001>

<bundles_post_ra>
// kernel: _lambda_.1
= control target key start
LH: loop header
LB: loop body
LE: loop exit
PB: predicated region body
PF: predicated region fallthrough
CT: control target
= control target key end

     0   :  { %s5578_s6 = smov 1   ;;  %s5579_s10 = smov 2   ;;  %s6639_s0 = inlined_call_operand.smem [shape: u32[58], index: -1, kind: input, shape index: {}] }
   0x1   :  { %s5688_s5 = sld [smem:[%s6639_s0]]   ;;  %s5580_s14 = smov 3  }
   0x2   :  { %s5693_s9 = sld [smem:[%s6639_s0 + %s5578_s6]]   ;;  %s5581_s18 = smov 4  }
   0x3   :  { %s5698_s13 = sld [smem:[%s6639_s0 + %s5579_s10]]   ;;  %s5582_s22 = smov 5  }
   0x4   :  { %s5703_s17 = sld [smem:[%s6639_s0 + %s5580_s14]]   ;;  %s5583_s26 = smov 6  }
   0x5   :  { %s5708_s21 = sld [smem:[%s6639_s0 + %s5581_s18]]   ;;  %s5584_s30 = smov 7  }
   0x6   :  { %s5713_s25 = sld [smem:[%s6639_s0 + %s5582_s22]]   ;;  %s5585_s4 = smov 8  }
   0x7   :  { %6674 = sst [smem:[#allocation95_spill]] %s5688_s5  ;;  %s5586_s10 = smov 9  }
   0x8   :  { %6675 = sst [smem:[#allocation96_spill]] %s5693_s9  ;;  %s5587_s15 = smov 10  }
   0x9   :  { %6676 = sst [smem:[#allocation97_spill]] %s5698_s13  ;;  %s5588_s20 = smov 11  }
   0xa   :  { %6677 = sst [smem:[#allocation98_spill]] %s5703_s17  ;;  %s5590_s1 = smov 13  }
   0xb   :  { %6678 = sst [smem:[#allocation99_spill]] %s5708_s21  ;;  %s5591_s7 = smov 14  }
   0xc   :  { %6679 = sst [smem:[#allocation100_spill]] %s5713_s25  ;;  %s5593_s22 = smov 16  }
   0xd   :  { %s5718_s29 = sld [smem:[%s6639_s0 + %s5583_s26]]   ;;  %s5589_s26 = smov 12  }
   0xe   :  { %s5723_s3 = sld [smem:[%s6639_s0 + %s5584_s30]]   ;;  %s5594_s28 = smov 17  }
   0xf   :  { %s5728_s8 = sld [smem:[%s6639_s0 + %s5585_s4]]   ;;  %s5601_s9 = smov 24  }
  0x10   :  { %s3701_s14 = sld [smem:[%s6639_s0 + %s5586_s10]]  }
  0x11   :  { %s5736_s19 = sld [smem:[%s6639_s0 + %s5587_s15]]   ;;  %s5592_s15 = smov 15  }
  0x12   :  { %s5741_s24 = sld [smem:[%s6639_s0 + %s5588_s20]]  }
  0x13   :  { %6680 = sst [smem:[#allocation101_spill]] %s5718_s29 }
  0x14   :  { %6681 = sst [smem:[#allocation102_spill]] %s5723_s3 }
  0x15   :  { %s5746_s30 = sld [smem:[%s6639_s0 + %s5589_s26]]  }
  0x16   :  { %s5751_s6 = sld [smem:[%s6639_s0 + %s5590_s1]]   ;;  %v120_v0 = vstv %s3701_s14  ;;  %s5596_s14 = smov 19  }
  0x17   :  { %6682 = sst [smem:[#allocation103_spill]] %s5736_s19  ;;  %121 = vst [vmem:[#allocation9] sm:$0x1] %v120_v0 }
  0x18   :  { %s5756_s12 = sld [smem:[%s6639_s0 + %s5591_s7]]   ;;  %s5595_s7 = smov 18  }
  0x19   :  { %s5761_s20 = sld [smem:[%s6639_s0 + %s5592_s15]]  }
  0x1a   :  { %s5766_s27 = sld [smem:[%s6639_s0 + %s5593_s22]]   ;;  %s5597_s22 = smov 20  }
  0x1b   :  { %6683 = sst [smem:[#allocation104_spill]] %s5746_s30 }
  0x1c   :  { %s5771_s4 = sld [smem:[%s6639_s0 + %s5594_s28]]   ;;  %s5598_s28 = smov 21  }
  0x1d   :  { %s5776_s15 = sld [smem:[%s6639_s0 + %s5595_s7]]   ;;  %s5599_s7 = smov 22  }
  0x1e   :  { %6684 = sst [smem:[#allocation105_spill]] %s5756_s12 }
  0x1f   :  { %s5781_s23 = sld [smem:[%s6639_s0 + %s5596_s14]]   ;;  %s5600_s14 = smov 23  }
  0x20   :  { %6685 = sst [smem:[#allocation106_spill]] %s5766_s27 }
  0x21   :  { %s5786_s13 = sld [smem:[%s6639_s0 + %s5597_s22]]  }
  0x22   :  { %s5791_s17 = sld [smem:[%s6639_s0 + %s5598_s28]]   ;;  %s5602_s28 = smov 25  }
  0x23   :  { %6686 = sst [smem:[#allocation107_spill]] %s5776_s15 }
  0x24   :  { %s5796_s3 = sld [smem:[%s6639_s0 + %s5599_s7]]   ;;  %s5603_s7 = smov 26  }
  0x25   :  { %6687 = sst [smem:[#allocation108_spill]] %s5781_s23 }
  0x26   :  { %s5801_s29 = sld [smem:[%s6639_s0 + %s5600_s14]]   ;;  %s5604_s14 = smov 27  }
  0x27   :  { %6688 = sst [smem:[#allocation109_spill]] %s5786_s13 }
  0x28   :  { %s5806_s5 = sld [smem:[%s6639_s0 + %s5601_s9]]   ;;  %s5605_s9 = smov 28  }
  0x29   :  { %s5811_s21 = sld [smem:[%s6639_s0 + %s5602_s28]]   ;;  %s5606_s28 = smov 29  }
  0x2a   :  { %6689 = sst [smem:[#allocation110_spill]] %s5796_s3 }
  0x2b   :  { %s5816_s3 = sld [smem:[%s6639_s0 + %s5603_s7]]   ;;  %s5607_s7 = smov 30  }
  0x2c   :  { %6690 = sst [smem:[#allocation111_spill]] %s5801_s29 }
  0x2d   :  { %s5821_s13 = sld [smem:[%s6639_s0 + %s5604_s14]]   ;;  %s5608_s14 = smov 31  }
  0x2e   :  { %6691 = sst [smem:[#allocation112_spill]] %s5806_s5 }
  0x2f   :  { %s5826_s5 = sld [smem:[%s6639_s0 + %s5605_s9]]   ;;  %s5609_s9 = smov 32  }
  0x30   :  { %s5831_s15 = sld [smem:[%s6639_s0 + %s5606_s28]]   ;;  %s5610_s28 = smov 33  }
  0x31   :  { %6692 = sst [smem:[#allocation113_spill]] %s5816_s3 }
  0x32   :  { %s5836_s3 = sld [smem:[%s6639_s0 + %s5607_s7]]   ;;  %s5611_s7 = smov 34  }
  0x33   :  { %6693 = sst [smem:[#allocation114_spill]] %s5821_s13 }
  0x34   :  { %s5841_s13 = sld [smem:[%s6639_s0 + %s5608_s14]]   ;;  %s5612_s14 = smov 35  }
  0x35   :  { %6694 = sst [smem:[#allocation115_spill]] %s5826_s5 }
  0x36   :  { %s5846_s5 = sld [smem:[%s6639_s0 + %s5609_s9]]   ;;  %s5613_s9 = smov 36  }
  0x37   :  { %s5851_s29 = sld [smem:[%s6639_s0 + %s5610_s28]]   ;;  %s5614_s28 = smov 37  }
  0x38   :  { %6695 = sst [smem:[#allocation116_spill]] %s5836_s3 }
  0x39   :  { %s5856_s3 = sld [smem:[%s6639_s0 + %s5611_s7]]   ;;  %s5615_s7 = smov 38  }
  0x3a   :  { %s5861_s23 = sld [smem:[%s6639_s0 + %s5612_s14]]   ;;  %s5616_s14 = smov 39  }
  0x3b   :  { %s5871_s27 = sld [smem:[%s6639_s0 + %s5614_s28]]   ;;  %s5618_s28 = smov 41  }
  0x3c   :  { %6696 = sst [smem:[#allocation117_spill]] %s5846_s5 }
  0x3d   :  { %s5866_s5 = sld [smem:[%s6639_s0 + %s5613_s9]]   ;;  %s5617_s9 = smov 40  }
  0x3e   :  { %s5881_s12 = sld [smem:[%s6639_s0 + %s5616_s14]]   ;;  %s5620_s14 = smov 43  }
  0x3f   :  { %6697 = sst [smem:[#allocation118_spill]] %s5856_s3 }
  0x40   :  { %s5876_s3 = sld [smem:[%s6639_s0 + %s5615_s7]]   ;;  %s5619_s7 = smov 42  }
  0x41   :  { %s5891_s30 = sld [smem:[%s6639_s0 + %s5618_s28]]   ;;  %s5622_s28 = smov 45  }
  0x43   :  { %6698 = sst [smem:[#allocation119_spill]] %s5866_s5 }
  0x44   :  { %6700 = sst [smem:[#allocation121_spill]] %s5881_s12 }
  0x45   :  { %s5886_s5 = sld [smem:[%s6639_s0 + %s5617_s9]]   ;;  %s5621_s9 = smov 44  }
  0x46   :  { %6699 = sst [smem:[#allocation120_spill]] %s5876_s3 }
  0x47   :  { %6701 = sst [smem:[#allocation122_spill]] %s5891_s30 }
  0x48   :  { %s5896_s3 = sld [smem:[%s6639_s0 + %s5619_s7]]   ;;  %s5623_s7 = smov 46  }
  0x49   :  { %s5901_s12 = sld [smem:[%s6639_s0 + %s5620_s14]]   ;;  %s5624_s14 = smov 47  }
  0x4a   :  { %s5906_s19 = sld [smem:[%s6639_s0 + %s5621_s9]]   ;;  %s5625_s9 = smov 48  }
  0x4b   :  { %s5911_s30 = sld [smem:[%s6639_s0 + %s5622_s28]]   ;;  %s5626_s28 = smov 49  }
  0x4c   :  { %s5916_s25 = sld [smem:[%s6639_s0 + %s5623_s7]]   ;;  %s5627_s7 = smov 50  }
  0x4f   :  { %6702 = sst [smem:[#allocation123_spill]] %s5901_s12 }
  0x50   :  { %6703 = sst [smem:[#allocation124_spill]] %s5906_s19 }
  0x51   :  { %6704 = sst [smem:[#allocation125_spill]] %s5911_s30 }
  0x52   :  { %6705 = sst [smem:[#allocation126_spill]] %s5916_s25 }
  0x53   :  { %s5921_s12 = sld [smem:[%s6639_s0 + %s5624_s14]]   ;;  %s5628_s14 = smov 51  }
  0x54   :  { %s5926_s19 = sld [smem:[%s6639_s0 + %s5625_s9]]   ;;  %s5629_s9 = smov 52  }
  0x55   :  { %s5931_s30 = sld [smem:[%s6639_s0 + %s5626_s28]]   ;;  %s5630_s28 = smov 53  }
  0x56   :  { %s5936_s25 = sld [smem:[%s6639_s0 + %s5627_s7]]   ;;  %s5631_s7 = smov 54  }
  0x59   :  { %6706 = sst [smem:[#allocation127_spill]] %s5921_s12 }
  0x5a   :  { %6707 = sst [smem:[#allocation128_spill]] %s5926_s19 }
  0x5b   :  { %6708 = sst [smem:[#allocation129_spill]] %s5931_s30 }
  0x5c   :  { %6709 = sst [smem:[#allocation130_spill]] %s5936_s25 }
  0x5d   :  { %s5941_s12 = sld [smem:[%s6639_s0 + %s5628_s14]]   ;;  %s5632_s14 = smov 55  }
  0x5e   :  { %s5946_s19 = sld [smem:[%s6639_s0 + %s5629_s9]]   ;;  %s5633_s9 = smov 57  }
  0x5f   :  { %s5951_s30 = sld [smem:[%s6639_s0 + %s5630_s28]]   ;;  %s5634_s28 = smov 56  }
  0x60   :  { %s5956_s25 = sld [smem:[%s6639_s0 + %s5631_s7]]  }
  0x63   :  { %6710 = sst [smem:[#allocation131_spill]] %s5941_s12 }
  0x64   :  { %6711 = sst [smem:[#allocation132_spill]] %s5946_s19 }
  0x65   :  { %6712 = sst [smem:[#allocation133_spill]] %s5951_s30 }
  0x66   :  { %s5961_s12 = sld [smem:[%s6639_s0 + %s5632_s14]]  }
  0x67   :  { %s5966_s19 = sld [smem:[%s6639_s0 + %s5633_s9]]  }
  0x68   :  { %s3748_s30 = sld [smem:[%s6639_s0 + %s5634_s28]]  }
  0x6e   :  { %v122_v1 = vstv %s3748_s30 }
  0x6f   :  { %123 = vst [vmem:[#allocation10] sm:$0x1] %v122_v1 }
  0x70   :  { %124 = vsyncpa [#allocation12], 0 }
  0x71   :  { %125 = vsyncpa [#allocation14], 0 }
  0x72   :  { %126 = vsyncpa [#allocation17], 0 }
  0x73   :  { %127 = vsyncpa [#allocation20], 0 }
  0x74   :  { %128 = vsyncpa [#allocation23], 0 }
  0x75   :  { %129 = vsyncpa [#allocation26], 0 }
  0x76   :  { %130 = vsyncpa [#allocation29], 0 }
  0x77   :  { %131 = vsyncpa [#allocation32], 0 }
  0x78   :  { %132 = vsyncpa [#allocation35], 0 }
  0x79   :  { %133 = vsyncpa [#allocation38], 0 }
  0x7a   :  { %134 = vsyncpa [#allocation41], 0 }
  0x7b   :  { %135 = vsyncpa [#allocation44], 0 }
  0x7c   :  { %136 = vsyncpa [#allocation47], 0 }
  0x7d   :  { %137 = vsyncpa [#allocation50], 0 }
  0x7e   :  { %138 = vsyncpa [#allocation53], 0 }
  0x7f   :  { %139 = vsyncpa [#allocation56], 0 }
  0x80   :  { %140 = vsyncpa [#allocation59], 0  ;;  %s5635_s0 = smov [#allocation13]   ;;  %s5636_s7 = smov [#allocation16]  }
  0x81   :  { %s171_s30 = sshll.u32 %s5635_s0, 4  ;;  %s195_s10 = sshll.u32 %s5636_s7, 4  ;;  %s172_s30 = int_to_ptr.vmem [resolvable:$true] %s171_s30  ;;  %s196_s10 = int_to_ptr.vmem [resolvable:$true] %s195_s10 }
  0x82   :  { %s4740_s11 = scalar_lea.hbm %s5728_s8, 16 }
  0x83   :  { %p4741_p0 = scmp.ne.s32.totalorder %s5728_s8, %s4740_s11  ;;  %p4744_p1 = scmp.lt.u32.totalorder %s4740_s11, %s5728_s8 }
  0x85   :  { %p4746_p2 = pnand %p4744_p1, %p4741_p0 }
  0x87   :  { %4749 = shalt.err (!%p4746_p2)
}
  0x88   :  { %s4750_s14 = scalar_lea.vmem %s172_s30, 16  ;;  %s4754_s16 = scalar_lea.vmem %s172_s30, 32 }
  0x89   :  { %p4751_p3 = scmp.ne.s32.totalorder %s172_s30, %s4750_s14  ;;  %p4755_p4 = scmp.lt.s32.totalorder %s172_s30, %s172_s30 }
  0x8a   :  { %p4756_p5 = scmp.lt.s32.totalorder %s4754_s16, %s4750_s14 }
  0x8c   :  { %p4757_p6 = por %p4756_p5, %p4755_p4 }
  0x8e   :  { %p4758_p7 = pnand %p4757_p6, %p4751_p3 }
  0x90   :  { %4761 = shalt.err (!%p4758_p7)
}
  0x91   :  { %174 = dma.hbm_to_vmem [thread:$0]  %s5728_s8, 16, %s172_s30, [#allocation14]  }
  0x92   :  { %s4762_s18 = scalar_lea.hbm %s5741_s24, 16 }
  0x93   :  { %p4763_p8 = scmp.ne.s32.totalorder %s5741_s24, %s4762_s18  ;;  %p4766_p9 = scmp.lt.u32.totalorder %s4762_s18, %s5741_s24 }
  0x95   :  { %p4768_p10 = pnand %p4766_p9, %p4763_p8 }
  0x97   :  { %4771 = shalt.err (!%p4768_p10)
}
  0x98   :  { %s4772_s9 = scalar_lea.vmem %s196_s10, 16  ;;  %s4776_s22 = scalar_lea.vmem %s196_s10, 32 }
  0x99   :  { %p4773_p11 = scmp.ne.s32.totalorder %s196_s10, %s4772_s9  ;;  %p4777_p12 = scmp.lt.s32.totalorder %s196_s10, %s196_s10 }
  0x9a   :  { %p4778_p13 = scmp.lt.s32.totalorder %s4776_s22, %s4772_s9 }
  0x9c   :  { %p4779_p0 = por %p4778_p13, %p4777_p12 }
  0x9e   :  { %p4780_p1 = pnand %p4779_p0, %p4773_p11 }
  0xa0   :  { %4783 = shalt.err (!%p4780_p1)
}
  0xa1   :  { %198 = dma.hbm_to_vmem [thread:$0]  %s5741_s24, 16, %s196_s10, [#allocation17]  }
  0xa2   :  { %s5637_s26 = smov [#allocation19]   ;;  %s5638_s28 = smov [#allocation22]  }
  0xa3   :  { %s217_s8 = sshll.u32 %s5637_s26, 4  ;;  %s239_s1 = sshll.u32 %s5638_s28, 4  ;;  %s218_s8 = int_to_ptr.vmem [resolvable:$true] %s217_s8  ;;  %s240_s1 = int_to_ptr.vmem [resolvable:$true] %s239_s1 }
  0xa4   :  { %s4784_s2 = scalar_lea.hbm %s5751_s6, 16 }
  0xa5   :  { %p4785_p2 = scmp.ne.s32.totalorder %s5751_s6, %s4784_s2  ;;  %p4788_p3 = scmp.lt.u32.totalorder %s4784_s2, %s5751_s6 }
  0xa7   :  { %p4790_p4 = pnand %p4788_p3, %p4785_p2 }
  0xa9   :  { %4793 = shalt.err (!%p4790_p4)
}
  0xaa   :  { %s4794_s0 = scalar_lea.vmem %s218_s8, 16  ;;  %s4798_s30 = scalar_lea.vmem %s218_s8, 32 }
  0xab   :  { %p4795_p5 = scmp.ne.s32.totalorder %s218_s8, %s4794_s0  ;;  %p4799_p6 = scmp.lt.s32.totalorder %s218_s8, %s218_s8 }
  0xac   :  { %p4800_p7 = scmp.lt.s32.totalorder %s4798_s30, %s4794_s0 }
  0xae   :  { %p4801_p8 = por %p4800_p7, %p4799_p6 }
  0xb0   :  { %p4802_p9 = pnand %p4801_p8, %p4795_p5 }
  0xb2   :  { %4805 = shalt.err (!%p4802_p9)
}
  0xb3   :  { %220 = dma.hbm_to_vmem [thread:$0]  %s5751_s6, 16, %s218_s8, [#allocation20]  }
  0xb4   :  { %s4806_s24 = scalar_lea.hbm %s5761_s20, 16 }
  0xb5   :  { %p4807_p10 = scmp.ne.s32.totalorder %s5761_s20, %s4806_s24  ;;  %p4810_p11 = scmp.lt.u32.totalorder %s4806_s24, %s5761_s20 }
  0xb7   :  { %p4812_p12 = pnand %p4810_p11, %p4807_p10 }
  0xb9   :  { %4815 = shalt.err (!%p4812_p12)
}
  0xba   :  { %s4816_s7 = scalar_lea.vmem %s240_s1, 16  ;;  %s4820_s10 = scalar_lea.vmem %s240_s1, 32 }
  0xbb   :  { %p4817_p13 = scmp.ne.s32.totalorder %s240_s1, %s4816_s7  ;;  %p4821_p0 = scmp.lt.s32.totalorder %s240_s1, %s240_s1 }
  0xbc   :  { %p4822_p1 = scmp.lt.s32.totalorder %s4820_s10, %s4816_s7 }
  0xbe   :  { %p4823_p2 = por %p4822_p1, %p4821_p0 }
  0xc0   :  { %p4824_p3 = pnand %p4823_p2, %p4817_p13 }
  0xc2   :  { %4827 = shalt.err (!%p4824_p3)
}
  0xc3   :  { %242 = dma.hbm_to_vmem [thread:$0]  %s5761_s20, 16, %s240_s1, [#allocation23]  }
  0xc4   :  { %s5639_s11 = smov [#allocation25]   ;;  %s5640_s14 = smov [#allocation28]  }
  0xc5   :  { %s261_s6 = sshll.u32 %s5639_s11, 4  ;;  %s281_s16 = sshll.u32 %s5640_s14, 4  ;;  %s262_s6 = int_to_ptr.vmem [resolvable:$true] %s261_s6  ;;  %s282_s16 = int_to_ptr.vmem [resolvable:$true] %s281_s16 }
  0xc6   :  { %s4828_s18 = scalar_lea.hbm %s5771_s4, 16 }
  0xc7   :  { %p4829_p4 = scmp.ne.s32.totalorder %s5771_s4, %s4828_s18  ;;  %p4832_p5 = scmp.lt.u32.totalorder %s4828_s18, %s5771_s4 }
  0xc9   :  { %p4834_p6 = pnand %p4832_p5, %p4829_p4 }
  0xcb   :  { %4837 = shalt.err (!%p4834_p6)
}
  0xcc   :  { %s4838_s9 = scalar_lea.vmem %s262_s6, 16  ;;  %s4842_s22 = scalar_lea.vmem %s262_s6, 32 }
  0xcd   :  { %p4839_p7 = scmp.ne.s32.totalorder %s262_s6, %s4838_s9  ;;  %p4843_p8 = scmp.lt.s32.totalorder %s262_s6, %s262_s6 }
  0xce   :  { %p4844_p9 = scmp.lt.s32.totalorder %s4842_s22, %s4838_s9 }
  0xd0   :  { %p4845_p10 = por %p4844_p9, %p4843_p8 }
  0xd2   :  { %p4846_p11 = pnand %p4845_p10, %p4839_p7 }
  0xd4   :  { %4849 = shalt.err (!%p4846_p11)
}
  0xd5   :  { %264 = dma.hbm_to_vmem [thread:$0]  %s5771_s4, 16, %s262_s6, [#allocation26]  }
  0xd6   :  { %s4850_s20 = scalar_lea.hbm %s5791_s17, 16 }
  0xd7   :  { %p4851_p12 = scmp.ne.s32.totalorder %s5791_s17, %s4850_s20  ;;  %p4854_p13 = scmp.lt.u32.totalorder %s4850_s20, %s5791_s17 }
  0xd9   :  { %p4856_p0 = pnand %p4854_p13, %p4851_p12 }
  0xdb   :  { %4859 = shalt.err (!%p4856_p0)
}
  0xdc   :  { %s4860_s26 = scalar_lea.vmem %s282_s16, 16  ;;  %s4864_s8 = scalar_lea.vmem %s282_s16, 32 }
  0xdd   :  { %p4861_p1 = scmp.ne.s32.totalorder %s282_s16, %s4860_s26  ;;  %p4865_p2 = scmp.lt.s32.totalorder %s282_s16, %s282_s16 }
  0xde   :  { %p4866_p3 = scmp.lt.s32.totalorder %s4864_s8, %s4860_s26 }
  0xe0   :  { %p4867_p4 = por %p4866_p3, %p4865_p2 }
  0xe2   :  { %p4868_p5 = pnand %p4867_p4, %p4861_p1 }
  0xe4   :  { %4871 = shalt.err (!%p4868_p5)
}
  0xe5   :  { %284 = dma.hbm_to_vmem [thread:$0]  %s5791_s17, 16, %s282_s16, [#allocation29]  }
  0xe6   :  { %s5641_s28 = smov [#allocation31]   ;;  %s5642_s1 = smov [#allocation34]  }
  0xe7   :  { %s301_s4 = sshll.u32 %s5641_s28, 4  ;;  %s321_s2 = sshll.u32 %s5642_s1, 4  ;;  %s302_s4 = int_to_ptr.vmem [resolvable:$true] %s301_s4  ;;  %s322_s2 = int_to_ptr.vmem [resolvable:$true] %s321_s2 }
  0xe8   :  { %s4872_s0 = scalar_lea.hbm %s5811_s21, 16 }
  0xe9   :  { %p4873_p6 = scmp.ne.s32.totalorder %s5811_s21, %s4872_s0  ;;  %p4876_p7 = scmp.lt.u32.totalorder %s4872_s0, %s5811_s21 }
  0xeb   :  { %p4878_p8 = pnand %p4876_p7, %p4873_p6 }
  0xed   :  { %4881 = shalt.err (!%p4878_p8)
}
  0xee   :  { %s4882_s30 = scalar_lea.vmem %s302_s4, 16  ;;  %s4886_s24 = scalar_lea.vmem %s302_s4, 32 }
  0xef   :  { %p4883_p9 = scmp.ne.s32.totalorder %s302_s4, %s4882_s30  ;;  %p4887_p10 = scmp.lt.s32.totalorder %s302_s4, %s302_s4 }
  0xf0   :  { %p4888_p11 = scmp.lt.s32.totalorder %s4886_s24, %s4882_s30 }
  0xf2   :  { %p4889_p12 = por %p4888_p11, %p4887_p10 }
  0xf4   :  { %p4890_p13 = pnand %p4889_p12, %p4883_p9 }
  0xf6   :  { %4893 = shalt.err (!%p4890_p13)
}
  0xf7   :  { %304 = dma.hbm_to_vmem [thread:$0]  %s5811_s21, 16, %s302_s4, [#allocation32]  }
  0xf8   :  { %s4894_s17 = scalar_lea.hbm %s5831_s15, 16 }
  0xf9   :  { %p4895_p0 = scmp.ne.s32.totalorder %s5831_s15, %s4894_s17  ;;  %p4898_p1 = scmp.lt.u32.totalorder %s4894_s17, %s5831_s15 }
  0xfb   :  { %p4900_p2 = pnand %p4898_p1, %p4895_p0 }
  0xfd   :  { %4903 = shalt.err (!%p4900_p2)
}
  0xfe   :  { %s4904_s7 = scalar_lea.vmem %s322_s2, 16  ;;  %s4908_s10 = scalar_lea.vmem %s322_s2, 32 }
  0xff   :  { %p4905_p3 = scmp.ne.s32.totalorder %s322_s2, %s4904_s7  ;;  %p4909_p4 = scmp.lt.s32.totalorder %s322_s2, %s322_s2 }
 0x100   :  { %p4910_p5 = scmp.lt.s32.totalorder %s4908_s10, %s4904_s7 }
 0x102   :  { %p4911_p6 = por %p4910_p5, %p4909_p4 }
 0x104   :  { %p4912_p7 = pnand %p4911_p6, %p4905_p3 }
 0x106   :  { %4915 = shalt.err (!%p4912_p7)
}
 0x107   :  { %324 = dma.hbm_to_vmem [thread:$0]  %s5831_s15, 16, %s322_s2, [#allocation35]  }
 0x108   :  { %s5643_s11 = smov [#allocation37]   ;;  %s5644_s6 = smov [#allocation40]  }
 0x109   :  { %s343_s21 = sshll.u32 %s5643_s11, 4  ;;  %s365_s14 = sshll.u32 %s5644_s6, 4  ;;  %s344_s21 = int_to_ptr.vmem [resolvable:$true] %s343_s21  ;;  %s366_s14 = int_to_ptr.vmem [resolvable:$true] %s365_s14 }
 0x10a   :  { %s4916_s16 = scalar_lea.hbm %s5841_s13, 16 }
 0x10b   :  { %p4917_p8 = scmp.ne.s32.totalorder %s5841_s13, %s4916_s16  ;;  %p4920_p9 = scmp.lt.u32.totalorder %s4916_s16, %s5841_s13 }
 0x10d   :  { %p4922_p10 = pnand %p4920_p9, %p4917_p8 }
 0x10f   :  { %4925 = shalt.err (!%p4922_p10)
}
 0x110   :  { %s4926_s18 = scalar_lea.vmem %s344_s21, 16  ;;  %s4930_s9 = scalar_lea.vmem %s344_s21, 32 }
 0x111   :  { %p4927_p11 = scmp.ne.s32.totalorder %s344_s21, %s4926_s18  ;;  %p4931_p12 = scmp.lt.s32.totalorder %s344_s21, %s344_s21 }
 0x112   :  { %p4932_p13 = scmp.lt.s32.totalorder %s4930_s9, %s4926_s18 }
 0x114   :  { %p4933_p0 = por %p4932_p13, %p4931_p12 }
 0x116   :  { %p4934_p1 = pnand %p4933_p0, %p4927_p11 }
 0x118   :  { %4937 = shalt.err (!%p4934_p1)
}
 0x119   :  { %346 = dma.hbm_to_vmem [thread:$0]  %s5841_s13, 16, %s344_s21, [#allocation38]  }
 0x11a   :  { %s4938_s15 = scalar_lea.hbm %s5851_s29, 16 }
 0x11b   :  { %p4939_p2 = scmp.ne.s32.totalorder %s5851_s29, %s4938_s15  ;;  %p4942_p3 = scmp.lt.u32.totalorder %s4938_s15, %s5851_s29 }
 0x11d   :  { %p4944_p4 = pnand %p4942_p3, %p4939_p2 }
 0x11f   :  { %4947 = shalt.err (!%p4944_p4)
}
 0x120   :  { %s4948_s22 = scalar_lea.vmem %s366_s14, 16  ;;  %s4952_s20 = scalar_lea.vmem %s366_s14, 32 }
 0x121   :  { %p4949_p5 = scmp.ne.s32.totalorder %s366_s14, %s4948_s22  ;;  %p4953_p6 = scmp.lt.s32.totalorder %s366_s14, %s366_s14 }
 0x122   :  { %p4954_p7 = scmp.lt.s32.totalorder %s4952_s20, %s4948_s22 }
 0x124   :  { %p4955_p8 = por %p4954_p7, %p4953_p6 }
 0x126   :  { %p4956_p9 = pnand %p4955_p8, %p4949_p5 }
 0x128   :  { %4959 = shalt.err (!%p4956_p9)
}
 0x129   :  { %368 = dma.hbm_to_vmem [thread:$0]  %s5851_s29, 16, %s366_s14, [#allocation41]  }
 0x12a   :  { %s5645_s26 = smov [#allocation43]   ;;  %s5646_s8 = smov [#allocation46]  }
 0x12b   :  { %s386_s13 = sshll.u32 %s5645_s26, 4  ;;  %s411_s28 = sshll.u32 %s5646_s8, 4  ;;  %s387_s13 = int_to_ptr.vmem [resolvable:$true] %s386_s13  ;;  %s6011_s28 = int_to_ptr.vmem [resolvable:$true] %s411_s28 }
 0x12c   :  { %s4960_s4 = scalar_lea.hbm %s5861_s23, 1024 }
 0x12d   :  { %p4961_p10 = scmp.ne.s32.totalorder %s5861_s23, %s4960_s4  ;;  %p4964_p11 = scmp.lt.u32.totalorder %s4960_s4, %s5861_s23 }
 0x12f   :  { %p4966_p12 = pnand %p4964_p11, %p4961_p10 }
 0x131   :  { %4969 = shalt.err (!%p4966_p12)
}
 0x132   :  { %s4970_s1 = scalar_lea.vmem %s387_s13, 1024  ;;  %p4975_p0 = scmp.lt.s32.totalorder %s387_s13, %s387_s13 }
 0x133   :  { %p4971_p13 = scmp.ne.s32.totalorder %s387_s13, %s4970_s1  ;;  %p4976_p1 = scmp.lt.s32.totalorder %s4970_s1, %s4970_s1 }
 0x135   :  { %p4977_p2 = por %p4976_p1, %p4975_p0 }
 0x137   :  { %p4978_p3 = pnand %p4977_p2, %p4971_p13 }
 0x139   :  { %4981 = shalt.err (!%p4978_p3)
}
 0x13a   :  { %s5647_s29 = smov 64   ;;  %s5648_s2 = smov 4  }
 0x13b   :  { %392 = dma.hbm_to_vmem [thread:$0]  %s5861_s23, 1024, %s387_s13, [#allocation44], %s5647_s29, %s5647_s29, %s5648_s2  }
 0x13c   :  { %s4982_s0 = scalar_lea.hbm %s5871_s27, 16 }
 0x13d   :  { %p4983_p4 = scmp.ne.s32.totalorder %s5871_s27, %s4982_s0  ;;  %p4986_p5 = scmp.lt.u32.totalorder %s4982_s0, %s5871_s27 }
 0x13f   :  { %p4988_p6 = pnand %p4986_p5, %p4983_p4 }
 0x141   :  { %4991 = shalt.err (!%p4988_p6)
}
 0x142   :  { %s4992_s30 = scalar_lea.vmem %s6011_s28, 16  ;;  %s4996_s24 = scalar_lea.vmem %s6011_s28, 32 }
 0x143   :  { %p4993_p7 = scmp.ne.s32.totalorder %s6011_s28, %s4992_s30  ;;  %p4997_p8 = scmp.lt.s32.totalorder %s6011_s28, %s6011_s28 }
 0x144   :  { %p4998_p9 = scmp.lt.s32.totalorder %s4996_s24, %s4992_s30 }
 0x146   :  { %p4999_p10 = por %p4998_p9, %p4997_p8 }
 0x148   :  { %p5000_p11 = pnand %p4999_p10, %p4993_p7 }
 0x14a   :  { %5003 = shalt.err (!%p5000_p11)
}
 0x14b   :  { %414 = dma.hbm_to_vmem [thread:$0]  %s5871_s27, 16, %s6011_s28, [#allocation47]  }
 0x14c   :  { %s5649_s23 = smov [#allocation49]   ;;  %s5650_s7 = smov [#allocation52]  }
 0x14d   :  { %s433_s17 = sshll.u32 %s5649_s23, 4  ;;  %s453_s10 = sshll.u32 %s5650_s7, 4  ;;  %s434_s17 = int_to_ptr.vmem [resolvable:$true] %s433_s17  ;;  %s454_s10 = int_to_ptr.vmem [resolvable:$true] %s453_s10 }
 0x14e   :  { %s5004_s11 = scalar_lea.hbm %s5886_s5, 16 }
 0x14f   :  { %p5005_p12 = scmp.ne.s32.totalorder %s5886_s5, %s5004_s11  ;;  %p5008_p13 = scmp.lt.u32.totalorder %s5004_s11, %s5886_s5 }
 0x151   :  { %p5010_p0 = pnand %p5008_p13, %p5005_p12 }
 0x153   :  { %5013 = shalt.err (!%p5010_p0)
}
 0x154   :  { %s5014_s21 = scalar_lea.vmem %s434_s17, 16  ;;  %s5018_s6 = scalar_lea.vmem %s434_s17, 32 }
 0x155   :  { %p5015_p1 = scmp.ne.s32.totalorder %s434_s17, %s5014_s21  ;;  %p5019_p2 = scmp.lt.s32.totalorder %s434_s17, %s434_s17 }
 0x156   :  { %p5020_p3 = scmp.lt.s32.totalorder %s5018_s6, %s5014_s21 }
 0x158   :  { %p5021_p4 = por %p5020_p3, %p5019_p2 }
 0x15a   :  { %p5022_p5 = pnand %p5021_p4, %p5015_p1 }
 0x15c   :  { %5025 = shalt.err (!%p5022_p5)
}
 0x15d   :  { %436 = dma.hbm_to_vmem [thread:$0]  %s5886_s5, 16, %s434_s17, [#allocation50]  }
 0x15e   :  { %s5026_s27 = scalar_lea.hbm %s5896_s3, 16 }
 0x15f   :  { %p5027_p6 = scmp.ne.s32.totalorder %s5896_s3, %s5026_s27  ;;  %p5030_p7 = scmp.lt.u32.totalorder %s5026_s27, %s5896_s3 }
 0x161   :  { %p5032_p8 = pnand %p5030_p7, %p5027_p6 }
 0x163   :  { %5035 = shalt.err (!%p5032_p8)
}
 0x164   :  { %s5036_s14 = scalar_lea.vmem %s454_s10, 16  ;;  %s5040_s16 = scalar_lea.vmem %s454_s10, 32 }
 0x165   :  { %p5037_p9 = scmp.ne.s32.totalorder %s454_s10, %s5036_s14  ;;  %p5041_p10 = scmp.lt.s32.totalorder %s454_s10, %s454_s10 }
 0x166   :  { %p5042_p11 = scmp.lt.s32.totalorder %s5040_s16, %s5036_s14 }
 0x168   :  { %p5043_p12 = por %p5042_p11, %p5041_p10 }
 0x16a   :  { %p5044_p13 = pnand %p5043_p12, %p5037_p9 }
 0x16c   :  { %5047 = shalt.err (!%p5044_p13)
}
 0x16d   :  { %s6713_s18 = sld [smem:[#allocation130_spill]]  ;;  %s5651_s9 = smov [#allocation55]  }
 0x16e   :  { %456 = dma.hbm_to_vmem [thread:$0]  %s5896_s3, 16, %s454_s10, [#allocation53]  }
 0x16f   :  { %s485_s5 = sshll.u32 %s5651_s9, 4  ;;  %s5652_s15 = smov [#allocation11]   ;;  %s486_s5 = int_to_ptr.vmem [resolvable:$true] %s485_s5 }
 0x170   :  { %s157_s22 = sshll.u32 %s5652_s15, 4  ;;  %s158_s22 = int_to_ptr.vmem [resolvable:$true] %s157_s22 }
 0x173   :  { %s5048_s20 = scalar_lea.hbm %s6713_s18, 16 }
 0x174   :  { %p5049_p0 = scmp.ne.s32.totalorder %s6713_s18, %s5048_s20  ;;  %p5052_p1 = scmp.lt.u32.totalorder %s5048_s20, %s6713_s18 }
 0x176   :  { %p5054_p2 = pnand %p5052_p1, %p5049_p0 }
 0x178   :  { %5057 = shalt.err (!%p5054_p2)
}
 0x179   :  { %s5058_s26 = scalar_lea.vmem %s486_s5, 16  ;;  %s5062_s13 = scalar_lea.vmem %s486_s5, 32 }
 0x17a   :  { %p5059_p3 = scmp.ne.s32.totalorder %s486_s5, %s5058_s26  ;;  %p5063_p4 = scmp.lt.s32.totalorder %s486_s5, %s486_s5 }
 0x17b   :  { %p5064_p5 = scmp.lt.s32.totalorder %s5062_s13, %s5058_s26 }
 0x17d   :  { %p5065_p6 = por %p5064_p5, %p5063_p4 }
 0x17f   :  { %p5066_p7 = pnand %p5065_p6, %p5059_p3 }
 0x181   :  { %5069 = shalt.err (!%p5066_p7)
}
 0x182   :  { %s6714_s3 = sld [smem:[#allocation100_spill]] }
 0x183   :  { %488 = dma.hbm_to_vmem [thread:$0]  %s6713_s18, 16, %s486_s5, [#allocation56]  }
 0x188   :  { %s5070_s8 = scalar_lea.hbm %s6714_s3, 16 }
 0x189   :  { %p5071_p8 = scmp.ne.s32.totalorder %s6714_s3, %s5070_s8  ;;  %p5074_p9 = scmp.lt.u32.totalorder %s5070_s8, %s6714_s3 }
 0x18b   :  { %p5076_p10 = pnand %p5074_p9, %p5071_p8 }
 0x18d   :  { %5079 = shalt.err (!%p5076_p10)
}
 0x18e   :  { %s5080_s28 = scalar_lea.vmem %s158_s22, 16  ;;  %s5084_s4 = scalar_lea.vmem %s158_s22, 32 }
 0x18f   :  { %p5081_p11 = scmp.ne.s32.totalorder %s158_s22, %s5080_s28  ;;  %p5085_p12 = scmp.lt.s32.totalorder %s158_s22, %s158_s22 }
 0x190   :  { %p5086_p13 = scmp.lt.s32.totalorder %s5084_s4, %s5080_s28 }
 0x192   :  { %p5087_p0 = por %p5086_p13, %p5085_p12 }
 0x194   :  { %p5088_p1 = pnand %p5087_p0, %p5081_p11 }
 0x196   :  { %5091 = shalt.err (!%p5088_p1)
}
 0x197   :  { %s6715_s1 = sld [smem:[#allocation103_spill]]  ;;  %s5653_s0 = smov [#allocation15]  }
 0x198   :  { %160 = dma.hbm_to_vmem [thread:$0]  %s6714_s3, 16, %s158_s22, [#allocation12]  }
 0x199   :  { %s182_s30 = sshll.u32 %s5653_s0, 4  ;;  %s5654_s24 = smov [#allocation18]   ;;  %s183_s30 = int_to_ptr.vmem [resolvable:$true] %s182_s30 }
 0x19a   :  { %s204_s23 = sshll.u32 %s5654_s24, 4  ;;  %s6046_s23 = int_to_ptr.vmem [resolvable:$true] %s204_s23 }
 0x19d   :  { %s5092_s17 = scalar_lea.hbm %s6715_s1, 1024 }
 0x19e   :  { %p5093_p2 = scmp.ne.s32.totalorder %s6715_s1, %s5092_s17  ;;  %p5096_p3 = scmp.lt.u32.totalorder %s5092_s17, %s6715_s1 }
 0x1a0   :  { %p5098_p4 = pnand %p5096_p3, %p5093_p2 }
 0x1a2   :  { %5101 = shalt.err (!%p5098_p4)
}
 0x1a3   :  { %s5102_s7 = scalar_lea.vmem %s183_s30, 1024  ;;  %p5107_p6 = scmp.lt.s32.totalorder %s183_s30, %s183_s30 }
 0x1a4   :  { %p5103_p5 = scmp.ne.s32.totalorder %s183_s30, %s5102_s7  ;;  %p5108_p7 = scmp.lt.s32.totalorder %s5102_s7, %s5102_s7 }
 0x1a6   :  { %p5109_p8 = por %p5108_p7, %p5107_p6 }
 0x1a8   :  { %p5110_p9 = pnand %p5109_p8, %p5103_p5 }
 0x1aa   :  { %5113 = shalt.err (!%p5110_p9)
}
 0x1ab   :  { %s6716_s10 = sld [smem:[#allocation104_spill]] }
 0x1ac   :  { %188 = dma.hbm_to_vmem [thread:$0]  %s6715_s1, 1024, %s183_s30, [#allocation14], %s5647_s29, %s5647_s29, %s5648_s2  }
 0x1b1   :  { %s5114_s11 = scalar_lea.hbm %s6716_s10, 1024 }
 0x1b2   :  { %p5115_p10 = scmp.ne.s32.totalorder %s6716_s10, %s5114_s11  ;;  %p5118_p11 = scmp.lt.u32.totalorder %s5114_s11, %s6716_s10 }
 0x1b4   :  { %p5120_p12 = pnand %p5118_p11, %p5115_p10 }
 0x1b6   :  { %5123 = shalt.err (!%p5120_p12)
}
 0x1b7   :  { %s5124_s21 = scalar_lea.vmem %s6046_s23, 1024  ;;  %p5129_p0 = scmp.lt.s32.totalorder %s6046_s23, %s6046_s23 }
 0x1b8   :  { %p5125_p13 = scmp.ne.s32.totalorder %s6046_s23, %s5124_s21  ;;  %p5130_p1 = scmp.lt.s32.totalorder %s5124_s21, %s5124_s21 }
 0x1ba   :  { %p5131_p2 = por %p5130_p1, %p5129_p0 }
 0x1bc   :  { %p5132_p3 = pnand %p5131_p2, %p5125_p13 }
 0x1be   :  { %5135 = shalt.err (!%p5132_p3)
}
 0x1bf   :  { %s6717_s6 = sld [smem:[#allocation105_spill]]  ;;  %s5655_s27 = smov [#allocation21]  }
 0x1c0   :  { %210 = dma.hbm_to_vmem [thread:$0]  %s6716_s10, 1024, %s6046_s23, [#allocation17], %s5647_s29, %s5647_s29, %s5648_s2  }
 0x1c1   :  { %s226_s14 = sshll.u32 %s5655_s27, 4  ;;  %s5656_s16 = smov [#allocation24]   ;;  %s227_s14 = int_to_ptr.vmem [resolvable:$true] %s226_s14 }
 0x1c2   :  { %s248_s18 = sshll.u32 %s5656_s16, 4  ;;  %s6067_s18 = int_to_ptr.vmem [resolvable:$true] %s248_s18 }
 0x1c5   :  { %s5136_s9 = scalar_lea.hbm %s6717_s6, 1024 }
 0x1c6   :  { %p5137_p4 = scmp.ne.s32.totalorder %s6717_s6, %s5136_s9  ;;  %p5140_p5 = scmp.lt.u32.totalorder %s5136_s9, %s6717_s6 }
 0x1c8   :  { %p5142_p6 = pnand %p5140_p5, %p5137_p4 }
 0x1ca   :  { %5145 = shalt.err (!%p5142_p6)
}
 0x1cb   :  { %s5146_s5 = scalar_lea.vmem %s227_s14, 1024  ;;  %p5151_p8 = scmp.lt.s32.totalorder %s227_s14, %s227_s14 }
 0x1cc   :  { %p5147_p7 = scmp.ne.s32.totalorder %s227_s14, %s5146_s5  ;;  %p5152_p9 = scmp.lt.s32.totalorder %s5146_s5, %s5146_s5 }
 0x1ce   :  { %p5153_p10 = por %p5152_p9, %p5151_p8 }
 0x1d0   :  { %p5154_p11 = pnand %p5153_p10, %p5147_p7 }
 0x1d2   :  { %5157 = shalt.err (!%p5154_p11)
}
 0x1d3   :  { %s6718_s15 = sld [smem:[#allocation106_spill]] }
 0x1d4   :  { %232 = dma.hbm_to_vmem [thread:$0]  %s6717_s6, 1024, %s227_s14, [#allocation20], %s5647_s29, %s5647_s29, %s5648_s2  }
 0x1d9   :  { %s5158_s22 = scalar_lea.hbm %s6718_s15, 1024 }
 0x1da   :  { %p5159_p12 = scmp.ne.s32.totalorder %s6718_s15, %s5158_s22  ;;  %p5162_p13 = scmp.lt.u32.totalorder %s5158_s22, %s6718_s15 }
 0x1dc   :  { %p5164_p0 = pnand %p5162_p13, %p5159_p12 }
 0x1de   :  { %5167 = shalt.err (!%p5164_p0)
}
 0x1df   :  { %s5168_s20 = scalar_lea.vmem %s6067_s18, 1024  ;;  %p5173_p2 = scmp.lt.s32.totalorder %s6067_s18, %s6067_s18 }
 0x1e0   :  { %p5169_p1 = scmp.ne.s32.totalorder %s6067_s18, %s5168_s20  ;;  %p5174_p3 = scmp.lt.s32.totalorder %s5168_s20, %s5168_s20 }
 0x1e2   :  { %p5175_p4 = por %p5174_p3, %p5173_p2 }
 0x1e4   :  { %p5176_p5 = pnand %p5175_p4, %p5169_p1 }
 0x1e6   :  { %5179 = shalt.err (!%p5176_p5)
}
 0x1e7   :  { %s6719_s26 = sld [smem:[#allocation108_spill]]  ;;  %s5657_s13 = smov [#allocation27]  }
 0x1e8   :  { %254 = dma.hbm_to_vmem [thread:$0]  %s6718_s15, 1024, %s6067_s18, [#allocation23], %s5647_s29, %s5647_s29, %s5648_s2  }
 0x1e9   :  { %s271_s3 = sshll.u32 %s5657_s13, 4  ;;  %s5658_s8 = smov [#allocation30]   ;;  %s272_s3 = int_to_ptr.vmem [resolvable:$true] %s271_s3 }
 0x1ea   :  { %s291_s28 = sshll.u32 %s5658_s8, 4  ;;  %s292_s28 = int_to_ptr.vmem [resolvable:$true] %s291_s28 }
 0x1ed   :  { %s5180_s4 = scalar_lea.hbm %s6719_s26, 32 }
 0x1ee   :  { %p5181_p6 = scmp.ne.s32.totalorder %s6719_s26, %s5180_s4  ;;  %p5184_p7 = scmp.lt.u32.totalorder %s5180_s4, %s6719_s26 }
 0x1f0   :  { %p5186_p8 = pnand %p5184_p7, %p5181_p6 }
 0x1f2   :  { %5189 = shalt.err (!%p5186_p8)
}
 0x1f3   :  { %s5190_s1 = scalar_lea.vmem %s272_s3, 32  ;;  %p5195_p10 = scmp.lt.s32.totalorder %s272_s3, %s272_s3 }
 0x1f4   :  { %p5191_p9 = scmp.ne.s32.totalorder %s272_s3, %s5190_s1  ;;  %p5196_p11 = scmp.lt.s32.totalorder %s5190_s1, %s5190_s1 }
 0x1f6   :  { %p5197_p12 = por %p5196_p11, %p5195_p10 }
 0x1f8   :  { %p5198_p13 = pnand %p5197_p12, %p5191_p9 }
 0x1fa   :  { %5201 = shalt.err (!%p5198_p13)
}
 0x1fb   :  { %s6720_s0 = sld [smem:[#allocation111_spill]] }
 0x1fc   :  { %274 = dma.hbm_to_vmem [thread:$0]  %s6719_s26, 32, %s272_s3, [#allocation26]  }
 0x201   :  { %s5202_s30 = scalar_lea.hbm %s6720_s0, 16 }
 0x202   :  { %p5203_p0 = scmp.ne.s32.totalorder %s6720_s0, %s5202_s30  ;;  %p5206_p1 = scmp.lt.u32.totalorder %s5202_s30, %s6720_s0 }
 0x204   :  { %p5208_p2 = pnand %p5206_p1, %p5203_p0 }
 0x206   :  { %5211 = shalt.err (!%p5208_p2)
}
 0x207   :  { %s5212_s24 = scalar_lea.vmem %s292_s28, 16  ;;  %s5216_s23 = scalar_lea.vmem %s292_s28, 32 }
 0x208   :  { %p5213_p3 = scmp.ne.s32.totalorder %s292_s28, %s5212_s24  ;;  %p5217_p4 = scmp.lt.s32.totalorder %s292_s28, %s292_s28 }
 0x209   :  { %p5218_p5 = scmp.lt.s32.totalorder %s5216_s23, %s5212_s24 }
 0x20b   :  { %p5219_p6 = por %p5218_p5, %p5217_p4 }
 0x20d   :  { %p5220_p7 = pnand %p5219_p6, %p5213_p3 }
 0x20f   :  { %5223 = shalt.err (!%p5220_p7)
}
 0x210   :  { %s6721_s17 = sld [smem:[#allocation114_spill]]  ;;  %s5659_s7 = smov [#allocation33]  }
 0x211   :  { %294 = dma.hbm_to_vmem [thread:$0]  %s6720_s0, 16, %s292_s28, [#allocation29]  }
 0x212   :  { %s311_s10 = sshll.u32 %s5659_s7, 4  ;;  %s5660_s11 = smov [#allocation36]   ;;  %s312_s10 = int_to_ptr.vmem [resolvable:$true] %s311_s10 }
 0x213   :  { %s330_s21 = sshll.u32 %s5660_s11, 4  ;;  %s6096_s21 = int_to_ptr.vmem [resolvable:$true] %s330_s21 }
 0x216   :  { %s5224_s6 = scalar_lea.hbm %s6721_s17, 16 }
 0x217   :  { %p5225_p8 = scmp.ne.s32.totalorder %s6721_s17, %s5224_s6  ;;  %p5228_p9 = scmp.lt.u32.totalorder %s5224_s6, %s6721_s17 }
 0x219   :  { %p5230_p10 = pnand %p5228_p9, %p5225_p8 }
 0x21b   :  { %5233 = shalt.err (!%p5230_p10)
}
 0x21c   :  { %s5234_s27 = scalar_lea.vmem %s312_s10, 16  ;;  %s5238_s14 = scalar_lea.vmem %s312_s10, 32 }
 0x21d   :  { %p5235_p11 = scmp.ne.s32.totalorder %s312_s10, %s5234_s27  ;;  %p5239_p12 = scmp.lt.s32.totalorder %s312_s10, %s312_s10 }
 0x21e   :  { %p5240_p13 = scmp.lt.s32.totalorder %s5238_s14, %s5234_s27 }
 0x220   :  { %p5241_p0 = por %p5240_p13, %p5239_p12 }
 0x222   :  { %p5242_p1 = pnand %p5241_p0, %p5235_p11 }
 0x224   :  { %5245 = shalt.err (!%p5242_p1)
}
 0x225   :  { %s6722_s16 = sld [smem:[#allocation116_spill]] }
 0x226   :  { %314 = dma.hbm_to_vmem [thread:$0]  %s6721_s17, 16, %s312_s10, [#allocation32]  }
 0x22b   :  { %s5246_s18 = scalar_lea.hbm %s6722_s16, 1024 }
 0x22c   :  { %p5247_p2 = scmp.ne.s32.totalorder %s6722_s16, %s5246_s18  ;;  %p5250_p3 = scmp.lt.u32.totalorder %s5246_s18, %s6722_s16 }
 0x22e   :  { %p5252_p4 = pnand %p5250_p3, %p5247_p2 }
 0x230   :  { %5255 = shalt.err (!%p5252_p4)
}
 0x231   :  { %s5256_s9 = scalar_lea.vmem %s6096_s21, 1024  ;;  %p5261_p6 = scmp.lt.s32.totalorder %s6096_s21, %s6096_s21 }
 0x232   :  { %p5257_p5 = scmp.ne.s32.totalorder %s6096_s21, %s5256_s9  ;;  %p5262_p7 = scmp.lt.s32.totalorder %s5256_s9, %s5256_s9 }
 0x234   :  { %p5263_p8 = por %p5262_p7, %p5261_p6 }
 0x236   :  { %p5264_p9 = pnand %p5263_p8, %p5257_p5 }
 0x238   :  { %5267 = shalt.err (!%p5264_p9)
}
 0x239   :  { %s6723_s5 = sld [smem:[#allocation117_spill]]  ;;  %s5661_s15 = smov [#allocation39]  }
 0x23a   :  { %336 = dma.hbm_to_vmem [thread:$0]  %s6722_s16, 1024, %s6096_s21, [#allocation35], %s5647_s29, %s5647_s29, %s5648_s2  }
 0x23b   :  { %s352_s22 = sshll.u32 %s5661_s15, 4  ;;  %s5662_s20 = smov [#allocation42]   ;;  %s353_s22 = int_to_ptr.vmem [resolvable:$true] %s352_s22 }
 0x23c   :  { %s374_s26 = sshll.u32 %s5662_s20, 4  ;;  %s6114_s26 = int_to_ptr.vmem [resolvable:$true] %s374_s26 }
 0x23f   :  { %s5268_s13 = scalar_lea.hbm %s6723_s5, 512 }
 0x240   :  { %p5269_p10 = scmp.ne.s32.totalorder %s6723_s5, %s5268_s13  ;;  %p5272_p11 = scmp.lt.u32.totalorder %s5268_s13, %s6723_s5 }
 0x242   :  { %p5274_p12 = pnand %p5272_p11, %p5269_p10 }
 0x244   :  { %5277 = shalt.err (!%p5274_p12)
}
 0x245   :  { %s5278_s3 = scalar_lea.vmem %s353_s22, 512  ;;  %p5283_p0 = scmp.lt.s32.totalorder %s353_s22, %s353_s22 }
 0x246   :  { %p5279_p13 = scmp.ne.s32.totalorder %s353_s22, %s5278_s3  ;;  %p5284_p1 = scmp.lt.s32.totalorder %s5278_s3, %s5278_s3 }
 0x248   :  { %p5285_p2 = por %p5284_p1, %p5283_p0 }
 0x24a   :  { %p5286_p3 = pnand %p5285_p2, %p5279_p13 }
 0x24c   :  { %5289 = shalt.err (!%p5286_p3)
}
 0x24d   :  { %s6724_s8 = sld [smem:[#allocation118_spill]] }
 0x24e   :  { %358 = dma.hbm_to_vmem [thread:$0]  %s6723_s5, 512, %s353_s22, [#allocation38], %s5647_s29, %s5647_s29, %s5648_s2  }
 0x253   :  { %s5290_s28 = scalar_lea.hbm %s6724_s8, 512 }
 0x254   :  { %p5291_p4 = scmp.ne.s32.totalorder %s6724_s8, %s5290_s28  ;;  %p5294_p5 = scmp.lt.u32.totalorder %s5290_s28, %s6724_s8 }
 0x256   :  { %p5296_p6 = pnand %p5294_p5, %p5291_p4 }
 0x258   :  { %5299 = shalt.err (!%p5296_p6)
}
 0x259   :  { %s5300_s4 = scalar_lea.vmem %s6114_s26, 512  ;;  %p5305_p8 = scmp.lt.s32.totalorder %s6114_s26, %s6114_s26 }
 0x25a   :  { %p5301_p7 = scmp.ne.s32.totalorder %s6114_s26, %s5300_s4  ;;  %p5306_p9 = scmp.lt.s32.totalorder %s5300_s4, %s5300_s4 }
 0x25c   :  { %p5307_p10 = por %p5306_p9, %p5305_p8 }
 0x25e   :  { %p5308_p11 = pnand %p5307_p10, %p5301_p7 }
 0x260   :  { %5311 = shalt.err (!%p5308_p11)
}
 0x261   :  { %s6725_s1 = sld [smem:[#allocation119_spill]]  ;;  %s5663_s0 = smov [#allocation45]  }
 0x262   :  { %380 = dma.hbm_to_vmem [thread:$0]  %s6724_s8, 512, %s6114_s26, [#allocation41], %s5647_s29, %s5647_s29, %s5648_s2  }
 0x263   :  { %s398_s30 = sshll.u32 %s5663_s0, 4  ;;  %s5664_s24 = smov [#allocation48]   ;;  %s399_s30 = int_to_ptr.vmem [resolvable:$true] %s398_s30 }
 0x264   :  { %s423_s23 = sshll.u32 %s5664_s24, 4  ;;  %s424_s23 = int_to_ptr.vmem [resolvable:$true] %s423_s23 }
 0x267   :  { %s5312_s17 = scalar_lea.hbm %s6725_s1, 256 }
 0x268   :  { %p5313_p12 = scmp.ne.s32.totalorder %s6725_s1, %s5312_s17  ;;  %p5316_p13 = scmp.lt.u32.totalorder %s5312_s17, %s6725_s1 }
 0x26a   :  { %p5318_p0 = pnand %p5316_p13, %p5313_p12 }
 0x26c   :  { %5321 = shalt.err (!%p5318_p0)
}
 0x26d   :  { %s5322_s7 = scalar_lea.vmem %s399_s30, 256  ;;  %p5327_p2 = scmp.lt.s32.totalorder %s399_s30, %s399_s30 }
 0x26e   :  { %p5323_p1 = scmp.ne.s32.totalorder %s399_s30, %s5322_s7  ;;  %p5328_p3 = scmp.lt.s32.totalorder %s5322_s7, %s5322_s7 }
 0x270   :  { %p5329_p4 = por %p5328_p3, %p5327_p2 }
 0x272   :  { %p5330_p5 = pnand %p5329_p4, %p5323_p1 }
 0x274   :  { %5333 = shalt.err (!%p5330_p5)
}
 0x275   :  { %s6726_s10 = sld [smem:[#allocation121_spill]] }
 0x276   :  { %404 = dma.hbm_to_vmem [thread:$0]  %s6725_s1, 256, %s399_s30, [#allocation44], %s5647_s29, %s5647_s29, %s5648_s2  }
 0x27b   :  { %s5334_s11 = scalar_lea.hbm %s6726_s10, 16 }
 0x27c   :  { %p5335_p6 = scmp.ne.s32.totalorder %s6726_s10, %s5334_s11  ;;  %p5338_p7 = scmp.lt.u32.totalorder %s5334_s11, %s6726_s10 }
 0x27e   :  { %p5340_p8 = pnand %p5338_p7, %p5335_p6 }
 0x280   :  { %5343 = shalt.err (!%p5340_p8)
}
 0x281   :  { %s5344_s21 = scalar_lea.vmem %s424_s23, 16  ;;  %s5348_s6 = scalar_lea.vmem %s424_s23, 32 }
 0x282   :  { %p5345_p9 = scmp.ne.s32.totalorder %s424_s23, %s5344_s21  ;;  %p5349_p10 = scmp.lt.s32.totalorder %s424_s23, %s424_s23 }
 0x283   :  { %p5350_p11 = scmp.lt.s32.totalorder %s5348_s6, %s5344_s21 }
 0x285   :  { %p5351_p12 = por %p5350_p11, %p5349_p10 }
 0x287   :  { %p5352_p13 = pnand %p5351_p12, %p5345_p9 }
 0x289   :  { %5355 = shalt.err (!%p5352_p13)
}
 0x28a   :  { %s6727_s27 = sld [smem:[#allocation122_spill]]  ;;  %s5665_s14 = smov [#allocation51]  }
 0x28b   :  { %426 = dma.hbm_to_vmem [thread:$0]  %s6726_s10, 16, %s424_s23, [#allocation47]  }
 0x28c   :  { %s443_s29 = sshll.u32 %s5665_s14, 4  ;;  %s5666_s2 = smov [#allocation54]   ;;  %s444_s29 = int_to_ptr.vmem [resolvable:$true] %s443_s29 }
 0x28d   :  { %s473_s16 = sshll.u32 %s5666_s2, 4  ;;  %s474_s16 = int_to_ptr.vmem [resolvable:$true] %s473_s16 }
 0x290   :  { %s5356_s18 = scalar_lea.hbm %s6727_s27, 16 }
 0x291   :  { %p5357_p0 = scmp.ne.s32.totalorder %s6727_s27, %s5356_s18  ;;  %p5360_p1 = scmp.lt.u32.totalorder %s5356_s18, %s6727_s27 }
 0x293   :  { %p5362_p2 = pnand %p5360_p1, %p5357_p0 }
 0x295   :  { %5365 = shalt.err (!%p5362_p2)
}
 0x296   :  { %s5366_s9 = scalar_lea.vmem %s444_s29, 16  ;;  %s5370_s5 = scalar_lea.vmem %s444_s29, 32 }
 0x297   :  { %p5367_p3 = scmp.ne.s32.totalorder %s444_s29, %s5366_s9  ;;  %p5371_p4 = scmp.lt.s32.totalorder %s444_s29, %s444_s29 }
 0x298   :  { %p5372_p5 = scmp.lt.s32.totalorder %s5370_s5, %s5366_s9 }
 0x29a   :  { %p5373_p6 = por %p5372_p5, %p5371_p4 }
 0x29c   :  { %p5374_p7 = pnand %p5373_p6, %p5367_p3 }
 0x29e   :  { %5377 = shalt.err (!%p5374_p7)
}
 0x29f   :  { %s6728_s15 = sld [smem:[#allocation128_spill]] }
 0x2a0   :  { %446 = dma.hbm_to_vmem [thread:$0]  %s6727_s27, 16, %s444_s29, [#allocation50]  }
 0x2a5   :  { %s5378_s22 = scalar_lea.hbm %s6728_s15, 16 }
 0x2a6   :  { %p5379_p8 = scmp.ne.s32.totalorder %s6728_s15, %s5378_s22  ;;  %p5382_p9 = scmp.lt.u32.totalorder %s5378_s22, %s6728_s15 }
 0x2a8   :  { %p5384_p10 = pnand %p5382_p9, %p5379_p8 }
 0x2aa   :  { %5387 = shalt.err (!%p5384_p10)
}
 0x2ab   :  { %s5388_s20 = scalar_lea.vmem %s474_s16, 16  ;;  %s5392_s26 = scalar_lea.vmem %s474_s16, 32 }
 0x2ac   :  { %p5389_p11 = scmp.ne.s32.totalorder %s474_s16, %s5388_s20  ;;  %p5393_p12 = scmp.lt.s32.totalorder %s474_s16, %s474_s16 }
 0x2ad   :  { %p5394_p13 = scmp.lt.s32.totalorder %s5392_s26, %s5388_s20 }
 0x2af   :  { %p5395_p0 = por %p5394_p13, %p5393_p12 }
 0x2b1   :  { %p5396_p1 = pnand %p5395_p0, %p5389_p11 }
 0x2b3   :  { %5399 = shalt.err (!%p5396_p1)
}
 0x2b4   :  { %s6729_s13 = sld [smem:[#allocation132_spill]]  ;;  %s5667_s3 = smov [#allocation57]  }
 0x2b5   :  { %476 = dma.hbm_to_vmem [thread:$0]  %s6728_s15, 16, %s474_s16, [#allocation53]  }
 0x2b6   :  { %s497_s8 = sshll.u32 %s5667_s3, 4  ;;  %s5668_s28 = smov [#allocation58]   ;;  %s498_s8 = int_to_ptr.vmem [resolvable:$true] %s497_s8 }
 0x2b7   :  { %s509_s4 = sshll.u32 %s5668_s28, 4  ;;  %s510_s4 = int_to_ptr.vmem [resolvable:$true] %s509_s4 }
 0x2ba   :  { %s5400_s1 = scalar_lea.hbm %s6729_s13, 16 }
 0x2bb   :  { %p5401_p2 = scmp.ne.s32.totalorder %s6729_s13, %s5400_s1  ;;  %p5404_p3 = scmp.lt.u32.totalorder %s5400_s1, %s6729_s13 }
 0x2bd   :  { %p5406_p4 = pnand %p5404_p3, %p5401_p2 }
 0x2bf   :  { %5409 = shalt.err (!%p5406_p4)
}
 0x2c0   :  { %s5410_s0 = scalar_lea.vmem %s498_s8, 16  ;;  %s5414_s30 = scalar_lea.vmem %s498_s8, 32 }
 0x2c1   :  { %p5411_p5 = scmp.ne.s32.totalorder %s498_s8, %s5410_s0  ;;  %p5415_p6 = scmp.lt.s32.totalorder %s498_s8, %s498_s8 }
 0x2c2   :  { %p5416_p7 = scmp.lt.s32.totalorder %s5414_s30, %s5410_s0 }
 0x2c4   :  { %p5417_p8 = por %p5416_p7, %p5415_p6 }
 0x2c6   :  { %p5418_p9 = pnand %p5417_p8, %p5411_p5 }
 0x2c8   :  { %5421 = shalt.err (!%p5418_p9)
}
 0x2c9   :  { %500 = dma.hbm_to_vmem [thread:$0]  %s6729_s13, 16, %s498_s8, [#allocation56]  }
 0x2ca   :  { %s5422_s24 = scalar_lea.hbm %s5956_s25, 16 }
 0x2cb   :  { %p5423_p10 = scmp.ne.s32.totalorder %s5956_s25, %s5422_s24  ;;  %p5426_p11 = scmp.lt.u32.totalorder %s5422_s24, %s5956_s25 }
 0x2cd   :  { %p5428_p12 = pnand %p5426_p11, %p5423_p10 }
 0x2cf   :  { %5431 = shalt.err (!%p5428_p12)
}
 0x2d0   :  { %s5432_s23 = scalar_lea.vmem %s510_s4, 16  ;;  %s5436_s17 = scalar_lea.vmem %s510_s4, 32 }
 0x2d1   :  { %p5433_p13 = scmp.ne.s32.totalorder %s510_s4, %s5432_s23  ;;  %p5437_p0 = scmp.lt.s32.totalorder %s510_s4, %s510_s4 }
 0x2d2   :  { %p5438_p1 = scmp.lt.s32.totalorder %s5436_s17, %s5432_s23 }
 0x2d4   :  { %p5439_p2 = por %p5438_p1, %p5437_p0 }
 0x2d6   :  { %p5440_p3 = pnand %p5439_p2, %p5433_p13 }
 0x2d8   :  { %5443 = shalt.err (!%p5440_p3)
}
 0x2d9   :  { %512 = dma.hbm_to_vmem [thread:$0]  %s5956_s25, 16, %s510_s4, [#allocation59]  }
 0x2da   :  { %5532 = dma.done.wait [#allocation12], 16  }
 0x2db   :  { %5533 = vsyncadd [#allocation12], 4294967280 }
 0x2dc   :  { %5534 = dma.done.wait [#allocation14], 1040  }
 0x2dd   :  { %5535 = vsyncadd [#allocation14], 4294966256 }
 0x2de   :  { %5536 = dma.done.wait [#allocation17], 1040  }
 0x2df   :  { %5537 = vsyncadd [#allocation17], 4294966256 }
 0x2e0   :  { %5538 = dma.done.wait [#allocation20], 1040  }
 0x2e1   :  { %5539 = vsyncadd [#allocation20], 4294966256 }
 0x2e2   :  { %5540 = dma.done.wait [#allocation23], 1040  }
 0x2e3   :  { %5541 = vsyncadd [#allocation23], 4294966256 }
 0x2e4   :  { %5542 = dma.done.wait [#allocation26], 48  }
 0x2e5   :  { %5543 = vsyncadd [#allocation26], 4294967248 }
 0x2e6   :  { %5544 = dma.done.wait [#allocation29], 32  }
 0x2e7   :  { %5545 = vsyncadd [#allocation29], 4294967264 }
 0x2e8   :  { %5546 = dma.done.wait [#allocation32], 32  }
 0x2e9   :  { %5547 = vsyncadd [#allocation32], 4294967264 }
 0x2ea   :  { %5548 = dma.done.wait [#allocation35], 1040  }
 0x2eb   :  { %5549 = vsyncadd [#allocation35], 4294966256 }
 0x2ec   :  { %5550 = dma.done.wait [#allocation38], 528  }
 0x2ed   :  { %5551 = vsyncadd [#allocation38], 4294966768 }
 0x2ee   :  { %5552 = dma.done.wait [#allocation41], 528  }
 0x2ef   :  { %5553 = vsyncadd [#allocation41], 4294966768 }
 0x2f0   :  { %5554 = dma.done.wait [#allocation44], 1280  }
 0x2f1   :  { %5555 = vsyncadd [#allocation44], 4294966016 }
 0x2f2   :  { %5556 = dma.done.wait [#allocation47], 32  }
 0x2f3   :  { %5557 = vsyncadd [#allocation47], 4294967264 }
 0x2f4   :  { %5558 = dma.done.wait [#allocation50], 32  }
 0x2f5   :  { %5559 = vsyncadd [#allocation50], 4294967264 }
 0x2f6   :  { %5560 = dma.done.wait [#allocation53], 32  }
 0x2f7   :  { %5561 = vsyncadd [#allocation53], 4294967264 }
 0x2f8   :  { %5562 = dma.done.wait [#allocation56], 32  }
 0x2f9   :  { %5563 = vsyncadd [#allocation56], 4294967264 }
 0x2fa   :  { %5564 = dma.done.wait [#allocation59], 16  }
 0x2fb   :  { %5565 = vsyncadd [#allocation59], 4294967280  ;;  %s6730_s25 = sld [smem:[#allocation107_spill]] }
 0x301   :  { %v631_v2 = vld [vmem:[%s6730_s25] sm:$0xf]  ;;  %v633_v3 = vld [vmem:[%s6730_s25 + $0x8] sm:$0xf]  ;;  %v635_v4 = vld [vmem:[%s6730_s25 + $0x4] sm:$0xf] }
 0x302   :  { %632 = vst [vmem:[#allocation2] sm:$0xf] %v631_v2  ;;  %634 = vst [vmem:[#allocation2 + $0x4] sm:$0xf] %v633_v3  ;;  %v637_v5 = vld [vmem:[%s6730_s25 + $0xc] sm:$0xf] }
 0x303   :  { %636 = vst [vmem:[#allocation2 + $0x8] sm:$0xf] %v635_v4  ;;  %v639_v6 = vld [vmem:[%s6730_s25 + $0x10] sm:$0xf]  ;;  %v641_v7 = vld [vmem:[%s6730_s25 + $0x18] sm:$0xf] }
 0x304   :  { %638 = vst [vmem:[#allocation2 + $0xc] sm:$0xf] %v637_v5  ;;  %640 = vst [vmem:[#allocation2 + $0x10] sm:$0xf] %v639_v6  ;;  %v643_v8 = vld [vmem:[%s6730_s25 + $0x14] sm:$0xf] }
 0x305   :  { %642 = vst [vmem:[#allocation2 + $0x14] sm:$0xf] %v641_v7  ;;  %v645_v9 = vld [vmem:[%s6730_s25 + $0x1c] sm:$0xf]  ;;  %v647_v10 = vld [vmem:[%s6730_s25 + $0x20] sm:$0xf] }
 0x306   :  { %644 = vst [vmem:[#allocation2 + $0x18] sm:$0xf] %v643_v8  ;;  %646 = vst [vmem:[#allocation2 + $0x1c] sm:$0xf] %v645_v9  ;;  %v649_v11 = vld [vmem:[%s6730_s25 + $0x28] sm:$0xf] }
 0x307   :  { %648 = vst [vmem:[#allocation2 + $0x20] sm:$0xf] %v647_v10  ;;  %v651_v12 = vld [vmem:[%s6730_s25 + $0x24] sm:$0xf]  ;;  %v653_v13 = vld [vmem:[%s6730_s25 + $0x2c] sm:$0xf] }
 0x308   :  { %650 = vst [vmem:[#allocation2 + $0x24] sm:$0xf] %v649_v11  ;;  %652 = vst [vmem:[#allocation2 + $0x28] sm:$0xf] %v651_v12  ;;  %v655_v14 = vld [vmem:[%s6730_s25 + $0x30] sm:$0xf] }
 0x309   :  { %654 = vst [vmem:[#allocation2 + $0x2c] sm:$0xf] %v653_v13  ;;  %v657_v15 = vld [vmem:[%s6730_s25 + $0x38] sm:$0xf]  ;;  %v659_v16 = vld [vmem:[%s6730_s25 + $0x34] sm:$0xf] }
 0x30a   :  { %656 = vst [vmem:[#allocation2 + $0x30] sm:$0xf] %v655_v14  ;;  %658 = vst [vmem:[#allocation2 + $0x34] sm:$0xf] %v657_v15  ;;  %v661_v17 = vld [vmem:[%s6730_s25 + $0x3c] sm:$0xf] }
 0x30b   :  { %660 = vst [vmem:[#allocation2 + $0x38] sm:$0xf] %v659_v16  ;;  %v663_v18 = vld [vmem:[%s6730_s25 + $0x40] sm:$0xf]  ;;  %v665_v19 = vld [vmem:[%s6730_s25 + $0x48] sm:$0xf] }
 0x30c   :  { %662 = vst [vmem:[#allocation2 + $0x3c] sm:$0xf] %v661_v17  ;;  %664 = vst [vmem:[#allocation2 + $0x40] sm:$0xf] %v663_v18  ;;  %v667_v20 = vld [vmem:[%s6730_s25 + $0x44] sm:$0xf] }
 0x30d   :  { %666 = vst [vmem:[#allocation2 + $0x44] sm:$0xf] %v665_v19  ;;  %v669_v21 = vld [vmem:[%s6730_s25 + $0x4c] sm:$0xf]  ;;  %v671_v22 = vld [vmem:[%s6730_s25 + $0x50] sm:$0xf] }
 0x30e   :  { %668 = vst [vmem:[#allocation2 + $0x48] sm:$0xf] %v667_v20  ;;  %670 = vst [vmem:[#allocation2 + $0x4c] sm:$0xf] %v669_v21  ;;  %v673_v23 = vld [vmem:[%s6730_s25 + $0x58] sm:$0xf] }
 0x30f   :  { %672 = vst [vmem:[#allocation2 + $0x50] sm:$0xf] %v671_v22  ;;  %v675_v24 = vld [vmem:[%s6730_s25 + $0x54] sm:$0xf]  ;;  %v677_v25 = vld [vmem:[%s6730_s25 + $0x5c] sm:$0xf] }
 0x310   :  { %674 = vst [vmem:[#allocation2 + $0x54] sm:$0xf] %v673_v23  ;;  %676 = vst [vmem:[#allocation2 + $0x58] sm:$0xf] %v675_v24  ;;  %v679_v26 = vld [vmem:[%s6730_s25 + $0x60] sm:$0xf] }
 0x311   :  { %678 = vst [vmem:[#allocation2 + $0x5c] sm:$0xf] %v677_v25  ;;  %v681_v27 = vld [vmem:[%s6730_s25 + $0x68] sm:$0xf]  ;;  %v683_v28 = vld [vmem:[%s6730_s25 + $0x64] sm:$0xf] }
 0x312   :  { %680 = vst [vmem:[#allocation2 + $0x60] sm:$0xf] %v679_v26  ;;  %682 = vst [vmem:[#allocation2 + $0x64] sm:$0xf] %v681_v27  ;;  %v685_v29 = vld [vmem:[%s6730_s25 + $0x6c] sm:$0xf] }
 0x313   :  { %684 = vst [vmem:[#allocation2 + $0x68] sm:$0xf] %v683_v28  ;;  %v687_v30 = vld [vmem:[%s6730_s25 + $0x70] sm:$0xf]  ;;  %v689_v31 = vld [vmem:[%s6730_s25 + $0x78] sm:$0xf] }
 0x314   :  { %686 = vst [vmem:[#allocation2 + $0x6c] sm:$0xf] %v685_v29  ;;  %688 = vst [vmem:[#allocation2 + $0x70] sm:$0xf] %v687_v30  ;;  %v691_v32 = vld [vmem:[%s6730_s25 + $0x74] sm:$0xf] }
 0x315   :  { %690 = vst [vmem:[#allocation2 + $0x74] sm:$0xf] %v689_v31  ;;  %v693_v33 = vld [vmem:[%s6730_s25 + $0x7c] sm:$0xf]  ;;  %v695_v34 = vld [vmem:[%s6730_s25 + $0x80] sm:$0xf] }
 0x316   :  { %692 = vst [vmem:[#allocation2 + $0x78] sm:$0xf] %v691_v32  ;;  %694 = vst [vmem:[#allocation2 + $0x7c] sm:$0xf] %v693_v33  ;;  %v697_v35 = vld [vmem:[%s6730_s25 + $0x88] sm:$0xf] }
 0x317   :  { %696 = vst [vmem:[#allocation2 + $0x80] sm:$0xf] %v695_v34  ;;  %v699_v36 = vld [vmem:[%s6730_s25 + $0x84] sm:$0xf]  ;;  %v701_v37 = vld [vmem:[%s6730_s25 + $0x8c] sm:$0xf] }
 0x318   :  { %698 = vst [vmem:[#allocation2 + $0x84] sm:$0xf] %v697_v35  ;;  %700 = vst [vmem:[#allocation2 + $0x88] sm:$0xf] %v699_v36  ;;  %v703_v38 = vld [vmem:[%s6730_s25 + $0x90] sm:$0xf] }
 0x319   :  { %702 = vst [vmem:[#allocation2 + $0x8c] sm:$0xf] %v701_v37  ;;  %v705_v39 = vld [vmem:[%s6730_s25 + $0x98] sm:$0xf]  ;;  %v707_v40 = vld [vmem:[%s6730_s25 + $0x94] sm:$0xf] }
 0x31a   :  { %704 = vst [vmem:[#allocation2 + $0x90] sm:$0xf] %v703_v38  ;;  %706 = vst [vmem:[#allocation2 + $0x94] sm:$0xf] %v705_v39  ;;  %v709_v41 = vld [vmem:[%s6730_s25 + $0x9c] sm:$0xf] }
 0x31b   :  { %708 = vst [vmem:[#allocation2 + $0x98] sm:$0xf] %v707_v40  ;;  %v711_v42 = vld [vmem:[%s6730_s25 + $0xa0] sm:$0xf]  ;;  %v713_v43 = vld [vmem:[%s6730_s25 + $0xa8] sm:$0xf] }
 0x31c   :  { %710 = vst [vmem:[#allocation2 + $0x9c] sm:$0xf] %v709_v41  ;;  %712 = vst [vmem:[#allocation2 + $0xa0] sm:$0xf] %v711_v42  ;;  %v715_v44 = vld [vmem:[%s6730_s25 + $0xa4] sm:$0xf] }
 0x31d   :  { %714 = vst [vmem:[#allocation2 + $0xa4] sm:$0xf] %v713_v43  ;;  %v717_v45 = vld [vmem:[%s6730_s25 + $0xac] sm:$0xf]  ;;  %v719_v46 = vld [vmem:[%s6730_s25 + $0xb0] sm:$0xf] }
 0x31e   :  { %716 = vst [vmem:[#allocation2 + $0xa8] sm:$0xf] %v715_v44  ;;  %718 = vst [vmem:[#allocation2 + $0xac] sm:$0xf] %v717_v45  ;;  %v721_v47 = vld [vmem:[%s6730_s25 + $0xb8] sm:$0xf] }
 0x31f   :  { %720 = vst [vmem:[#allocation2 + $0xb0] sm:$0xf] %v719_v46  ;;  %v723_v48 = vld [vmem:[%s6730_s25 + $0xb4] sm:$0xf]  ;;  %v725_v49 = vld [vmem:[%s6730_s25 + $0xbc] sm:$0xf] }
 0x320   :  { %722 = vst [vmem:[#allocation2 + $0xb4] sm:$0xf] %v721_v47  ;;  %724 = vst [vmem:[#allocation2 + $0xb8] sm:$0xf] %v723_v48  ;;  %v727_v50 = vld [vmem:[%s6730_s25 + $0xc0] sm:$0xf] }
 0x321   :  { %726 = vst [vmem:[#allocation2 + $0xbc] sm:$0xf] %v725_v49  ;;  %v729_v51 = vld [vmem:[%s6730_s25 + $0xc8] sm:$0xf]  ;;  %v731_v52 = vld [vmem:[%s6730_s25 + $0xc4] sm:$0xf] }
 0x322   :  { %728 = vst [vmem:[#allocation2 + $0xc0] sm:$0xf] %v727_v50  ;;  %730 = vst [vmem:[#allocation2 + $0xc4] sm:$0xf] %v729_v51  ;;  %v733_v53 = vld [vmem:[%s6730_s25 + $0xcc] sm:$0xf] }
 0x323   :  { %732 = vst [vmem:[#allocation2 + $0xc8] sm:$0xf] %v731_v52  ;;  %v735_v54 = vld [vmem:[%s6730_s25 + $0xd0] sm:$0xf]  ;;  %v737_v55 = vld [vmem:[%s6730_s25 + $0xd8] sm:$0xf] }
 0x324   :  { %734 = vst [vmem:[#allocation2 + $0xcc] sm:$0xf] %v733_v53  ;;  %736 = vst [vmem:[#allocation2 + $0xd0] sm:$0xf] %v735_v54  ;;  %v739_v56 = vld [vmem:[%s6730_s25 + $0xd4] sm:$0xf] }
 0x325   :  { %738 = vst [vmem:[#allocation2 + $0xd4] sm:$0xf] %v737_v55  ;;  %v741_v57 = vld [vmem:[%s6730_s25 + $0xdc] sm:$0xf]  ;;  %v743_v58 = vld [vmem:[%s6730_s25 + $0xe0] sm:$0xf] }
 0x326   :  { %740 = vst [vmem:[#allocation2 + $0xd8] sm:$0xf] %v739_v56  ;;  %742 = vst [vmem:[#allocation2 + $0xdc] sm:$0xf] %v741_v57  ;;  %v745_v59 = vld [vmem:[%s6730_s25 + $0xe8] sm:$0xf] }
 0x327   :  { %744 = vst [vmem:[#allocation2 + $0xe0] sm:$0xf] %v743_v58  ;;  %v747_v60 = vld [vmem:[%s6730_s25 + $0xe4] sm:$0xf]  ;;  %v749_v61 = vld [vmem:[%s6730_s25 + $0xec] sm:$0xf] }
 0x328   :  { %746 = vst [vmem:[#allocation2 + $0xe4] sm:$0xf] %v745_v59  ;;  %748 = vst [vmem:[#allocation2 + $0xe8] sm:$0xf] %v747_v60  ;;  %v751_v62 = vld [vmem:[%s6730_s25 + $0xf0] sm:$0xf] }
 0x329   :  { %750 = vst [vmem:[#allocation2 + $0xec] sm:$0xf] %v749_v61  ;;  %v753_v63 = vld [vmem:[%s6730_s25 + $0xf8] sm:$0xf]  ;;  %v755_v0 = vld [vmem:[%s6730_s25 + $0xf4] sm:$0xf] }
 0x32a   :  { %752 = vst [vmem:[#allocation2 + $0xf0] sm:$0xf] %v751_v62  ;;  %754 = vst [vmem:[#allocation2 + $0xf4] sm:$0xf] %v753_v63  ;;  %v757_v1 = vld [vmem:[%s6730_s25 + $0xfc] sm:$0xf] }
 0x32b   :  { %756 = vst [vmem:[#allocation2 + $0xf8] sm:$0xf] %v755_v0  ;;  %758 = vst [vmem:[#allocation2 + $0xfc] sm:$0xf] %v757_v1 }
 0x32c   :  { %917 = vsyncadd [#allocation8], 4096  ;;  %s6731_s7 = sld [smem:[#allocation109_spill]]  ;;  %s6732_s10 = sld [smem:[#allocation99_spill]] }
 0x32d   :  { %s6733_s11 = sld [smem:[#allocation95_spill]] }
 0x332   :  { %v6227_v2 = vld [vmem:[%s6731_s7] sm:$0xff]  ;;  %v6230_v3 = vld [vmem:[%s6731_s7 + $0x8] sm:$0xff]  ;;  %v6233_v4 = vld [vmem:[%s6731_s7 + $0x10] sm:$0xff] }
 0x333   :  { %v6236_v5 = vld [vmem:[%s6731_s7 + $0x18] sm:$0xff]  ;;  %v6239_v6 = vld [vmem:[%s6731_s7 + $0x20] sm:$0xff]  ;;  %v6242_v7 = vld [vmem:[%s6731_s7 + $0x28] sm:$0xff] }
 0x334   :  { %v6245_v8 = vld [vmem:[%s6731_s7 + $0x30] sm:$0xff]  ;;  %v6248_v9 = vld [vmem:[%s6731_s7 + $0x38] sm:$0xff]  ;;  %v6251_v10 = vld [vmem:[%s6731_s7 + $0x40] sm:$0xff] }
 0x335   :  { %v6254_v11 = vld [vmem:[%s6731_s7 + $0x48] sm:$0xff]  ;;  %v6257_v12 = vld [vmem:[%s6731_s7 + $0x50] sm:$0xff]  ;;  %v6260_v13 = vld [vmem:[%s6731_s7 + $0x58] sm:$0xff] }
 0x336   :  { %v6263_v14 = vld [vmem:[%s6731_s7 + $0x60] sm:$0xff]  ;;  %v6266_v15 = vld [vmem:[%s6731_s7 + $0x68] sm:$0xff]  ;;  %v6269_v16 = vld [vmem:[%s6731_s7 + $0x70] sm:$0xff] }
 0x337   :  { %v6272_v17 = vld [vmem:[%s6731_s7 + $0x78] sm:$0xff]  ;;  %v4606_v18 = vld [vmem:[%s6732_s10 + $0x40] sm:$0xff]   ;;  %v4608_v20 = vld [vmem:[%s6732_s10 + $0x48] sm:$0xff]  }
 0x338   :  { %v4607_v19 = vld [vmem:[%s6732_s10] sm:$0xff]   ;;  %3913 = vmatprep.subr.bf16.mxu0 %v4606_v18  ;;  %v4609_v21 = vld [vmem:[%s6732_s10 + $0x8] sm:$0xff]   ;;  %v4610_v22 = vld [vmem:[%s6732_s10 + $0x50] sm:$0xff]  }
 0x339   :  { %3914 = vmatpush3.bf16.msra.mxu0 %v4607_v19  ;;  %v4611_v23 = vld [vmem:[%s6732_s10 + $0x10] sm:$0xff]   ;;  %v4612_v24 = vld [vmem:[%s6732_s10 + $0x58] sm:$0xff]   ;;  %v4614_v26 = vld [vmem:[%s6732_s10 + $0x60] sm:$0xff]  }
 0x33a   :  { %3915 = vmatprep.subr.bf16.mxu0 %v4608_v20  ;;  %v4613_v25 = vld [vmem:[%s6732_s10 + $0x18] sm:$0xff]   ;;  %v4615_v27 = vld [vmem:[%s6732_s10 + $0x20] sm:$0xff]   ;;  %v4616_v28 = vld [vmem:[%s6732_s10 + $0x68] sm:$0xff]  }
 0x33b   :  { %v1040_v29 = vld [vmem:[%s6733_s11 + $0x8] sm:$0xff]  ;;  %v1042_v30 = vld [vmem:[%s6733_s11 + $0x18] sm:$0xff]  ;;  %v4618_v33 = vld [vmem:[%s6732_s10 + $0x70] sm:$0xff]  }
 0x33c   :  { %v4617_v31 = vld [vmem:[%s6732_s10 + $0x28] sm:$0xff]   ;;  %v1044_v32 = vpack.c.bf16 %v1042_v30, %v1040_v29  ;;  %v4619_v34 = vld [vmem:[%s6732_s10 + $0x30] sm:$0xff]   ;;  %v4620_v35 = vld [vmem:[%s6732_s10 + $0x78] sm:$0xff]  }
 0x33d   :  { %3916 = vmatpush3.bf16.msra.mxu0 %v4609_v21  ;;  %v4621_v36 = vld [vmem:[%s6732_s10 + $0x38] sm:$0xff]   ;;  %v1039_v37 = vld [vmem:[%s6733_s11] sm:$0xff]  ;;  %v1041_v38 = vld [vmem:[%s6733_s11 + $0x10] sm:$0xff] }
 0x33e   :  { %3917 = vmatprep.subr.bf16.mxu0 %v4610_v22  ;;  %1212 = vmatprep.mubr.bf16.mxu0 %v1044_v32  ;;  %v1043_v39 = vpack.c.bf16 %v1041_v38, %v1039_v37 }
 0x341   :  { %3918 = vmatpush3.bf16.msra.mxu0 %v4611_v23 }
 0x342   :  { %3919 = vmatprep.subr.bf16.mxu0 %v4612_v24 }
 0x345   :  { %3920 = vmatpush3.bf16.msra.mxu0 %v4613_v25 }
 0x346   :  { %3921 = vmatprep.subr.bf16.mxu0 %v4614_v26 }
 0x349   :  { %3922 = vmatpush3.bf16.msra.mxu0 %v4615_v27 }
 0x34a   :  { %3923 = vmatprep.subr.bf16.mxu0 %v4616_v28 }
 0x34d   :  { %3924 = vmatpush3.bf16.msra.mxu0 %v4617_v31 }
 0x34e   :  { %3925 = vmatprep.subr.bf16.mxu0 %v4618_v33 }
 0x351   :  { %3926 = vmatpush3.bf16.msra.mxu0 %v4619_v34 }
 0x352   :  { %3927 = vmatprep.subr.bf16.mxu0 %v4620_v35 }
 0x355   :  { %3928 = vmatpush3.bf16.msra.mxu0 %v4621_v36 }
 0x358   :  { %1213 = vmatmul.mubr.bf16.vlgmr.msra.gmra.mrb[0].mxu0 %v1043_v39 }
 0x359   :  { %990 = vsyncadd [#allocation8 + $0x1], 2048  ;;  %v3750_v41 = vld [vmem:[#allocation11] ss:$0 sm:$0xff]  ;;  %s6734_s21 = sld [smem:[#allocation101_spill]]  ;;  %s6735_s6 = sld [smem:[#allocation102_spill]] }
 0x35a   :  { %v3769_v23 = vld [vmem:[#allocation13] ss:$0 sm:$0xff]  ;;  %v5669_v30 = vmov 0   ;;  %v3770_v31 = vld [vmem:[#allocation9] ss:$0 sm:$0xff]  ;;  %vm1286_vm0 = vcmask 7168  }
 0x35b   :  { %4605 = vset.pattern.permute.xlu1 %v5669_v30  ;;  %4604 = vset.pattern.permute.xlu0 %v5669_v30  ;;  %s6736_s27 = sld [smem:[#allocation98_spill]]  ;;  %vm5671_vm1 = vmmov 0   ;;  %vm1315_vm2 = vcmask 130048   ;;  %s6737_s14 = sld [smem:[#allocation97_spill]]  ;;  %vm2074_vm3 = vcmask 523264  }
 0x35c   :  { %s6738_s29 = sld [smem:[#allocation110_spill]]  ;;  %s5673_s2 = smov [#allocation4]  }
 0x35d   :  { %s999_s16 = sshll.u32 %s5673_s2, 4  ;;  %s5674_s18 = smov [#allocation5]   ;;  %s1000_s16 = int_to_ptr.vmem [resolvable:$true] %s999_s16 }
 0x35e   :  { %s1011_s9 = sshll.u32 %s5674_s18, 4  ;;  %s1012_s9 = int_to_ptr.vmem [resolvable:$true] %s1011_s9 }
 0x35f   :  { %v3767_v0 = vld [vmem:[%s6734_s21] ss:$0 sm:$0xff] }
 0x360   :  { %v3768_v18 = vld [vmem:[%s6735_s6] ss:$0 sm:$0xff] }
 0x362   :  { %s5444_s5 = scalar_lea.hbm %s6738_s29, 1024 }
 0x363   :  { %p5445_p4 = scmp.ne.s32.totalorder %s6738_s29, %s5444_s5  ;;  %p5448_p5 = scmp.lt.u32.totalorder %s5444_s5, %s6738_s29 }
 0x365   :  { %p5450_p6 = pnand %p5448_p5, %p5445_p4 }
 0x42b   :  { %v3929_v40 = vpop.f32.mrb[0].mxu0 }
 0x42c   :  { %v3930_v42 = vpop.f32.mrb[1].mxu0 }
 0x42d   :  { %v3931_v43 = vadd.f32 %v3930_v42, %v3929_v40  ;;  %v3932_v44 = vpop.f32.mrb[2].mxu0 }
 0x42e   :  { %v3933_v45 = vpop.f32.mrb[3].mxu0 }
 0x42f   :  { %v6294_v46 = vadd.f32 %v3931_v43, %v3750_v41  ;;  %v3934_v47 = vadd.f32 %v3933_v45, %v3932_v44 }
 0x431   :  { %1221 = vadd.xlane.f32.xlu0 %v6294_v46  ;;  %v6297_v48 = vadd.f32 %v3934_v47, %v3750_v41 }
 0x435   :  { %1223 = vadd.xlane.f32.xlu0 %v6297_v48 }
 0x4be   :  { %v1222_v49 = vpop.xlane.xlu0 %1221 }
 0x4bf   :  { %v1226_v50 = vmul.f32 0.0078125, %v1222_v49 }
 0x4c1   :  { %v1228_v51 = vsub.f32 %v6294_v46, %v1226_v50 }
 0x4c2   :  { %v1224_v52 = vpop.xlane.xlu0 %1223 }
 0x4c3   :  { %v1227_v53 = vmul.f32 0.0078125, %v1224_v52  ;;  %v1230_v54 = vmul.f32 %v1228_v51, %v1228_v51 }
 0x4c5   :  { %v1229_v55 = vsub.f32 %v6297_v48, %v1227_v53  ;;  %1232 = vadd.xlane.f32.xlu1 %v1230_v54  ;;  %v5670_v54 = vmov 0.0|0.0  }
 0x4c6   :  { %4496 = vmatprep.subr.bf16.mxu1 %v5670_v54 }
 0x4c7   :  { %v1231_v56 = vmul.f32 %v1229_v55, %v1229_v55 }
 0x4c9   :  { %1234 = vadd.xlane.f32.xlu1 %v1231_v56 }
 0x552   :  { %v1233_v57 = vpop.xlane.xlu1 %1232 }
 0x553   :  { %v1236_v58 = vmul.f32 0.0078125, %v1233_v57 }
 0x555   :  { %v1238_v59 = vadd.f32 1e-05, %v1236_v58 }
 0x556   :  { %v1235_v60 = vpop.xlane.xlu1 %1234 }
 0x557   :  { %4666 = vrsqrt.f32 %v1238_v59  ;;  %v1237_v61 = vmul.f32 0.0078125, %v1235_v60 }
 0x559   :  { %v1239_v62 = vadd.f32 1e-05, %v1237_v61  ;;  %v1302_v61 = vld [vmem:[%s6736_s27] sm:$0xff] }
 0x55b   :  { %4668 = vrsqrt.f32 %v1239_v62  ;;  %v4622_v62 = vld [vmem:[#allocation15] sm:$0xff]  }
 0x561   :  { %v4667_v63 = vpop.eup %4666 }
 0x562   :  { %v1242_v1 = vmul.f32 %v4667_v63, %v1228_v51  ;;  %v4625_v63 = vld [vmem:[#allocation15 + $0x18] sm:$0xff]  }
 0x564   :  { %v1251_v19 = vmul.f32 %v3767_v0, %v1242_v1 }
 0x565   :  { %v4669_v20 = vpop.eup %4668 }
 0x566   :  { %v1260_v21 = vadd.f32 %v3768_v18, %v1251_v19  ;;  %v1243_v22 = vmul.f32 %v4669_v20, %v1229_v55  ;;  %v5672_v55 = vmov 0.0  }
 0x567   :  { %4126 = vmatprep.mubr.msk.f32.mxu1 %vm5671_vm1, %v5672_v55  ;;  %4156 = vmatprep.subr.bf16.mxu0 %v5672_v55 }
 0x568   :  { %v1262_v24 = vmax.f32 %v1260_v21, 0.0  ;;  %v1252_v25 = vmul.f32 %v3767_v0, %v1243_v22  ;;  %4172 = vmatprep.mubr.msk.bf16.mxu0 %vm5671_vm1, %v5672_v55  ;;  %v4626_v21 = vld [vmem:[#allocation15 + $0x20] sm:$0xff]   ;;  %v4627_v22 = vld [vmem:[#allocation15 + $0x28] sm:$0xff]  }
 0x56a   :  { %v1271_v26 = vmul.f32 %v3769_v23, %v1262_v24  ;;  %v1261_v27 = vadd.f32 %v3768_v18, %v1252_v25  ;;  %v4629_v24 = vld [vmem:[#allocation15 + $0x38] sm:$0xff]   ;;  %v4630_v25 = vld [vmem:[#allocation18] sm:$0xff]  }
 0x56b   :  { %4157 = vmatpush3.bf16.msra.mxu0 %v4630_v25  ;;  %v4650_v25 = vld [vmem:[#allocation36 + $0x20] sm:$0xff]  }
 0x56c   :  { %1273 = vadd.xlane.f32.xlu0 %v1271_v26  ;;  %v1263_v28 = vmax.f32 %v1261_v27, 0.0  ;;  %v4631_v26 = vld [vmem:[#allocation18 + $0x8] sm:$0xff]   ;;  %4158 = vmatprep.subr.bf16.mxu0 %v5672_v55  ;;  %v4632_v27 = vld [vmem:[#allocation18 + $0x10] sm:$0xff]  }
 0x56e   :  { %v1272_v29 = vmul.f32 %v3769_v23, %v1263_v28  ;;  %v4628_v23 = vld [vmem:[#allocation15 + $0x30] sm:$0xff]   ;;  %v4633_v28 = vld [vmem:[#allocation18 + $0x18] sm:$0xff]  }
 0x56f   :  { %4159 = vmatpush3.bf16.msra.mxu0 %v4631_v26  ;;  %v4651_v26 = vld [vmem:[#allocation36 + $0x28] sm:$0xff]  }
 0x570   :  { %1275 = vadd.xlane.f32.xlu1 %v1272_v29  ;;  %4160 = vmatprep.subr.bf16.mxu0 %v5672_v55  ;;  %v4634_v29 = vld [vmem:[#allocation18 + $0x20] sm:$0xff]  }
 0x573   :  { %4161 = vmatpush3.bf16.msra.mxu0 %v4632_v27  ;;  %v4652_v27 = vld [vmem:[#allocation36 + $0x30] sm:$0xff]  }
 0x574   :  { %4162 = vmatprep.subr.bf16.mxu0 %v5672_v55 }
 0x577   :  { %4163 = vmatpush3.bf16.msra.mxu0 %v4633_v28  ;;  %v4653_v28 = vld [vmem:[#allocation36 + $0x38] sm:$0xff]  }
 0x578   :  { %4164 = vmatprep.subr.bf16.mxu0 %v5672_v55 }
 0x57b   :  { %4165 = vmatpush3.bf16.msra.mxu0 %v4634_v29  ;;  %v1920_v29 = vld [vmem:[%s6737_s14] sm:$0xff] }
 0x57c   :  { %4166 = vmatprep.subr.bf16.mxu0 %v5672_v55 }
 0x5f9   :  { %v1274_v32 = vpop.xlane.xlu0 %1273 }
 0x5fa   :  { %v1284_v33 = vadd.f32 %v3770_v31, %v1274_v32 }
 0x5fc   :  { %v1287_v36 = vsel %vm1286_vm0, %v1284_v33, -inf }
 0x5fd   :  { %v1276_v34 = vpop.xlane.xlu1 %1275 }
 0x5fe   :  { %v1285_v35 = vadd.f32 %v3770_v31, %v1276_v34  ;;  %v4635_v31 = vld [vmem:[#allocation18 + $0x28] sm:$0xff]  }
 0x5ff   :  { %4167 = vmatpush3.bf16.msra.mxu0 %v4635_v31  ;;  %v1921_v31 = vpack.c.bf16 %v1920_v29, %v1920_v29 }
 0x600   :  { %v1288_v37 = vsel %vm1286_vm0, %v1285_v35, -inf  ;;  %4168 = vmatprep.subr.bf16.mxu0 %v5672_v55 }
 0x601   :  { %v1289_v38 = vmax.f32 %v1287_v36, %v1288_v37  ;;  %v4636_v36 = vld [vmem:[#allocation18 + $0x30] sm:$0xff]   ;;  %v4637_v37 = vld [vmem:[#allocation18 + $0x38] sm:$0xff]  }
 0x603   :  { %v1290_v39 = vrot.slane %v1289_v38, 4  ;;  %4169 = vmatpush3.bf16.msra.mxu0 %v4636_v36  ;;  %v4664_v36 = vld [vmem:[#allocation39 + $0x10] sm:$0xff]  }
 0x604   :  { %4170 = vmatprep.subr.bf16.mxu0 %v5672_v55 }
 0x605   :  { %v1291_v40 = vmax.f32 %v1289_v38, %v1290_v39  ;;  %v4638_v38 = vld [vmem:[#allocation21] sm:$0xff]   ;;  %v4639_v39 = vld [vmem:[#allocation21 + $0x8] sm:$0xff]  }
 0x607   :  { %v1292_v41 = vrot.slane %v1291_v40, 2  ;;  %4171 = vmatpush3.bf16.msra.mxu0 %v4637_v37  ;;  %v4665_v37 = vld [vmem:[#allocation39 + $0x18] sm:$0xff]  }
 0x608   :  { %4196 = vmatprep.subr.bf16.mxu0 %v5672_v55 }
 0x609   :  { %v1293_v42 = vmax.f32 %v1291_v40, %v1292_v41  ;;  %v4640_v40 = vld [vmem:[#allocation21 + $0x10] sm:$0xff]   ;;  %v4641_v41 = vld [vmem:[#allocation21 + $0x18] sm:$0xff]  }
 0x60b   :  { %v1294_v43 = vrot.slane %v1293_v42, 1 }
 0x60d   :  { %v1295_v44 = vmax.f32 %v1293_v42, %v1294_v43  ;;  %v4642_v42 = vld [vmem:[#allocation21 + $0x20] sm:$0xff]   ;;  %v4643_v43 = vld [vmem:[#allocation21 + $0x28] sm:$0xff]  }
 0x60f   :  { %v1296_v45 = vsub.f32 %v1284_v33, %v1295_v44  ;;  %v1297_v47 = vsub.f32 %v1285_v35, %v1295_v44  ;;  %v4644_v44 = vld [vmem:[#allocation21 + $0x30] sm:$0xff]  }
 0x611   :  { %v1298_v49 = vmul.f32 1.442695, %v1296_v45  ;;  %v1300_v50 = vmul.f32 1.442695, %v1297_v47  ;;  %v3773_v45 = vld [vmem:[#allocation16] ss:$0 sm:$0xff] }
 0x613   :  { %4670 = vpow2.f32 %v1298_v49 }
 0x614   :  { %4672 = vpow2.f32 %v1300_v50 }
 0x61d   :  { %v4671_v51 = vpop.eup %4670 }
 0x61e   :  { %v4673_v52 = vpop.eup %4672  ;;  %1305 = vperm.xlu0 %4604, %v4671_v51  }
 0x61f   :  { %1310 = vperm.xlu1 %4605, %v4673_v52   ;;  %v4500_v53 = vpack.c.bf16 %v4673_v52, %v4671_v51 }
 0x69d   :  { %v1306_v56 = vpop.permute.xlu0 %1305 }
 0x69e   :  { %v1311_v57 = vpop.permute.xlu1 %1310  ;;  %v1313_v58 = vmul.f32 %v1306_v56, %v6294_v46  ;;  %v4623_v46 = vld [vmem:[#allocation15 + $0x8] sm:$0xff]   ;;  %v4645_v56 = vld [vmem:[#allocation21 + $0x38] sm:$0xff]  }
 0x69f   :  { %v1314_v59 = vmul.f32 %v1311_v57, %v6297_v48  ;;  %v4624_v48 = vld [vmem:[#allocation15 + $0x10] sm:$0xff]   ;;  %v4654_v57 = vld [vmem:[#allocation24] sm:$0xff]  }
 0x6a1   :  { %v4497_v60 = vpack.c.bf16 %v1314_v59, %v1313_v58  ;;  %v4655_v58 = vld [vmem:[#allocation24 + $0x8] sm:$0xff]   ;;  %v4656_v59 = vld [vmem:[#allocation24 + $0x10] sm:$0xff]  }
 0x6a3   :  { %4498 = vmatpush3.bf16.msra.mxu1 %v4497_v60  ;;  %v4657_v60 = vld [vmem:[#allocation24 + $0x18] sm:$0xff]  }
 0x6a4   :  { %4499 = vmatprep.subr.bf16.mxu1 %v5670_v54 }
 0x6a6   :  { %4127 = vmatmul.mubr.msk.f32.vlgmr.msra.gmra.mrb[0].mxu1 %vm1315_vm2, %v1302_v61 }
 0x6a7   :  { %4501 = vmatpush3.bf16.msra.mxu1 %v4500_v53  ;;  %4133 = vmatprep.mubr.msk.f32.mxu1 %vm5671_vm1, %v5672_v55 }
 0x6a8   :  { %4136 = vmatprep.subr.bf16.mxu1 %v5672_v55 }
 0x6aa   :  { %4134 = vmatmul.mubr.msk.f32.vlgmr.msra.gmra.mrb[2].mxu1 %vm1315_vm2, %v1302_v61  ;;  %v4658_v61 = vld [vmem:[#allocation24 + $0x20] sm:$0xff]  }
 0x6ab   :  { %4152 = vmatprep.mubr.msk.bf16.mxu1 %vm5671_vm1, %v5672_v55  ;;  %4137 = vmatpush3.bf16.msra.mxu1 %v4622_v62  ;;  %v4659_v62 = vld [vmem:[#allocation24 + $0x28] sm:$0xff]  }
 0x6ac   :  { %4138 = vmatprep.subr.bf16.mxu1 %v5672_v55 }
 0x6af   :  { %4139 = vmatpush3.bf16.msra.mxu1 %v4623_v46  ;;  %v3782_v46 = vld [vmem:[#allocation19] ss:$0 sm:$0xff] }
 0x6b0   :  { %4140 = vmatprep.subr.bf16.mxu1 %v5672_v55 }
 0x6b3   :  { %4141 = vmatpush3.bf16.msra.mxu1 %v4624_v48 }
 0x6b4   :  { %4142 = vmatprep.subr.bf16.mxu1 %v5672_v55 }
 0x6b7   :  { %4143 = vmatpush3.bf16.msra.mxu1 %v4625_v63 }
 0x6b8   :  { %4144 = vmatprep.subr.bf16.mxu1 %v5672_v55 }
 0x6bb   :  { %4145 = vmatpush3.bf16.msra.mxu1 %v4626_v21 }
 0x6bc   :  { %4146 = vmatprep.subr.bf16.mxu1 %v5672_v55 }
 0x6bf   :  { %4147 = vmatpush3.bf16.msra.mxu1 %v4627_v22  ;;  %v4647_v22 = vld [vmem:[#allocation36 + $0x8] sm:$0xff]  }
 0x6c0   :  { %4148 = vmatprep.subr.bf16.mxu1 %v5672_v55 }
 0x6c3   :  { %4149 = vmatpush3.bf16.msra.mxu1 %v4628_v23  ;;  %v4648_v23 = vld [vmem:[#allocation36 + $0x10] sm:$0xff]  }
 0x6c4   :  { %4150 = vmatprep.subr.bf16.mxu1 %v5672_v55 }
 0x6c7   :  { %4151 = vmatpush3.bf16.msra.mxu1 %v4629_v24  ;;  %v4649_v24 = vld [vmem:[#allocation36 + $0x18] sm:$0xff]  }
 0x6c8   :  { %4176 = vmatprep.subr.bf16.mxu1 %v5672_v55 }
 0x779   :  { %v1385_v0 = vpop.f32.mrb[0].mxu1 }
 0x77a   :  { %v4128_v1 = vpop.f32.mrb[1].mxu1 }
 0x77d   :  { %v1455_v18 = vpop.f32.mrb[2].mxu1 }
 0x77e   :  { %v1459_v19 = vmax.f32 %v1455_v18, 1e-30  ;;  %v4135_v20 = vpop.f32.mrb[3].mxu1 }
 0x77f   :  { %v4646_v20 = vld [vmem:[#allocation36] sm:$0xff]  }
 0x780   :  { %1462 = vperm.xlu1 %4605, %v1459_v19  }
 0x7ff   :  { %v1463_v32 = vpop.permute.xlu1 %1462 }
 0x800   :  { %4674 = vrcp.f32 %v1463_v32  ;;  %v4660_v32 = vld [vmem:[#allocation24 + $0x30] sm:$0xff]  }
 0x80a   :  { %v4675_v33 = vpop.eup %4674 }
 0x80b   :  { %v1466_v34 = vmul.f32 %v4675_v33, %v1385_v0  ;;  %v4661_v33 = vld [vmem:[#allocation24 + $0x38] sm:$0xff]  }
 0x80d   :  { %v1467_v35 = vpack.c.bf16 %v1466_v34, %v1466_v34  ;;  %v4662_v34 = vld [vmem:[#allocation39] sm:$0xff]  }
 0x80f   :  { %4153 = vmatmul.mubr.bf16.vlgmr.msra.gmra.mrb[4].mxu1 %v1467_v35  ;;  %v4663_v35 = vld [vmem:[#allocation39 + $0x8] sm:$0xff]  }
 0x810   :  { %4192 = vmatprep.mubr.msk.bf16.mxu1 %vm5671_vm1, %v5672_v55  ;;  %4177 = vmatpush3.bf16.msra.mxu1 %v4638_v38  ;;  %v3791_v38 = vld [vmem:[#allocation22] ss:$0 sm:$0xff] }
 0x811   :  { %4178 = vmatprep.subr.bf16.mxu1 %v5672_v55 }
 0x814   :  { %4179 = vmatpush3.bf16.msra.mxu1 %v4639_v39 }
 0x815   :  { %4180 = vmatprep.subr.bf16.mxu1 %v5672_v55 }
 0x818   :  { %4181 = vmatpush3.bf16.msra.mxu1 %v4640_v40 }
 0x819   :  { %4182 = vmatprep.subr.bf16.mxu1 %v5672_v55 }
 0x81c   :  { %4183 = vmatpush3.bf16.msra.mxu1 %v4641_v41 }
 0x81d   :  { %4184 = vmatprep.subr.bf16.mxu1 %v5672_v55 }
 0x820   :  { %4185 = vmatpush3.bf16.msra.mxu1 %v4642_v42 }
 0x821   :  { %4186 = vmatprep.subr.bf16.mxu1 %v5672_v55 }
 0x824   :  { %4187 = vmatpush3.bf16.msra.mxu1 %v4643_v43 }
 0x825   :  { %4188 = vmatprep.subr.bf16.mxu1 %v5672_v55 }
 0x828   :  { %4189 = vmatpush3.bf16.msra.mxu1 %v4644_v44 }
 0x829   :  { %4190 = vmatprep.subr.bf16.mxu1 %v5672_v55 }
 0x82c   :  { %4191 = vmatpush3.bf16.msra.mxu1 %v4645_v56 }
 0x82d   :  { %4216 = vmatprep.subr.bf16.mxu1 %v5672_v55 }
 0x8e2   :  { %v1573_v47 = vpop.f32.mrb[4].mxu1 }
 0x8e3   :  { %v1574_v49 = vadd.f32 %v3773_v45, %v1573_v47  ;;  %v4154_v50 = vpop.f32.mrb[5].mxu1 }
 0x8e4   :  { %v1576_v51 = vpop.f32.mrb[6].mxu1 }
 0x8e5   :  { %v6346_v52 = vmax.f32 %v1574_v49, 0.0  ;;  %v4155_v53 = vpop.f32.mrb[7].mxu1  ;;  %v3809_v49 = vld [vmem:[#allocation37] ss:$0 sm:$0xff] }
 0x8e7   :  { %v1580_v54 = vpack.c.bf16 %v6346_v52, %v6346_v52 }
 0x8e9   :  { %4173 = vmatmul.mubr.bf16.vlgmr.msra.gmra.mrb[4].mxu0 %v1580_v54 }
 0x8ea   :  { %4212 = vmatprep.mubr.msk.bf16.mxu0 %vm5671_vm1, %v5672_v55  ;;  %4197 = vmatpush3.bf16.msra.mxu0 %v4654_v57 }
 0x8eb   :  { %4198 = vmatprep.subr.bf16.mxu0 %v5672_v55 }
 0x8ee   :  { %4199 = vmatpush3.bf16.msra.mxu0 %v4655_v58 }
 0x8ef   :  { %4200 = vmatprep.subr.bf16.mxu0 %v5672_v55 }
 0x8f2   :  { %4201 = vmatpush3.bf16.msra.mxu0 %v4656_v59 }
 0x8f3   :  { %4202 = vmatprep.subr.bf16.mxu0 %v5672_v55 }
 0x8f6   :  { %4203 = vmatpush3.bf16.msra.mxu0 %v4657_v60 }
 0x8f7   :  { %4204 = vmatprep.subr.bf16.mxu0 %v5672_v55 }
 0x8fa   :  { %4205 = vmatpush3.bf16.msra.mxu0 %v4658_v61 }
 0x8fb   :  { %4206 = vmatprep.subr.bf16.mxu0 %v5672_v55 }
 0x8fe   :  { %4207 = vmatpush3.bf16.msra.mxu0 %v4659_v62 }
 0x8ff   :  { %4208 = vmatprep.subr.bf16.mxu0 %v5672_v55 }
 0x902   :  { %4209 = vmatpush3.bf16.msra.mxu0 %v4660_v32 }
 0x903   :  { %4210 = vmatprep.subr.bf16.mxu0 %v5672_v55 }
 0x906   :  { %4211 = vmatpush3.bf16.msra.mxu0 %v4661_v33 }
 0x9bc   :  { %v1686_v48 = vpop.f32.mrb[4].mxu0 }
 0x9bd   :  { %v1687_v63 = vadd.f32 %v3782_v46, %v1686_v48  ;;  %v4174_v0 = vpop.f32.mrb[5].mxu0 }
 0x9be   :  { %v1689_v1 = vpop.f32.mrb[6].mxu0 }
 0x9bf   :  { %v1692_v18 = vmax.f32 %v1687_v63, 0.0  ;;  %v4175_v19 = vpop.f32.mrb[7].mxu0 }
 0x9c1   :  { %v1693_v21 = vpack.c.bf16 %v1692_v18, %v1692_v18 }
 0x9c3   :  { %4193 = vmatmul.mubr.bf16.vlgmr.msra.gmra.mrb[8].mxu1 %v1693_v21 }
 0x9c4   :  { %4217 = vmatpush3.bf16.msra.mxu1 %v4646_v20  ;;  %4232 = vmatprep.mubr.msk.bf16.mxu1 %vm5671_vm1, %v5672_v55 }
 0x9c5   :  { %4218 = vmatprep.subr.bf16.mxu1 %v5672_v55 }
 0x9c8   :  { %4219 = vmatpush3.bf16.msra.mxu1 %v4647_v22 }
 0x9c9   :  { %4220 = vmatprep.subr.bf16.mxu1 %v5672_v55 }
 0x9cc   :  { %4221 = vmatpush3.bf16.msra.mxu1 %v4648_v23 }
 0x9cd   :  { %4222 = vmatprep.subr.bf16.mxu1 %v5672_v55 }
 0x9d0   :  { %4223 = vmatpush3.bf16.msra.mxu1 %v4649_v24 }
 0x9d1   :  { %4224 = vmatprep.subr.bf16.mxu1 %v5672_v55 }
 0x9d4   :  { %4225 = vmatpush3.bf16.msra.mxu1 %v4650_v25 }
 0x9d5   :  { %4226 = vmatprep.subr.bf16.mxu1 %v5672_v55 }
 0x9d8   :  { %4227 = vmatpush3.bf16.msra.mxu1 %v4651_v26 }
 0x9d9   :  { %4228 = vmatprep.subr.bf16.mxu1 %v5672_v55 }
 0x9dc   :  { %4229 = vmatpush3.bf16.msra.mxu1 %v4652_v27 }
 0x9dd   :  { %4230 = vmatprep.subr.bf16.mxu1 %v5672_v55 }
 0x9e0   :  { %4231 = vmatpush3.bf16.msra.mxu1 %v4653_v28 }
 0x9e1   :  { %4236 = vmatprep.subr.bf16.mxu1 %v5672_v55 }
 0x9e3   :  { %4233 = vmatmul.mubr.bf16.vlgmr.msra.gmra.mrb[12].mxu1 %v1921_v31 }
 0x9e4   :  { %4244 = vmatprep.mubr.msk.bf16.mxu1 %vm5671_vm1, %v5672_v55  ;;  %4237 = vmatpush3.bf16.msra.mxu1 %v4662_v34 }
 0x9e5   :  { %4238 = vmatprep.subr.bf16.mxu1 %v5672_v55 }
 0x9e8   :  { %4239 = vmatpush3.bf16.msra.mxu1 %v4663_v35 }
 0x9e9   :  { %4240 = vmatprep.subr.bf16.mxu1 %v5672_v55 }
 0x9ec   :  { %4241 = vmatpush3.bf16.msra.mxu1 %v4664_v36 }
 0x9ed   :  { %4242 = vmatprep.subr.bf16.mxu1 %v5672_v55 }
 0x9f0   :  { %4243 = vmatpush3.bf16.msra.mxu1 %v4665_v37 }
 0xa96   :  { %v1799_v39 = vpop.f32.mrb[8].mxu1 }
 0xa97   :  { %v1800_v40 = vadd.f32 %v3791_v38, %v1799_v39  ;;  %v4194_v41 = vpop.f32.mrb[9].mxu1 }
 0xa98   :  { %v1802_v42 = vpop.f32.mrb[10].mxu1 }
 0xa99   :  { %v1805_v43 = vadd.f32 %v1800_v40, %v6346_v52  ;;  %v4195_v44 = vpop.f32.mrb[11].mxu1 }
 0xa9b   :  { %v1806_v45 = vmax.f32 %v1805_v43, 0.0 }
 0xa9d   :  { %v1807_v47 = vpack.c.bf16 %v1806_v45, %v1806_v45 }
 0xa9f   :  { %4213 = vmatmul.mubr.bf16.vlgmr.msra.gmra.mrb[8].mxu0 %v1807_v47 }
 0xab6   :  { %v2027_v50 = vpop.f32.mrb[12].mxu1 }
 0xab7   :  { %v2028_v51 = vadd.f32 %v3809_v49, %v2027_v50  ;;  %v4234_v53 = vpop.f32.mrb[13].mxu1 }
 0xab8   :  { %v2030_v54 = vpop.f32.mrb[14].mxu1 }
 0xab9   :  { %v2033_v56 = vmax.f32 %v2028_v51, 0.0  ;;  %v4235_v57 = vpop.f32.mrb[15].mxu1 }
 0xabb   :  { %v2034_v58 = vpack.c.bf16 %v2033_v56, %v2033_v56 }
 0xabd   :  { %4245 = vmatmul.mubr.msk.bf16.vlgmr.msra.gmra.mrb[16].mxu1 %vm2074_vm3, %v2034_v58 }
 0xabe   :  { %5453 = shalt.err (!%p5450_p6)  }
 0xabf   :  { %s5454_s15 = scalar_lea.vmem %s1000_s16, 1024  ;;  %p5459_p8 = scmp.lt.s32.totalorder %s1000_s16, %s1000_s16 }
 0xac0   :  { %p5455_p7 = scmp.ne.s32.totalorder %s1000_s16, %s5454_s15  ;;  %p5460_p9 = scmp.lt.s32.totalorder %s5454_s15, %s5454_s15 }
 0xac2   :  { %p5461_p10 = por %p5460_p9, %p5459_p8 }
 0xac4   :  { %p5462_p11 = pnand %p5461_p10, %p5455_p7 }
 0xac6   :  { %5465 = shalt.err (!%p5462_p11)  }
 0xac7   :  { %s6739_s22 = sld [smem:[#allocation112_spill]] }
 0xac8   :  { %1002 = dma.hbm_to_vmem [thread:$0]  %s6738_s29, 1024, %s1000_s16, [#allocation8 + $0x2] }
 0xacd   :  { %s5466_s20 = scalar_lea.hbm %s6739_s22, 1024 }
 0xace   :  { %p5467_p12 = scmp.ne.s32.totalorder %s6739_s22, %s5466_s20  ;;  %p5470_p13 = scmp.lt.u32.totalorder %s5466_s20, %s6739_s22 }
 0xad0   :  { %p5472_p0 = pnand %p5470_p13, %p5467_p12 }
 0xad2   :  { %5475 = shalt.err (!%p5472_p0)  }
 0xad3   :  { %s5476_s26 = scalar_lea.vmem %s1012_s9, 1024  ;;  %p5481_p2 = scmp.lt.s32.totalorder %s1012_s9, %s1012_s9 }
 0xad4   :  { %p5477_p1 = scmp.ne.s32.totalorder %s1012_s9, %s5476_s26  ;;  %p5482_p3 = scmp.lt.s32.totalorder %s5476_s26, %s5476_s26 }
 0xad6   :  { %p5483_p4 = por %p5482_p3, %p5481_p2 }
 0xad8   :  { %p5484_p5 = pnand %p5483_p4, %p5477_p1 }
 0xada   :  { %5487 = shalt.err (!%p5484_p5)  }
 0xadb   :  { %s6740_s13 = sld [smem:[#allocation113_spill]]  ;;  %s5675_s3 = smov [#allocation6]  }
 0xadc   :  { %1014 = dma.hbm_to_vmem [thread:$0]  %s6739_s22, 1024, %s1012_s9, [#allocation8 + $0x3] }
 0xadd   :  { %s1023_s8 = sshll.u32 %s5675_s3, 4  ;;  %s5676_s28 = smov [#allocation7]   ;;  %s1024_s8 = int_to_ptr.vmem [resolvable:$true] %s1023_s8 }
 0xade   :  { %s1035_s4 = sshll.u32 %s5676_s28, 4  ;;  %s1036_s4 = int_to_ptr.vmem [resolvable:$true] %s1035_s4 }
 0xae1   :  { %s5488_s1 = scalar_lea.hbm %s6740_s13, 1024 }
 0xae2   :  { %p5489_p6 = scmp.ne.s32.totalorder %s6740_s13, %s5488_s1  ;;  %p5492_p7 = scmp.lt.u32.totalorder %s5488_s1, %s6740_s13 }
 0xae4   :  { %p5494_p8 = pnand %p5492_p7, %p5489_p6 }
 0xae6   :  { %5497 = shalt.err (!%p5494_p8)  }
 0xae7   :  { %s5498_s0 = scalar_lea.vmem %s1024_s8, 1024  ;;  %p5503_p10 = scmp.lt.s32.totalorder %s1024_s8, %s1024_s8 }
 0xae8   :  { %p5499_p9 = scmp.ne.s32.totalorder %s1024_s8, %s5498_s0  ;;  %p5504_p11 = scmp.lt.s32.totalorder %s5498_s0, %s5498_s0 }
 0xaea   :  { %p5505_p12 = por %p5504_p11, %p5503_p10 }
 0xaec   :  { %p5506_p13 = pnand %p5505_p12, %p5499_p9 }
 0xaee   :  { %5509 = shalt.err (!%p5506_p13)  }
 0xaef   :  { %s6741_s30 = sld [smem:[#allocation115_spill]] }
 0xaf0   :  { %1026 = dma.hbm_to_vmem [thread:$0]  %s6740_s13, 1024, %s1024_s8, [#allocation8 + $0x4] }
 0xaf5   :  { %s5510_s24 = scalar_lea.hbm %s6741_s30, 1024 }
 0xaf6   :  { %p5511_p0 = scmp.ne.s32.totalorder %s6741_s30, %s5510_s24  ;;  %p5514_p1 = scmp.lt.u32.totalorder %s5510_s24, %s6741_s30 }
 0xaf8   :  { %p5516_p2 = pnand %p5514_p1, %p5511_p0 }
 0xafa   :  { %5519 = shalt.err (!%p5516_p2)  }
 0xafb   :  { %s5520_s23 = scalar_lea.vmem %s1036_s4, 1024  ;;  %p5525_p4 = scmp.lt.s32.totalorder %s1036_s4, %s1036_s4 }
 0xafc   :  { %p5521_p3 = scmp.ne.s32.totalorder %s1036_s4, %s5520_s23  ;;  %p5526_p5 = scmp.lt.s32.totalorder %s5520_s23, %s5520_s23 }
 0xafe   :  { %p5527_p6 = por %p5526_p5, %p5525_p4 }
 0xb00   :  { %p5528_p7 = pnand %p5527_p6, %p5521_p3 }
 0xb02   :  { %5531 = shalt.err (!%p5528_p7)  }
 0xb03   :  { %1038 = dma.hbm_to_vmem [thread:$0]  %s6741_s30, 1024, %s1036_s4, [#allocation8 + $0x5]  ;;  %v3800_v52 = vld [vmem:[#allocation25] ss:$0 sm:$0xff]  ;;  %v3818_v63 = vld [vmem:[#allocation40] ss:$0 sm:$0xff] }
 0xb72   :  { %v1913_v59 = vpop.f32.mrb[8].mxu0 }
 0xb73   :  { %v6394_v60 = vadd.f32 %v3800_v52, %v1913_v59  ;;  %v4214_v61 = vpop.f32.mrb[9].mxu0 }
 0xb74   :  { %v1916_v62 = vpop.f32.mrb[10].mxu0 }
 0xb75   :  { %v1919_v46 = vmax.f32 %v6394_v60, 0.0  ;;  %v4215_v48 = vpop.f32.mrb[11].mxu0 }
 0xb90   :  { %v2112_v0 = vpop.f32.mrb[16].mxu1 }
 0xb91   :  { %v6397_v1 = vadd.f32 %v3818_v63, %v2112_v0  ;;  %v4246_v18 = vpop.f32.mrb[17].mxu1 }
 0xb92   :  { %v2115_v19 = vpop.f32.mrb[18].mxu1 }
 0xb93   :  { %v4247_v20 = vpop.f32.mrb[19].mxu1 }
 0xb94   :  { %5566 = dma.done.wait [#allocation8], 4096 }
 0xb95   :  { %5567 = vsyncadd [#allocation8], 4294963200 }
 0xb96   :  { %5568 = dma.done.wait [#allocation8 + $0x1], 2048 }
 0xb97   :  { %5569 = vsyncadd [#allocation8 + $0x1], 4294965248 }
 0xb98   :  { %5570 = dma.done.wait [#allocation8 + $0x2], 1024 }
 0xb99   :  { %5571 = vsyncadd [#allocation8 + $0x2], 4294966272 }
 0xb9a   :  { %5572 = dma.done.wait [#allocation8 + $0x3], 1024 }
 0xb9b   :  { %5573 = vsyncadd [#allocation8 + $0x3], 4294966272 }
 0xb9c   :  { %5574 = dma.done.wait [#allocation8 + $0x4], 1024 }
 0xb9d   :  { %5575 = vsyncadd [#allocation8 + $0x4], 4294966272 }
 0xb9e   :  { %5576 = dma.done.wait [#allocation8 + $0x5], 1024 }
 0xb9f   :  { %5577 = vsyncadd [#allocation8 + $0x5], 4294966272  ;;  %3991 = vmatprep.subr.bf16.mxu0 %v6251_v10  ;;  %v2140_v21 = vld [vmem:[#allocation2 + $0x8] sm:$0xff]  ;;  %v2139_v22 = vld [vmem:[#allocation2] sm:$0xff]  ;;  %s6742_s17 = sld [smem:[#allocation96_spill]]  ;;  %v2173_v42 = vlaneseq  ;;  %s6743_s25 = sld [smem:[#allocation125_spill]] }
 0xba0   :  { %3992 = vmatpush3.bf16.msra.mxu0 %v6227_v2  ;;  %v2142_v23 = vld [vmem:[#allocation2 + $0x18] sm:$0xff]  ;;  %2183 = vmatprep.subr.bf16.mxu1 %v2140_v21  ;;  %v2141_v24 = vld [vmem:[#allocation2 + $0x10] sm:$0xff]  ;;  %v2144_v10 = vld [vmem:[#allocation2 + $0x28] sm:$0xff]  ;;  %s6744_s7 = sld [smem:[#allocation120_spill]]  ;;  %vm2719_vm4 = vcmask 261120   ;;  %s6745_s10 = sld [smem:[#allocation126_spill]] }
 0xba1   :  { %3993 = vmatprep.subr.bf16.mxu0 %v6254_v11  ;;  %2184 = vmatpush1.bf16.msra.mxu1 %v2139_v22  ;;  %v2143_v2 = vld [vmem:[#allocation2 + $0x20] sm:$0xff]  ;;  %v2150_v26 = vld [vmem:[#allocation2 + $0x58] sm:$0xff]  ;;  %v2156_v27 = vld [vmem:[#allocation2 + $0x88] sm:$0xff]  ;;  %v6421_v43 = vshrl.u32 %v2173_v42, 7  ;;  %s6746_s11 = sld [smem:[#allocation124_spill]]  ;;  %s6747_s21 = sld [smem:[#allocation127_spill]] }
 0xba2   :  { %2185 = vmatprep.subr.bf16.mxu1 %v2142_v23  ;;  %v2158_v28 = vld [vmem:[#allocation2 + $0x98] sm:$0xff]  ;;  %v2160_v29 = vld [vmem:[#allocation2 + $0xa8] sm:$0xff]  ;;  %v2163_v33 = vld [vmem:[#allocation2 + $0xc0] sm:$0xff]  ;;  %s6748_s6 = sld [smem:[#allocation129_spill]]  ;;  %s5678_s27 = smov 1   ;;  %vm3604_vm7 = vcmask 15360  }
 0xba3   :  { %v2162_v31 = vld [vmem:[#allocation2 + $0xb8] sm:$0xff]  ;;  %v2164_v32 = vld [vmem:[#allocation2 + $0xc8] sm:$0xff]  ;;  %v2165_v35 = vld [vmem:[#allocation2 + $0xd0] sm:$0xff]  ;;  %v2175_v44 = vsub.s32 0, %v6421_v43  ;;  %v2179_v47 = vsub.s32 1, %v6421_v43  ;;  %s6749_s14 = sld [smem:[#allocation123_spill]] }
 0xba4   :  { %3994 = vmatpush3.bf16.msra.mxu0 %v6230_v3  ;;  %v2146_v3 = vld [vmem:[#allocation2 + $0x38] sm:$0xff]  ;;  %v2168_v36 = vld [vmem:[#allocation2 + $0xe8] sm:$0xff]  ;;  %v2167_v37 = vld [vmem:[#allocation2 + $0xe0] sm:$0xff]  ;;  %s6750_s29 = sld [smem:[#allocation131_spill]]  ;;  %s6751_s2 = sld [smem:[#allocation133_spill]]  ;;  %vm3606_vm8 = vcmask 23552  }
 0xba5   :  { %3995 = vmatprep.subr.bf16.mxu0 %v6257_v12  ;;  %2186 = vmatpush1.bf16.msra.mxu1 %v2141_v24  ;;  %v2136_v11 = vld [vmem:[%s6742_s17 + $0x8] sm:$0xff]  ;;  %v2145_v12 = vld [vmem:[#allocation2 + $0x30] sm:$0xff]  ;;  %v2166_v34 = vld [vmem:[#allocation2 + $0xd8] sm:$0xff]  ;;  %s5679_s16 = smov 2  }
 0xba6   :  { %2187 = vmatprep.subr.bf16.mxu1 %v2144_v10  ;;  %v2138_v25 = vpack.c.bf16 %v2136_v11, %v2136_v11  ;;  %v2170_v38 = vld [vmem:[#allocation2 + $0xf8] sm:$0xff]  ;;  %v2135_v39 = vld [vmem:[%s6742_s17] sm:$0xff]  ;;  %v2169_v40 = vld [vmem:[#allocation2 + $0xf0] sm:$0xff] }
 0xba7   :  { %v2137_v41 = vpack.c.bf16 %v2135_v39, %v2135_v39  ;;  %v2171_v45 = vld [vmem:[#allocation27] sm:$0x3]  ;;  %v2293_v48 = vld [vmem:[#allocation4] sm:$0xff]  ;;  %v2295_v0 = vld [vmem:[#allocation4 + $0x10] sm:$0xff] }
 0xba8   :  { %3996 = vmatpush3.bf16.msra.mxu0 %v6233_v4  ;;  %v2148_v4 = vld [vmem:[#allocation2 + $0x48] sm:$0xff]  ;;  %2215 = vmatprep.mubr.bf16.mxu1 %v2138_v25  ;;  %v2176_v49 = vrot.slane %v2171_v45, %v2175_v44  ;;  %v2180_v50 = vrot.slane %v2171_v45, %v2179_v47  ;;  %v2296_v18 = vld [vmem:[#allocation4 + $0x18] sm:$0xff]  ;;  %v2297_v19 = vld [vmem:[#allocation4 + $0x20] sm:$0xff] }
 0xba9   :  { %3997 = vmatprep.subr.bf16.mxu0 %v6260_v13  ;;  %2188 = vmatpush1.bf16.msra.mxu1 %v2143_v2  ;;  %v2147_v13 = vld [vmem:[#allocation2 + $0x40] sm:$0xff]  ;;  %v2294_v63 = vld [vmem:[#allocation4 + $0x8] sm:$0xff]  ;;  %v2299_v21 = vld [vmem:[#allocation4 + $0x30] sm:$0xff] }
 0xbaa   :  { %2189 = vmatprep.subr.bf16.mxu1 %v2146_v3  ;;  %v2298_v20 = vld [vmem:[#allocation4 + $0x28] sm:$0xff]  ;;  %v2300_v22 = vld [vmem:[#allocation4 + $0x38] sm:$0xff]  ;;  %v2350_v23 = vld [vmem:[#allocation5] sm:$0xff] }
 0xbab   :  { %v2351_v24 = vld [vmem:[#allocation5 + $0x8] sm:$0xff]  ;;  %v2352_v10 = vld [vmem:[#allocation5 + $0x10] sm:$0xff]  ;;  %v2353_v2 = vld [vmem:[#allocation5 + $0x18] sm:$0xff] }
 0xbac   :  { %3998 = vmatpush3.bf16.msra.mxu0 %v6236_v5  ;;  %v2149_v5 = vld [vmem:[#allocation2 + $0x50] sm:$0xff]  ;;  %v2354_v3 = vld [vmem:[#allocation5 + $0x20] sm:$0xff]  ;;  %v2355_v11 = vld [vmem:[#allocation5 + $0x28] sm:$0xff] }
 0xbad   :  { %3999 = vmatprep.subr.bf16.mxu0 %v6263_v14  ;;  %2190 = vmatpush1.bf16.msra.mxu1 %v2145_v12  ;;  %v2152_v14 = vld [vmem:[#allocation2 + $0x68] sm:$0xff]  ;;  %v2413_v39 = vld [vmem:[#allocation6 + $0x30] sm:$0xff]  ;;  %v4724_v43 = vld [vmem:[%s6750_s29] sm:$0xff]  }
 0xbae   :  { %2191 = vmatprep.subr.bf16.mxu1 %v2148_v4  ;;  %v3824_v4 = vld [vmem:[#allocation28] ss:$0 sm:$0xff]  ;;  %v2466_v42 = vld [vmem:[#allocation7 + $0x8] sm:$0xff] }
 0xbaf   :  { %v2467_v45 = vld [vmem:[#allocation7 + $0x10] sm:$0xff] }
 0xbb0   :  { %4000 = vmatpush3.bf16.msra.mxu0 %v6239_v6  ;;  %v2151_v6 = vld [vmem:[#allocation2 + $0x60] sm:$0xff]  ;;  %v4687_v60 = vld [vmem:[%s6743_s25 + $0x10] sm:$0xff]  }
 0xbb1   :  { %4001 = vmatprep.subr.bf16.mxu0 %v6266_v15  ;;  %2192 = vmatpush1.bf16.msra.mxu1 %v2147_v13  ;;  %v2154_v15 = vld [vmem:[#allocation2 + $0x78] sm:$0xff] }
 0xbb2   :  { %2193 = vmatprep.subr.bf16.mxu1 %v2150_v26 }
 0xbb4   :  { %4002 = vmatpush3.bf16.msra.mxu0 %v6242_v7  ;;  %v2153_v7 = vld [vmem:[#allocation2 + $0x70] sm:$0xff] }
 0xbb5   :  { %4003 = vmatprep.subr.bf16.mxu0 %v6269_v16  ;;  %2194 = vmatpush1.bf16.msra.mxu1 %v2149_v5  ;;  %v2155_v16 = vld [vmem:[#allocation2 + $0x80] sm:$0xff] }
 0xbb6   :  { %2195 = vmatprep.subr.bf16.mxu1 %v2152_v14 }
 0xbb8   :  { %4004 = vmatpush3.bf16.msra.mxu0 %v6245_v8  ;;  %v2157_v8 = vld [vmem:[#allocation2 + $0x90] sm:$0xff] }
 0xbb9   :  { %4005 = vmatprep.subr.bf16.mxu0 %v6272_v17  ;;  %2196 = vmatpush1.bf16.msra.mxu1 %v2151_v6  ;;  %v2159_v17 = vld [vmem:[#allocation2 + $0xa0] sm:$0xff] }
 0xbba   :  { %2197 = vmatprep.subr.bf16.mxu1 %v2154_v15 }
 0xbbc   :  { %4006 = vmatpush3.bf16.msra.mxu0 %v6248_v9  ;;  %v2161_v9 = vld [vmem:[#allocation2 + $0xb0] sm:$0xff] }
 0xbbd   :  { %4248 = vmatprep.subr.bf16.mxu0 %v5672_v55  ;;  %2198 = vmatpush1.bf16.msra.mxu1 %v2153_v7  ;;  %v2356_v7 = vld [vmem:[#allocation5 + $0x30] sm:$0xff] }
 0xbbe   :  { %2199 = vmatprep.subr.bf16.mxu1 %v2156_v27  ;;  %v2357_v27 = vld [vmem:[#allocation5 + $0x38] sm:$0xff] }
 0xbc1   :  { %2200 = vmatpush1.bf16.msra.mxu1 %v2155_v16  ;;  %v2407_v16 = vld [vmem:[#allocation6] sm:$0xff] }
 0xbc2   :  { %2201 = vmatprep.subr.bf16.mxu1 %v2158_v28  ;;  %v2408_v28 = vld [vmem:[#allocation6 + $0x8] sm:$0xff] }
 0xbc5   :  { %2202 = vmatpush1.bf16.msra.mxu1 %v2157_v8  ;;  %v2409_v8 = vld [vmem:[#allocation6 + $0x10] sm:$0xff] }
 0xbc6   :  { %2203 = vmatprep.subr.bf16.mxu1 %v2160_v29  ;;  %v2410_v29 = vld [vmem:[#allocation6 + $0x18] sm:$0xff] }
 0xbc9   :  { %2204 = vmatpush1.bf16.msra.mxu1 %v2159_v17  ;;  %v2411_v17 = vld [vmem:[#allocation6 + $0x20] sm:$0xff] }
 0xbca   :  { %2205 = vmatprep.subr.bf16.mxu1 %v2162_v31  ;;  %v2412_v31 = vld [vmem:[#allocation6 + $0x28] sm:$0xff] }
 0xbcd   :  { %2206 = vmatpush1.bf16.msra.mxu1 %v2161_v9  ;;  %v3825_v9 = vld [vmem:[#allocation30] ss:$0 sm:$0xff] }
 0xbce   :  { %2207 = vmatprep.subr.bf16.mxu1 %v2164_v32 }
 0xbd1   :  { %2208 = vmatpush1.bf16.msra.mxu1 %v2163_v33 }
 0xbd2   :  { %2209 = vmatprep.subr.bf16.mxu1 %v2166_v34 }
 0xbd5   :  { %2210 = vmatpush1.bf16.msra.mxu1 %v2165_v35 }
 0xbd6   :  { %2211 = vmatprep.subr.bf16.mxu1 %v2168_v36 }
 0xbd9   :  { %2212 = vmatpush1.bf16.msra.mxu1 %v2167_v37 }
 0xbda   :  { %2213 = vmatprep.subr.bf16.mxu1 %v2170_v38 }
 0xbdd   :  { %2214 = vmatpush1.bf16.msra.mxu1 %v2169_v40  ;;  %v2414_v40 = vld [vmem:[#allocation6 + $0x38] sm:$0xff] }
 0xbde   :  { %4268 = vmatprep.subr.bf16.mxu1 %v5672_v55 }
 0xbe0   :  { %2216 = vmatmul.mubr.bf16.vlgmr.msra.gmra.mrb[20].mxu1 %v2137_v41  ;;  %v2465_v41 = vld [vmem:[#allocation7] sm:$0xff] }
 0xbe1   :  { %4284 = vmatprep.mubr.msk.bf16.mxu1 %vm5671_vm1, %v5672_v55  ;;  %4269 = vmatpush3.bf16.msra.mxu1 %v2350_v23  ;;  %v3827_v23 = vld [vmem:[#allocation33] ss:$0 sm:$0xff] }
 0xbe2   :  { %4270 = vmatprep.subr.bf16.mxu1 %v5672_v55 }
 0xbe5   :  { %4271 = vmatpush3.bf16.msra.mxu1 %v2351_v24 }
 0xbe6   :  { %4272 = vmatprep.subr.bf16.mxu1 %v5672_v55 }
 0xbe9   :  { %4273 = vmatpush3.bf16.msra.mxu1 %v2352_v10 }
 0xbea   :  { %4274 = vmatprep.subr.bf16.mxu1 %v5672_v55 }
 0xbed   :  { %4275 = vmatpush3.bf16.msra.mxu1 %v2353_v2 }
 0xbee   :  { %4276 = vmatprep.subr.bf16.mxu1 %v5672_v55 }
 0xbf1   :  { %4277 = vmatpush3.bf16.msra.mxu1 %v2354_v3 }
 0xbf2   :  { %4278 = vmatprep.subr.bf16.mxu1 %v5672_v55 }
 0xbf5   :  { %4279 = vmatpush3.bf16.msra.mxu1 %v2355_v11 }
 0xbf6   :  { %4280 = vmatprep.subr.bf16.mxu1 %v5672_v55 }
 0xbf9   :  { %4281 = vmatpush3.bf16.msra.mxu1 %v2356_v7  ;;  %v4685_v7 = vld [vmem:[%s6743_s25 + $0x8] sm:$0xff]  }
 0xbfa   :  { %4282 = vmatprep.subr.bf16.mxu1 %v5672_v55 }
 0xbfd   :  { %4283 = vmatpush3.bf16.msra.mxu1 %v2357_v27  ;;  %v4691_v27 = vld [vmem:[%s6743_s25 + $0x20] sm:$0xff]  }
 0xbfe   :  { %4308 = vmatprep.subr.bf16.mxu1 %v5672_v55 }
 0xcb3   :  { %v2217_v51 = vpop.f32.mrb[20].mxu1 }
 0xcb4   :  { %v2218_v53 = vadd.f32 %v2217_v51, %v2176_v49  ;;  %v2219_v54 = vpop.f32.mrb[21].mxu1  ;;  %v2468_v49 = vld [vmem:[#allocation7 + $0x18] sm:$0xff]  ;;  %v2470_v51 = vld [vmem:[#allocation7 + $0x28] sm:$0xff] }
 0xcb5   :  { %v2220_v56 = vadd.f32 %v2219_v54, %v2180_v50  ;;  %v2221_v57 = vpop.f32.mrb[22].mxu1  ;;  %v2469_v50 = vld [vmem:[#allocation7 + $0x20] sm:$0xff] }
 0xcb6   :  { %v2224_v58 = vmax.f32 %v2218_v53, 0.0  ;;  %v2222_v52 = vpop.f32.mrb[23].mxu1  ;;  %v3826_v53 = vld [vmem:[#allocation31] ss:$0 sm:$0xff] }
 0xcb7   :  { %v2225_v59 = vmax.f32 %v2220_v56, 0.0 }
 0xcb8   :  { %v2226_v62 = vpack.c.bf16 %v2224_v58, %v2224_v58 }
 0xcb9   :  { %v2227_v61 = vpack.c.bf16 %v2225_v59, %v2225_v59 }
 0xcbb   :  { %2283 = vmatprep.mubr.bf16.mxu0 %v2227_v61 }
 0xcbc   :  { %2284 = vmatmul.mubr.bf16.vlgmr.msra.gmra.mrb[12].mxu0 %v2226_v62  ;;  %v2471_v62 = vld [vmem:[#allocation7 + $0x30] sm:$0xff] }
 0xcbd   :  { %4249 = vmatpush3.bf16.msra.mxu0 %v2293_v48  ;;  %4264 = vmatprep.mubr.msk.bf16.mxu0 %vm5671_vm1, %v5672_v55  ;;  %v2472_v48 = vld [vmem:[#allocation7 + $0x38] sm:$0xff] }
 0xcbe   :  { %4250 = vmatprep.subr.bf16.mxu0 %v5672_v55 }
 0xcc1   :  { %4251 = vmatpush3.bf16.msra.mxu0 %v2294_v63  ;;  %v4682_v63 = vld [vmem:[#allocation43] sm:$0xff]  }
 0xcc2   :  { %4252 = vmatprep.subr.bf16.mxu0 %v5672_v55 }
 0xcc5   :  { %4253 = vmatpush3.bf16.msra.mxu0 %v2295_v0  ;;  %v4684_v0 = vld [vmem:[#allocation43 + $0x8] sm:$0xff]  }
 0xcc6   :  { %4254 = vmatprep.subr.bf16.mxu0 %v5672_v55 }
 0xcc9   :  { %4255 = vmatpush3.bf16.msra.mxu0 %v2296_v18  ;;  %v4686_v18 = vld [vmem:[#allocation43 + $0x10] sm:$0xff]  }
 0xcca   :  { %4256 = vmatprep.subr.bf16.mxu0 %v5672_v55 }
 0xccd   :  { %4257 = vmatpush3.bf16.msra.mxu0 %v2297_v19  ;;  %v4688_v19 = vld [vmem:[#allocation43 + $0x18] sm:$0xff]  }
 0xcce   :  { %4258 = vmatprep.subr.bf16.mxu0 %v5672_v55 }
 0xcd1   :  { %4259 = vmatpush3.bf16.msra.mxu0 %v2298_v20  ;;  %v4690_v20 = vld [vmem:[#allocation43 + $0x20] sm:$0xff]  }
 0xcd2   :  { %4260 = vmatprep.subr.bf16.mxu0 %v5672_v55 }
 0xcd5   :  { %4261 = vmatpush3.bf16.msra.mxu0 %v2299_v21  ;;  %v4692_v21 = vld [vmem:[#allocation43 + $0x28] sm:$0xff]  }
 0xcd6   :  { %4262 = vmatprep.subr.bf16.mxu0 %v5672_v55 }
 0xcd9   :  { %4263 = vmatpush3.bf16.msra.mxu0 %v2300_v22  ;;  %v4694_v22 = vld [vmem:[#allocation43 + $0x30] sm:$0xff]  }
 0xcda   :  { %4288 = vmatprep.subr.bf16.mxu0 %v5672_v55 }
 0xd8f   :  { %v4007_v12 = vpop.f32.mrb[12].mxu0 }
 0xd90   :  { %v4008_v25 = vpop.f32.mrb[13].mxu0 }
 0xd91   :  { %v4009_v13 = vadd.f32 %v4008_v25, %v4007_v12  ;;  %v4010_v26 = vpop.f32.mrb[14].mxu0  ;;  %v4678_v25 = vld [vmem:[#allocation42] sm:$0xff]  }
 0xd92   :  { %v4011_v5 = vpop.f32.mrb[15].mxu0  ;;  %v4679_v26 = vld [vmem:[#allocation42 + $0x8] sm:$0xff]  }
 0xd93   :  { %v2286_v14 = vadd.f32 %v4009_v13, %v3824_v4  ;;  %v4680_v5 = vld [vmem:[#allocation42 + $0x10] sm:$0xff]  }
 0xd95   :  { %v2291_v6 = vmax.f32 %v2286_v14, 0.0  ;;  %v4681_v14 = vld [vmem:[#allocation42 + $0x18] sm:$0xff]  }
 0xd97   :  { %v2292_v15 = vpack.c.bf16 %v2291_v6, %v2291_v6  ;;  %v6489_v6 = vpack.c.bf16 %v1919_v46, %v1919_v46  ;;  %v4689_v46 = vld [vmem:[%s6743_s25 + $0x18] sm:$0xff]  }
 0xd99   :  { %4265 = vmatmul.mubr.bf16.vlgmr.msra.gmra.mrb[16].mxu0 %v2292_v15  ;;  %v4683_v15 = vld [vmem:[%s6743_s25] sm:$0xff]  }
 0xd9a   :  { %4304 = vmatprep.mubr.msk.bf16.mxu0 %vm5671_vm1, %v5672_v55  ;;  %4289 = vmatpush3.bf16.msra.mxu0 %v2407_v16  ;;  %v4693_v16 = vld [vmem:[%s6743_s25 + $0x28] sm:$0xff]  }
 0xd9b   :  { %4290 = vmatprep.subr.bf16.mxu0 %v5672_v55 }
 0xd9e   :  { %4291 = vmatpush3.bf16.msra.mxu0 %v2408_v28  ;;  %v4695_v28 = vld [vmem:[%s6743_s25 + $0x30] sm:$0xff]  }
 0xd9f   :  { %4292 = vmatprep.subr.bf16.mxu0 %v5672_v55 }
 0xda2   :  { %4293 = vmatpush3.bf16.msra.mxu0 %v2409_v8  ;;  %v4696_v8 = vld [vmem:[#allocation43 + $0x38] sm:$0xff]  }
 0xda3   :  { %4294 = vmatprep.subr.bf16.mxu0 %v5672_v55 }
 0xda6   :  { %4295 = vmatpush3.bf16.msra.mxu0 %v2410_v29  ;;  %v4697_v29 = vld [vmem:[%s6743_s25 + $0x38] sm:$0xff]  }
 0xda7   :  { %4296 = vmatprep.subr.bf16.mxu0 %v5672_v55 }
 0xdaa   :  { %4297 = vmatpush3.bf16.msra.mxu0 %v2411_v17  ;;  %v3828_v17 = vld [vmem:[#allocation34] ss:$0 sm:$0xff] }
 0xdab   :  { %4298 = vmatprep.subr.bf16.mxu0 %v5672_v55 }
 0xdae   :  { %4299 = vmatpush3.bf16.msra.mxu0 %v2412_v31 }
 0xdaf   :  { %4300 = vmatprep.subr.bf16.mxu0 %v5672_v55 }
 0xdb2   :  { %4301 = vmatpush3.bf16.msra.mxu0 %v2413_v39  ;;  %v2702_v39 = vpack.c.bf16 %v6397_v1, %v6397_v1 }
 0xdb3   :  { %4302 = vmatprep.subr.bf16.mxu0 %v5672_v55 }
 0xdb6   :  { %4303 = vmatpush3.bf16.msra.mxu0 %v2414_v40  ;;  %v4700_v40 = vld [vmem:[%s6744_s7] sm:$0xff]  }
 0xdb7   :  { %4328 = vmatprep.subr.bf16.mxu0 %v5672_v55 }
 0xe6c   :  { %v2342_v32 = vpop.f32.mrb[16].mxu0 }
 0xe6d   :  { %v2343_v33 = vadd.f32 %v3825_v9, %v2342_v32  ;;  %v4266_v34 = vpop.f32.mrb[17].mxu0 }
 0xe6e   :  { %v2345_v35 = vpop.f32.mrb[18].mxu0 }
 0xe6f   :  { %v6455_v36 = vmax.f32 %v2343_v33, 0.0  ;;  %v4267_v37 = vpop.f32.mrb[19].mxu0 }
 0xe71   :  { %v2349_v38 = vpack.c.bf16 %v6455_v36, %v6455_v36 }
 0xe73   :  { %4285 = vmatmul.mubr.bf16.vlgmr.msra.gmra.mrb[24].mxu1 %v2349_v38  ;;  %v4699_v38 = vld [vmem:[#allocation45 + $0x8] sm:$0xff]  }
 0xe74   :  { %4324 = vmatprep.mubr.msk.bf16.mxu1 %vm5671_vm1, %v5672_v55  ;;  %4309 = vmatpush3.bf16.msra.mxu1 %v2465_v41  ;;  %v4701_v41 = vld [vmem:[%s6744_s7 + $0x8] sm:$0xff]  }
 0xe75   :  { %4310 = vmatprep.subr.bf16.mxu1 %v5672_v55 }
 0xe78   :  { %4311 = vmatpush3.bf16.msra.mxu1 %v2466_v42 }
 0xe79   :  { %4312 = vmatprep.subr.bf16.mxu1 %v5672_v55 }
 0xe7c   :  { %4313 = vmatpush3.bf16.msra.mxu1 %v2467_v45 }
 0xe7d   :  { %4314 = vmatprep.subr.bf16.mxu1 %v5672_v55 }
 0xe80   :  { %4315 = vmatpush3.bf16.msra.mxu1 %v2468_v49 }
 0xe81   :  { %4316 = vmatprep.subr.bf16.mxu1 %v5672_v55 }
 0xe84   :  { %4317 = vmatpush3.bf16.msra.mxu1 %v2469_v50  ;;  %v4702_v50 = vld [vmem:[%s6744_s7 + $0x10] sm:$0xff]  }
 0xe85   :  { %4318 = vmatprep.subr.bf16.mxu1 %v5672_v55 }
 0xe88   :  { %4319 = vmatpush3.bf16.msra.mxu1 %v2470_v51  ;;  %v4703_v51 = vld [vmem:[%s6744_s7 + $0x18] sm:$0xff]  }
 0xe89   :  { %4320 = vmatprep.subr.bf16.mxu1 %v5672_v55 }
 0xe8c   :  { %4321 = vmatpush3.bf16.msra.mxu1 %v2471_v62 }
 0xe8d   :  { %4322 = vmatprep.subr.bf16.mxu1 %v5672_v55 }
 0xe90   :  { %4323 = vmatpush3.bf16.msra.mxu1 %v2472_v48 }
 0xe91   :  { %4348 = vmatprep.subr.bf16.mxu1 %v5672_v55 }
 0xf46   :  { %v2399_v54 = vpop.f32.mrb[24].mxu1 }
 0xf47   :  { %v2400_v56 = vadd.f32 %v3826_v53, %v2399_v54  ;;  %v4286_v57 = vpop.f32.mrb[25].mxu1  ;;  %v4704_v53 = vld [vmem:[%s6744_s7 + $0x20] sm:$0xff]   ;;  %v4705_v54 = vld [vmem:[%s6744_s7 + $0x28] sm:$0xff]  }
 0xf48   :  { %v2402_v58 = vpop.f32.mrb[26].mxu1  ;;  %v4707_v57 = vld [vmem:[%s6744_s7 + $0x38] sm:$0xff]  }
 0xf49   :  { %v2405_v52 = vmax.f32 %v2400_v56, 0.0  ;;  %v4287_v59 = vpop.f32.mrb[27].mxu1  ;;  %v4706_v56 = vld [vmem:[%s6744_s7 + $0x30] sm:$0xff]   ;;  %v4711_v58 = vld [vmem:[%s6745_s10] sm:$0xff]  }
 0xf4b   :  { %v2406_v61 = vpack.c.bf16 %v2405_v52, %v2405_v52  ;;  %v4713_v52 = vld [vmem:[%s6745_s10 + $0x8] sm:$0xff]  }
 0xf4d   :  { %4305 = vmatmul.mubr.bf16.vlgmr.msra.gmra.mrb[20].mxu0 %v2406_v61 }
 0xf4e   :  { %4344 = vmatprep.mubr.msk.bf16.mxu0 %vm5671_vm1, %v5672_v55  ;;  %4329 = vmatpush3.bf16.msra.mxu0 %v4682_v63 }
 0xf4f   :  { %4330 = vmatprep.subr.bf16.mxu0 %v5672_v55 }
 0xf52   :  { %4331 = vmatpush3.bf16.msra.mxu0 %v4684_v0 }
 0xf53   :  { %4332 = vmatprep.subr.bf16.mxu0 %v5672_v55 }
 0xf56   :  { %4333 = vmatpush3.bf16.msra.mxu0 %v4686_v18 }
 0xf57   :  { %4334 = vmatprep.subr.bf16.mxu0 %v5672_v55 }
 0xf5a   :  { %4335 = vmatpush3.bf16.msra.mxu0 %v4688_v19 }
 0xf5b   :  { %4336 = vmatprep.subr.bf16.mxu0 %v5672_v55 }
 0xf5e   :  { %4337 = vmatpush3.bf16.msra.mxu0 %v4690_v20 }
 0xf5f   :  { %4338 = vmatprep.subr.bf16.mxu0 %v5672_v55 }
 0xf62   :  { %4339 = vmatpush3.bf16.msra.mxu0 %v4692_v21 }
 0xf63   :  { %4340 = vmatprep.subr.bf16.mxu0 %v5672_v55 }
 0xf66   :  { %4341 = vmatpush3.bf16.msra.mxu0 %v4694_v22  ;;  %v3845_v22 = vld [vmem:[#allocation46] ss:$0 sm:$0xff] }
 0xf67   :  { %4342 = vmatprep.subr.bf16.mxu0 %v5672_v55 }
 0xf6a   :  { %4343 = vmatpush3.bf16.msra.mxu0 %v4696_v8  ;;  %v3855_v8 = vld [vmem:[#allocation49] ss:$0 sm:$0xff] }
 0xf6b   :  { %4360 = vmatprep.subr.bf16.mxu0 %v5672_v55 }
0x1020   :  { %v2456_v24 = vpop.f32.mrb[20].mxu0 }
0x1021   :  { %v2457_v10 = vadd.f32 %v3827_v23, %v2456_v24  ;;  %v4306_v2 = vpop.f32.mrb[21].mxu0 }
0x1022   :  { %v2459_v3 = vpop.f32.mrb[22].mxu0 }
0x1023   :  { %v2462_v11 = vadd.f32 %v2457_v10, %v6455_v36  ;;  %v4307_v12 = vpop.f32.mrb[23].mxu0  ;;  %v4698_v36 = vld [vmem:[#allocation45] sm:$0xff]  }
0x1024   :  { %v4708_v12 = vld [vmem:[%s6746_s11] sm:$0xff]  }
0x1025   :  { %v2463_v4 = vmax.f32 %v2462_v11, 0.0 }
0x1027   :  { %v2464_v13 = vpack.c.bf16 %v2463_v4, %v2463_v4 }
0x1029   :  { %4325 = vmatmul.mubr.bf16.vlgmr.msra.gmra.mrb[28].mxu1 %v2464_v13  ;;  %v4710_v13 = vld [vmem:[%s6746_s11 + $0x10] sm:$0xff]  }
0x102a   :  { %4349 = vmatpush3.bf16.msra.mxu1 %v4678_v25  ;;  %4356 = vmatprep.mubr.msk.bf16.mxu1 %vm5671_vm1, %v5672_v55  ;;  %v4709_v25 = vld [vmem:[%s6746_s11 + $0x8] sm:$0xff]  }
0x102b   :  { %4350 = vmatprep.subr.bf16.mxu1 %v5672_v55 }
0x102e   :  { %4351 = vmatpush3.bf16.msra.mxu1 %v4679_v26  ;;  %v4712_v26 = vld [vmem:[%s6746_s11 + $0x18] sm:$0xff]  }
0x102f   :  { %4352 = vmatprep.subr.bf16.mxu1 %v5672_v55 }
0x1032   :  { %4353 = vmatpush3.bf16.msra.mxu1 %v4680_v5 }
0x1033   :  { %4354 = vmatprep.subr.bf16.mxu1 %v5672_v55 }
0x1036   :  { %4355 = vmatpush3.bf16.msra.mxu1 %v4681_v14 }
0x1037   :  { %4388 = vmatprep.subr.bf16.mxu1 %v5672_v55 }
0x1039   :  { %4357 = vmatmul.mubr.msk.bf16.vlgmr.msra.gmra.mrb[32].mxu1 %vm2074_vm3, %v6489_v6 }
0x103a   :  { %4389 = vmatpush3.bf16.msra.mxu1 %v4683_v15  ;;  %4404 = vmatprep.mubr.msk.bf16.mxu1 %vm5671_vm1, %v5672_v55 }
0x103b   :  { %4390 = vmatprep.subr.bf16.mxu1 %v5672_v55 }
0x103e   :  { %4391 = vmatpush3.bf16.msra.mxu1 %v4685_v7 }
0x103f   :  { %4392 = vmatprep.subr.bf16.mxu1 %v5672_v55 }
0x1042   :  { %4393 = vmatpush3.bf16.msra.mxu1 %v4687_v60  ;;  %v3846_v60 = vld [vmem:[#allocation48] ss:$0 sm:$0xff] }
0x1043   :  { %4394 = vmatprep.subr.bf16.mxu1 %v5672_v55 }
0x1046   :  { %4395 = vmatpush3.bf16.msra.mxu1 %v4689_v46 }
0x1047   :  { %4396 = vmatprep.subr.bf16.mxu1 %v5672_v55 }
0x104a   :  { %4397 = vmatpush3.bf16.msra.mxu1 %v4691_v27 }
0x104b   :  { %4398 = vmatprep.subr.bf16.mxu1 %v5672_v55 }
0x104e   :  { %4399 = vmatpush3.bf16.msra.mxu1 %v4693_v16 }
0x104f   :  { %4400 = vmatprep.subr.bf16.mxu1 %v5672_v55 }
0x1052   :  { %4401 = vmatpush3.bf16.msra.mxu1 %v4695_v28 }
0x1053   :  { %4402 = vmatprep.subr.bf16.mxu1 %v5672_v55 }
0x1056   :  { %4403 = vmatpush3.bf16.msra.mxu1 %v4697_v29 }
0x1057   :  { %4420 = vmatprep.subr.bf16.mxu1 %v5672_v55 }
0x10fc   :  { %v2514_v31 = vpop.f32.mrb[28].mxu1 }
0x10fd   :  { %v2515_v9 = vadd.f32 %v3828_v17, %v2514_v31  ;;  %v4326_v32 = vpop.f32.mrb[29].mxu1  ;;  %v3857_v31 = vld [vmem:[#allocation51] ss:$0 sm:$0xff] }
0x10fe   :  { %v2517_v33 = vpop.f32.mrb[30].mxu1 }
0x10ff   :  { %v2520_v34 = vmax.f32 %v2515_v9, 0.0  ;;  %v4327_v35 = vpop.f32.mrb[31].mxu1 }
0x1101   :  { %v2530_v37 = vpack.c.bf16 %v2520_v34, %v2520_v34 }
0x1103   :  { %4345 = vmatmul.mubr.bf16.vlgmr.msra.gmra.mrb[24].mxu0 %v2530_v37  ;;  %4405 = vmatmul.mubr.bf16.vlgmr.msra.gmra.mrb[36].mxu1 %v2530_v37 }
0x1104   :  { %4361 = vmatpush3.bf16.msra.mxu0 %v4698_v36  ;;  %4364 = vmatprep.mubr.msk.bf16.mxu0 %vm5671_vm1, %v5672_v55 }
0x1105   :  { %4362 = vmatprep.subr.bf16.mxu0 %v5672_v55  ;;  %4424 = vmatprep.mubr.msk.bf16.mxu1 %vm5671_vm1, %v5672_v55 }
0x1106   :  { %4421 = vmatpush3.bf16.msra.mxu1 %v4711_v58  ;;  %v4718_v58 = vld [vmem:[%s6748_s6 + $0x10] sm:$0xff]  }
0x1107   :  { %4422 = vmatprep.subr.bf16.mxu1 %v5672_v55 }
0x1108   :  { %4363 = vmatpush3.bf16.msra.mxu0 %v4699_v38 }
0x1109   :  { %4368 = vmatprep.subr.bf16.mxu0 %v5672_v55 }
0x110a   :  { %4423 = vmatpush3.bf16.msra.mxu1 %v4713_v52  ;;  %v4719_v52 = vld [vmem:[%s6748_s6 + $0x18] sm:$0xff]  }
0x110b   :  { %4365 = vmatmul.mubr.msk.bf16.vlgmr.msra.gmra.mrb[28].mxu0 %vm2719_vm4, %v2702_v39  ;;  %4428 = vmatprep.subr.bf16.mxu1 %v5672_v55 }
0x110c   :  { %4369 = vmatpush3.bf16.msra.mxu0 %v4700_v40  ;;  %v2696_v42 = vpop.f32.mrb[32].mxu1  ;;  %4384 = vmatprep.mubr.msk.bf16.mxu0 %vm5671_vm1, %v5672_v55  ;;  %v5677_v40 = vmov 1  }
0x110d   :  { %4370 = vmatprep.subr.bf16.mxu0 %v5672_v55  ;;  %v4358_v45 = vpop.f32.mrb[33].mxu1  ;;  %4425 = vmatmul.mubr.msk.bf16.vlgmr.msra.gmra.mrb[40].mxu1 %vm2719_vm4, %v2702_v39 }
0x110e   :  { %v2699_v1 = vpop.f32.mrb[34].mxu1  ;;  %4432 = vmatprep.mubr.msk.bf16.mxu1 %vm5671_vm1, %v5672_v55  ;;  %4676 = vset.pattern.permute.xlu1 %v5677_v40 }
0x110f   :  { %v4359_v49 = vpop.f32.mrb[35].mxu1  ;;  %4677 = vset.pattern.permute.xlu0 %v5677_v40 }
0x1110   :  { %4371 = vmatpush3.bf16.msra.mxu0 %v4701_v41  ;;  %v4714_v41 = vld [vmem:[%s6747_s21] sm:$0xff]  }
0x1111   :  { %4372 = vmatprep.subr.bf16.mxu0 %v5672_v55  ;;  %4429 = vmatpush3.bf16.msra.mxu1 %v4714_v41 }
0x1112   :  { %4430 = vmatprep.subr.bf16.mxu1 %v5672_v55 }
0x1114   :  { %4373 = vmatpush3.bf16.msra.mxu0 %v4702_v50 }
0x1115   :  { %4374 = vmatprep.subr.bf16.mxu0 %v5672_v55 }
0x1118   :  { %4375 = vmatpush3.bf16.msra.mxu0 %v4703_v51 }
0x1119   :  { %4376 = vmatprep.subr.bf16.mxu0 %v5672_v55 }
0x111c   :  { %4377 = vmatpush3.bf16.msra.mxu0 %v4704_v53 }
0x111d   :  { %4378 = vmatprep.subr.bf16.mxu0 %v5672_v55 }
0x1120   :  { %4379 = vmatpush3.bf16.msra.mxu0 %v4705_v54  ;;  %v4715_v54 = vld [vmem:[%s6747_s21 + $0x8] sm:$0xff]  }
0x1121   :  { %4380 = vmatprep.subr.bf16.mxu0 %v5672_v55  ;;  %4431 = vmatpush3.bf16.msra.mxu1 %v4715_v54 }
0x1122   :  { %4456 = vmatprep.subr.bf16.mxu1 %v5672_v55 }
0x1124   :  { %4381 = vmatpush3.bf16.msra.mxu0 %v4706_v56  ;;  %v4716_v56 = vld [vmem:[%s6748_s6] sm:$0xff]  }
0x1125   :  { %4382 = vmatprep.subr.bf16.mxu0 %v5672_v55 }
0x1128   :  { %4383 = vmatpush3.bf16.msra.mxu0 %v4707_v57  ;;  %v4717_v57 = vld [vmem:[%s6748_s6 + $0x8] sm:$0xff]  }
0x1129   :  { %4408 = vmatprep.subr.bf16.mxu0 %v5672_v55 }
0x11d6   :  { %v2629_v59 = vpop.f32.mrb[24].mxu0  ;;  %v3043_v61 = vpop.f32.mrb[36].mxu1 }
0x11d7   :  { %v2697_v62 = vadd.f32 %v2696_v42, %v2629_v59  ;;  %v4346_v48 = vpop.f32.mrb[25].mxu0  ;;  %v4406_v63 = vpop.f32.mrb[37].mxu1  ;;  %v3856_v42 = vld [vmem:[#allocation52] ss:$0 sm:$0xff]  ;;  %v4721_v59 = vld [vmem:[%s6748_s6 + $0x28] sm:$0xff]  }
0x11d8   :  { %v2632_v0 = vpop.f32.mrb[26].mxu0  ;;  %v3046_v18 = vpop.f32.mrb[38].mxu1 }
0x11d9   :  { %v4347_v19 = vpop.f32.mrb[27].mxu0  ;;  %v4407_v20 = vpop.f32.mrb[39].mxu1 }
0x11da   :  { %v4722_v19 = vld [vmem:[%s6748_s6 + $0x30] sm:$0xff]  }
0x11db   :  { %v4726_v20 = vld [vmem:[%s6750_s29 + $0x10] sm:$0xff]  }
0x11de   :  { %v2757_v21 = vpop.f32.mrb[28].mxu0 }
0x11df   :  { %v2763_v23 = vadd.f32 %v2757_v21, %v2697_v62  ;;  %v4366_v24 = vpop.f32.mrb[29].mxu0  ;;  %v4727_v21 = vld [vmem:[%s6750_s29 + $0x18] sm:$0xff]  }
0x11e0   :  { %v2760_v10 = vpop.f32.mrb[30].mxu0  ;;  %v3163_v5 = vpop.f32.mrb[40].mxu1 }
0x11e1   :  { %v2771_v2 = vadd.f32 %v3845_v22, %v2763_v23  ;;  %v4367_v3 = vpop.f32.mrb[31].mxu0  ;;  %v4426_v14 = vpop.f32.mrb[41].mxu1  ;;  %v4728_v22 = vld [vmem:[%s6750_s29 + $0x20] sm:$0xff]   ;;  %v4729_v23 = vld [vmem:[%s6750_s29 + $0x28] sm:$0xff]   ;;  %v3877_v10 = vld [vmem:[#allocation54] ss:$0 sm:$0xff] }
0x11e2   :  { %v3166_v15 = vpop.f32.mrb[42].mxu1  ;;  %v4732_v14 = vld [vmem:[%s6751_s2] sm:$0xff]  }
0x11e3   :  { %v2772_v11 = vmax.f32 %v2771_v2, 0.0  ;;  %v4427_v7 = vpop.f32.mrb[43].mxu1  ;;  %v4733_v15 = vld [vmem:[%s6751_s2 + $0x8] sm:$0xff]  }
0x11e4   :  { %v4734_v7 = vld [vmem:[%s6751_s2 + $0x10] sm:$0xff]  }
0x11e5   :  { %v2773_v4 = vpack.c.bf16 %v2772_v11, %v2772_v11 }
0x11e7   :  { %4385 = vmatmul.mubr.bf16.vlgmr.msra.gmra.mrb[32].mxu0 %v2773_v4 }
0x11e8   :  { %4409 = vmatpush3.bf16.msra.mxu0 %v4708_v12  ;;  %4416 = vmatprep.mubr.msk.bf16.mxu0 %vm5671_vm1, %v5672_v55 }
0x11e9   :  { %4410 = vmatprep.subr.bf16.mxu0 %v5672_v55 }
0x11ec   :  { %4411 = vmatpush3.bf16.msra.mxu0 %v4709_v25 }
0x11ed   :  { %4412 = vmatprep.subr.bf16.mxu0 %v5672_v55 }
0x11f0   :  { %4413 = vmatpush3.bf16.msra.mxu0 %v4710_v13 }
0x11f1   :  { %4414 = vmatprep.subr.bf16.mxu0 %v5672_v55 }
0x11f4   :  { %4415 = vmatpush3.bf16.msra.mxu0 %v4712_v26  ;;  %v4730_v26 = vld [vmem:[%s6750_s29 + $0x30] sm:$0xff]  }
0x11f5   :  { %4436 = vmatprep.subr.bf16.mxu0 %v5672_v55 }
0x11f7   :  { %4417 = vmatmul.mubr.msk.bf16.vlgmr.msra.gmra.mrb[36].mxu0 %vm2074_vm3, %v6489_v6 }
0x11f8   :  { %4452 = vmatprep.mubr.msk.bf16.mxu0 %vm5671_vm1, %v5672_v55  ;;  %4437 = vmatpush3.bf16.msra.mxu0 %v4716_v56  ;;  %v3905_v56 = vld [vmem:[%s5961_s12] ss:$0 sm:$0xff] }
0x11f9   :  { %4438 = vmatprep.subr.bf16.mxu0 %v5672_v55 }
0x11fc   :  { %4439 = vmatpush3.bf16.msra.mxu0 %v4717_v57 }
0x11fd   :  { %4440 = vmatprep.subr.bf16.mxu0 %v5672_v55 }
0x1200   :  { %4441 = vmatpush3.bf16.msra.mxu0 %v4718_v58 }
0x1201   :  { %4442 = vmatprep.subr.bf16.mxu0 %v5672_v55 }
0x1204   :  { %4443 = vmatpush3.bf16.msra.mxu0 %v4719_v52 }
0x1205   :  { %4444 = vmatprep.subr.bf16.mxu0 %v5672_v55 }
0x12ba   :  { %v2879_v46 = vpop.f32.mrb[32].mxu0 }
0x12bb   :  { %v2880_v27 = vadd.f32 %v3846_v60, %v2879_v46  ;;  %v4386_v16 = vpop.f32.mrb[33].mxu0  ;;  %v4735_v60 = vld [vmem:[%s6751_s2 + $0x18] sm:$0xff]   ;;  %v4736_v46 = vld [vmem:[%s6751_s2 + $0x20] sm:$0xff]  }
0x12bc   :  { %v2882_v28 = vpop.f32.mrb[34].mxu0  ;;  %v3878_v16 = vld [vmem:[#allocation55] ss:$0 sm:$0xff] }
0x12bd   :  { %v2885_v29 = vmax.f32 %v2880_v27, 0.0  ;;  %v4387_v17 = vpop.f32.mrb[35].mxu0  ;;  %v4737_v27 = vld [vmem:[%s6751_s2 + $0x28] sm:$0xff]  }
0x12bf   :  { %v2894_v9 = vmul.f32 %v3855_v8, %v2885_v29  ;;  %v2912_v32 = vmul.f32 %v3857_v31, %v2885_v29 }
0x12c1   :  { %v2895_v6 = vsel %vm2074_vm3, %v2894_v9, 0.0  ;;  %v2913_v33 = vsel %vm2074_vm3, %v2912_v32, 0.0  ;;  %v4738_v32 = vld [vmem:[%s6751_s2 + $0x30] sm:$0xff]  }
0x12c2   :  { %2896 = vadd.xlane.f32.xlu0 %v2895_v6 }
0x12c6   :  { %2914 = vadd.xlane.f32.xlu0 %v2913_v33  ;;  %v4739_v33 = vld [vmem:[%s6751_s2 + $0x38] sm:$0xff]  }
0x12ca   :  { %v3107_v34 = vpop.f32.mrb[36].mxu0 }
0x12cb   :  { %v3108_v35 = vadd.f32 %v3107_v34, %v3043_v61  ;;  %v4418_v36 = vpop.f32.mrb[37].mxu0  ;;  %v2917_v61 = vld [vmem:[%s6749_s14] sm:$0x3]  ;;  %v3887_v34 = vld [vmem:[#allocation57] ss:$0 sm:$0xff] }
0x12cc   :  { %v3110_v37 = vpop.f32.mrb[38].mxu0  ;;  %v2935_v62 = vrot.slane %v2917_v61, %v2175_v44  ;;  %v2931_v48 = vrot.slane %v2917_v61, %v2179_v47  ;;  %v4723_v44 = vld [vmem:[%s6748_s6 + $0x38] sm:$0xff]   ;;  %v4725_v47 = vld [vmem:[%s6750_s29 + $0x8] sm:$0xff]  }
0x12cd   :  { %v6563_v38 = vadd.f32 %v3163_v5, %v3108_v35  ;;  %v4419_v39 = vpop.f32.mrb[39].mxu0  ;;  %v4731_v5 = vld [vmem:[%s6750_s29 + $0x38] sm:$0xff]  }
0x134f   :  { %v2897_v45 = vpop.xlane.xlu0 %2896 }
0x1350   :  { %v6567_v1 = vadd.f32 %v3856_v42, %v2897_v45  ;;  %v3896_v45 = vld [vmem:[#allocation58] ss:$0 sm:$0xff] }
0x1352   :  { %2919 = vrot.lane.b32.xlu1 %v6567_v1, %s5678_s27 }
0x1353   :  { %v2915_v49 = vpop.xlane.xlu0 %2914 }
0x1354   :  { %v6570_v50 = vadd.f32 %v3856_v42, %v2915_v49 }
0x13c4   :  { %v2920_v51 = vpop.permute.xlu1 %2919 }
0x13c5   :  { %vm2922_vm5 = vcmp.gt.f32.partialorder %v6570_v50, %v2920_v51 }
0x13c6   :  { %v2923_v53 = vsel %vm2922_vm5, 1, %v5669_v30  ;;  %v4720_v30 = vld [vmem:[%s6748_s6 + $0x20] sm:$0xff]  }
0x13c7   :  { %2925 = vperm.xlu1 %4676, %v2923_v53   ;;  %4445 = vmatpush3.bf16.msra.mxu0 %v4720_v30  ;;  %v3906_v30 = vld [vmem:[#allocation10] ss:$0 sm:$0xff] }
0x13c8   :  { %4446 = vmatprep.subr.bf16.mxu0 %v5672_v55 }
0x13cb   :  { %4447 = vmatpush3.bf16.msra.mxu0 %v4721_v59 }
0x13cc   :  { %4448 = vmatprep.subr.bf16.mxu0 %v5672_v55 }
0x13cf   :  { %4449 = vmatpush3.bf16.msra.mxu0 %v4722_v19 }
0x13d0   :  { %4450 = vmatprep.subr.bf16.mxu0 %v5672_v55 }
0x13d3   :  { %4451 = vmatpush3.bf16.msra.mxu0 %v4723_v44 }
0x13d4   :  { %4476 = vmatprep.subr.bf16.mxu0 %v5672_v55 }
0x1446   :  { %v2926_v63 = vpop.permute.xlu1 %2925 }
0x1447   :  { %vm2927_vm6 = vcmp.eq.s32.totalorder %v2926_v63, 1 }
0x1448   :  { %v2936_v0 = vsel %vm2927_vm6, %v2931_v48, %v2935_v62  ;;  %v3603_v62 = vsel %vm1286_vm0, %v6567_v1, %v6570_v50 }
0x1449   :  { %v3170_v18 = vpack.c.bf16 %v2936_v0, %v2936_v0 }
0x144b   :  { %4433 = vmatmul.mubr.msk.bf16.vlgmr.msra.gmra.mrb[44].mxu1 %vm2719_vm4, %v3170_v18 }
0x144c   :  { %4472 = vmatprep.mubr.msk.bf16.mxu1 %vm5671_vm1, %v5672_v55  ;;  %4457 = vmatpush3.bf16.msra.mxu1 %v4724_v43 }
0x144d   :  { %4458 = vmatprep.subr.bf16.mxu1 %v5672_v55 }
0x1450   :  { %4459 = vmatpush3.bf16.msra.mxu1 %v4725_v47 }
0x1451   :  { %4460 = vmatprep.subr.bf16.mxu1 %v5672_v55 }
0x1454   :  { %4461 = vmatpush3.bf16.msra.mxu1 %v4726_v20 }
0x1455   :  { %4462 = vmatprep.subr.bf16.mxu1 %v5672_v55 }
0x1458   :  { %4463 = vmatpush3.bf16.msra.mxu1 %v4727_v21 }
0x1459   :  { %4464 = vmatprep.subr.bf16.mxu1 %v5672_v55 }
0x145c   :  { %4465 = vmatpush3.bf16.msra.mxu1 %v4728_v22 }
0x145d   :  { %4466 = vmatprep.subr.bf16.mxu1 %v5672_v55 }
0x1460   :  { %4467 = vmatpush3.bf16.msra.mxu1 %v4729_v23 }
0x1461   :  { %4468 = vmatprep.subr.bf16.mxu1 %v5672_v55 }
0x1464   :  { %4469 = vmatpush3.bf16.msra.mxu1 %v4730_v26 }
0x1465   :  { %4470 = vmatprep.subr.bf16.mxu1 %v5672_v55 }
0x1468   :  { %4471 = vmatpush3.bf16.msra.mxu1 %v4731_v5 }
0x151e   :  { %v3224_v24 = vpop.f32.mrb[44].mxu1 }
0x151f   :  { %v3230_v2 = vadd.f32 %v3224_v24, %v6563_v38  ;;  %v4434_v3 = vpop.f32.mrb[45].mxu1 }
0x1520   :  { %v3227_v11 = vpop.f32.mrb[46].mxu1 }
0x1521   :  { %v3238_v12 = vadd.f32 %v3877_v10, %v3230_v2  ;;  %v4435_v4 = vpop.f32.mrb[47].mxu1 }
0x1523   :  { %v3239_v25 = vmax.f32 %v3238_v12, 0.0 }
0x1525   :  { %v3240_v13 = vpack.c.bf16 %v3239_v25, %v3239_v25 }
0x1527   :  { %4453 = vmatmul.mubr.bf16.vlgmr.msra.gmra.mrb[40].mxu0 %v3240_v13 }
0x1528   :  { %4492 = vmatprep.mubr.msk.bf16.mxu0 %vm5671_vm1, %v5672_v55  ;;  %4477 = vmatpush3.bf16.msra.mxu0 %v4732_v14 }
0x1529   :  { %4478 = vmatprep.subr.bf16.mxu0 %v5672_v55 }
0x152c   :  { %4479 = vmatpush3.bf16.msra.mxu0 %v4733_v15 }
0x152d   :  { %4480 = vmatprep.subr.bf16.mxu0 %v5672_v55 }
0x1530   :  { %4481 = vmatpush3.bf16.msra.mxu0 %v4734_v7 }
0x1531   :  { %4482 = vmatprep.subr.bf16.mxu0 %v5672_v55 }
0x1534   :  { %4483 = vmatpush3.bf16.msra.mxu0 %v4735_v60 }
0x1535   :  { %4484 = vmatprep.subr.bf16.mxu0 %v5672_v55 }
0x1538   :  { %4485 = vmatpush3.bf16.msra.mxu0 %v4736_v46 }
0x1539   :  { %4486 = vmatprep.subr.bf16.mxu0 %v5672_v55 }
0x153c   :  { %4487 = vmatpush3.bf16.msra.mxu0 %v4737_v27 }
0x153d   :  { %4488 = vmatprep.subr.bf16.mxu0 %v5672_v55 }
0x1540   :  { %4489 = vmatpush3.bf16.msra.mxu0 %v4738_v32 }
0x1541   :  { %4490 = vmatprep.subr.bf16.mxu0 %v5672_v55 }
0x1544   :  { %4491 = vmatpush3.bf16.msra.mxu0 %v4739_v33 }
0x15fa   :  { %v3346_v28 = vpop.f32.mrb[40].mxu0 }
0x15fb   :  { %v3347_v8 = vadd.f32 %v3878_v16, %v3346_v28  ;;  %v4454_v29 = vpop.f32.mrb[41].mxu0 }
0x15fc   :  { %v3349_v17 = vpop.f32.mrb[42].mxu0 }
0x15fd   :  { %v3352_v31 = vmax.f32 %v3347_v8, 0.0  ;;  %v4455_v9 = vpop.f32.mrb[43].mxu0 }
0x15ff   :  { %v3353_v6 = vpack.c.bf16 %v3352_v31, %v3352_v31 }
0x1601   :  { %4473 = vmatmul.mubr.bf16.vlgmr.msra.gmra.mrb[48].mxu1 %v3353_v6 }
0x16d4   :  { %v3459_v35 = vpop.f32.mrb[48].mxu1 }
0x16d5   :  { %v3460_v36 = vadd.f32 %v3887_v34, %v3459_v35  ;;  %v4474_v37 = vpop.f32.mrb[49].mxu1 }
0x16d6   :  { %v3462_v38 = vpop.f32.mrb[50].mxu1 }
0x16d7   :  { %v3465_v39 = vadd.f32 %v3460_v36, %v3239_v25  ;;  %v4475_v40 = vpop.f32.mrb[51].mxu1 }
0x16d9   :  { %v3466_v41 = vmax.f32 %v3465_v39, 0.0 }
0x16db   :  { %v3467_v42 = vpack.c.bf16 %v3466_v41, %v3466_v41 }
0x16dd   :  { %4493 = vmatmul.mubr.bf16.vlgmr.msra.gmra.mrb[44].mxu0 %v3467_v42 }
0x17b0   :  { %v3573_v49 = vpop.f32.mrb[44].mxu0 }
0x17b1   :  { %v3574_v51 = vadd.f32 %v3896_v45, %v3573_v49  ;;  %v4494_v53 = vpop.f32.mrb[45].mxu0 }
0x17b2   :  { %v3576_v54 = vpop.f32.mrb[46].mxu0 }
0x17b3   :  { %v3579_v55 = vmax.f32 %v3574_v51, 0.0  ;;  %v4495_v57 = vpop.f32.mrb[47].mxu0 }
0x17b5   :  { %v3587_v58 = vmul.f32 %v3905_v56, %v3579_v55 }
0x17b7   :  { %v3588_v52 = vsel %vm2074_vm3, %v3587_v58, 0.0 }
0x17b8   :  { %3589 = vadd.xlane.f32.xlu0 %v3588_v52 }
0x1845   :  { %v3590_v59 = vpop.xlane.xlu0 %3589 }
0x1846   :  { %v3598_v61 = vadd.f32 %v3906_v30, %v3590_v59 }
0x1848   :  { %3600 = vrot.lane.b32.xlu1 %v3598_v61, %s5679_s16 }
0x18ba   :  { %v3601_v48 = vpop.permute.xlu1 %3600 }
0x18bb   :  { %v3605_v63 = vsel %vm3604_vm7, %v3603_v62, %v3601_v48 }
0x18bc   :  { %v3607_v0 = vsel %vm3606_vm8, %v3605_v63, 0.0 }
0x18bd   :  { %3608 = vst [vmem:[%s5966_s19] sm:$0xff] %v3607_v0 }
0x18be   :  { %3613 = vsyncpa [#allocation12], 1 }
0x18bf   :  { %3614 = vsyncpa [#allocation14], 1 }
0x18c0   :  { %3615 = vsyncpa [#allocation17], 1 }
0x18c1   :  { %3616 = vsyncpa [#allocation20], 1 }
0x18c2   :  { %3617 = vsyncpa [#allocation23], 1 }
0x18c3   :  { %3618 = vsyncpa [#allocation26], 1 }
0x18c4   :  { %3619 = vsyncpa [#allocation29], 1 }
0x18c5   :  { %3620 = vsyncpa [#allocation32], 1 }
0x18c6   :  { %3621 = vsyncpa [#allocation35], 1 }
0x18c7   :  { %3622 = vsyncpa [#allocation38], 1 }
0x18c8   :  { %3623 = vsyncpa [#allocation41], 1 }
0x18c9   :  { %3624 = vsyncpa [#allocation44], 1 }
0x18ca   :  { %3625 = vsyncpa [#allocation47], 1 }
0x18cb   :  { %3626 = vsyncpa [#allocation50], 1 }
0x18cc   :  { %3627 = vsyncpa [#allocation53], 1 }
0x18cd   :  { %3628 = vsyncpa [#allocation56], 1 }
0x18ce   :  { %3629 = vsyncpa [#allocation59], 1 }
0x18cf   :  { %3630 = vsyncmov [#allocation8] }
0x18d2   :  { %s3631_s12 = vpop.sfrf %3630 }
0x18d3   :  { %p3907_p8 = scmp.ne.s32.totalorder %s3631_s12, 0 }
0x18d5   :  { %3635 = shalt.err (%p3907_p8)  }
0x18d6   :  { %3637 = vsyncmov [#allocation8 + $0x1] }
0x18d9   :  { %s3638_s19 = vpop.sfrf %3637 }
0x18da   :  { %p3908_p9 = scmp.ne.s32.totalorder %s3638_s19, 0 }
0x18dc   :  { %3642 = shalt.err (%p3908_p9)  }
0x18dd   :  { %3644 = vsyncmov [#allocation8 + $0x2] }
0x18e0   :  { %s3645_s18 = vpop.sfrf %3644 }
0x18e1   :  { %p3909_p10 = scmp.ne.s32.totalorder %s3645_s18, 0 }
0x18e3   :  { %3649 = shalt.err (%p3909_p10)  }
0x18e4   :  { %3651 = vsyncmov [#allocation8 + $0x3] }
0x18e7   :  { %s3652_s9 = vpop.sfrf %3651 }
0x18e8   :  { %p3910_p11 = scmp.ne.s32.totalorder %s3652_s9, 0 }
0x18ea   :  { %3656 = shalt.err (%p3910_p11)  }
0x18eb   :  { %3658 = vsyncmov [#allocation8 + $0x4] }
0x18ee   :  { %s3659_s5 = vpop.sfrf %3658 }
0x18ef   :  { %p3911_p12 = scmp.ne.s32.totalorder %s3659_s5, 0 }
0x18f1   :  { %3663 = shalt.err (%p3911_p12)  }
0x18f2   :  { %3665 = vsyncmov [#allocation8 + $0x5] }
0x18f5   :  { %s3666_s15 = vpop.sfrf %3665 }
0x18f6   :  { %p3912_p13 = scmp.ne.s32.totalorder %s3666_s15, 0 }
0x18f8   :  { %3670 = shalt.err (%p3912_p13)  }

</bundles_post_ra>
